<compile_context>
chip_gen: v7x
topology: tpu7x:2x2x1
jax: 0.10.0
libtpu: 0.0.40
codegen_flags: <defaults>
</compile_context>

<pallas_src>
import functools

import jax
import jax.numpy as jnp
from jax import lax
from jax.experimental import pallas as pl
from jax.experimental.pallas import tpu as pltpu


C1_REAL = 64    # conv1 real output channels
C1 = 128        # conv1 channels padded to a full lane group (lane-dense VMEM)
C2 = 128        # conv2 output channels
C3 = 512        # conv3 output channels (classifier expects 512*1*1)
K1 = 32         # conv1 im2col contraction dim (27 padded to 32)


def _round_up(v, m):
    return (v + m - 1) // m * m


def _make_kernel(nt, h, w):
    """Fused VGG forward for one batch tile of `nt` images with (h, w) spatial."""
    h2, w2 = h // 2, w // 2
    h3, w3 = h2 // 2, w2 // 2
    m1, m2, m3 = nt * h * w, nt * h2 * w2, nt * h3 * w3
    pad2 = _round_up(w2 + 1, 8)          # head/tail room for the +/-1-row tap shifts
    pad3 = _round_up(w3 + 1, 8)
    taps = [(dy, dx) for dy in (-1, 0, 1) for dx in (-1, 0, 1)]

    def build_im2col(src_ref, im_ref, pad, hh, ww, m, cin):
        """Compact im2col: 9 shifted, edge-masked taps -> bf16 (m, 9*cin) scratch.

        src_ref holds the compact activation rows at [pad, pad+m); for tap (dy,dx)
        the rows needed by every output pixel are the contiguous slice starting at
        pad + dy*ww + dx, and out-of-image contributions are select-masked to zero
        (so pad rows never need zero-initialisation and no garbage rows enter M).
        """
        o = lax.broadcasted_iota(jnp.int32, (m, 1), 0)
        pix = o & (hh * ww - 1)                       # power-of-two spatial dims
        yy = pix >> (ww.bit_length() - 1)
        xx = pix & (ww - 1)
        for t, (dy, dx) in enumerate(taps):
            lhs = src_ref[pl.ds(pad + dy * ww + dx, m), :]
            conds = []
            if dy < 0:
                conds.append(yy >= -dy)
            if dy > 0:
                conds.append(yy < hh - dy)
            if dx < 0:
                conds.append(xx >= -dx)
            if dx > 0:
                conds.append(xx < ww - dx)
            if conds:
                valid = functools.reduce(lambda a, b: a & b, conds)
                lhs = jnp.where(valid, lhs, 0.0)
            im_ref[:, pl.ds(t * cin, cin)] = lhs.astype(jnp.bfloat16)

    def maxpool2x2(src_ref, hm_ref, dst_ref, dst_pad, hh, ww, m):
        """2x2/2 max-pool of compact (m, C) rows -> dst_ref rows [dst_pad, dst_pad+m//4)."""
        wh, hh2 = ww // 2, hh // 2
        # horizontal max: one whole-array stride-2 pass over even/odd x columns
        hm_ref[...] = jnp.maximum(src_ref[pl.ds(0, m // 2, stride=2), :],
                                  src_ref[pl.ds(1, m // 2, stride=2), :])
        # vertical max: one contiguous load pair + aligned store per output row
        for r in range(nt * hh2):
            n, yo = divmod(r, hh2)
            base = (n * hh + 2 * yo) * wh
            dst_ref[pl.ds(dst_pad + r * wh, wh), :] = jnp.maximum(
                hm_ref[pl.ds(base, wh), :], hm_ref[pl.ds(base + wh, wh), :])

    def kernel(x1_ref, cw1_ref, cb1_ref, cw2_ref, cb2_ref, cw3_ref, cb3_ref,
               fw1_ref, fb1_ref, fw2_ref, fb2_ref, fw3_ref, fb3_ref, o_ref,
               c1_ref, hm1_ref, p1_ref, im2_ref, c2_ref, hm2_ref, p2_ref, im3_ref):
        # -------- conv1 + bias + ReLU: one (m1, 32) x (32, 128) matmul -----------
        a1 = jnp.dot(x1_ref[...], cw1_ref[...], preferred_element_type=jnp.float32)
        c1_ref[...] = jnp.maximum(a1 + cb1_ref[...], 0.0)

        # -------- maxpool1 -> compact conv2 input (rows [pad2, pad2+m2)) ---------
        maxpool2x2(c1_ref, hm1_ref, p1_ref, pad2, h, w, m1)

        # -------- conv2: compact im2col + single long-K matmul (K = 1152) --------
        build_im2col(p1_ref, im2_ref, pad2, h2, w2, m2, C1)
        a2 = jnp.dot(im2_ref[...], cw2_ref[...], preferred_element_type=jnp.float32)
        c2_ref[...] = jnp.maximum(a2 + cb2_ref[...], 0.0)

        # -------- maxpool2 -> compact conv3 input --------------------------------
        maxpool2x2(c2_ref, hm2_ref, p2_ref, pad3, h2, w2, m2)

        # -------- conv3 (FLOP-dominant): compact rows only, K = 1152 -------------
        build_im2col(p2_ref, im3_ref, pad3, h3, w3, m3, C2)
        a3 = jnp.dot(im3_ref[...], cw3_ref[...], preferred_element_type=jnp.float32)
        a3 = jnp.maximum(a3 + cb3_ref[...], 0.0)                     # (m3, 512)

        # -------- AdaptiveAvgPool2d((1,1)): per-image mean over compact rows -----
        inv = 1.0 / (h3 * w3)
        feats = [jnp.sum(a3[n * h3 * w3:(n + 1) * h3 * w3, :], axis=0,
                         keepdims=True) * inv for n in range(nt)]
        if nt < 8:  # pad classifier M to 8 sublanes
            feats.append(jnp.zeros((8 - nt, C3), jnp.float32))
        feat = jnp.concatenate(feats, axis=0) if len(feats) > 1 else feats[0]

        # -------- classifier: Linear/ReLU/Linear/ReLU/Linear ---------------------
        # TODO(synk): nn.Dropout is identity at inference; training-mode dropout
        # would need pltpu.prng_seed / pltpu.prng_random_bits.
        z = jnp.dot(feat.astype(jnp.bfloat16), fw1_ref[...],
                    preferred_element_type=jnp.float32) + fb1_ref[...]
        z = jnp.maximum(z, 0.0)
        z = jnp.dot(z.astype(jnp.bfloat16), fw2_ref[...],
                    preferred_element_type=jnp.float32) + fb2_ref[...]
        z = jnp.maximum(z, 0.0)
        z = jnp.dot(z.astype(jnp.bfloat16), fw3_ref[...],
                    preferred_element_type=jnp.float32) + fb3_ref[...]
        o_ref[...] = z[:nt]                                          # (nt, nc_pad)

    scratch = [
        pltpu.VMEM((m1, C1), jnp.float32),               # conv1 output
        pltpu.VMEM((m1 // 2, C1), jnp.float32),          # pool1 horizontal max
        pltpu.VMEM((m2 + 2 * pad2, C1), jnp.float32),    # pool1 out / conv2 input
        pltpu.VMEM((m2, 9 * C1), jnp.bfloat16),          # conv2 compact im2col
        pltpu.VMEM((m2, C2), jnp.float32),               # conv2 output
        pltpu.VMEM((m2 // 2, C2), jnp.float32),          # pool2 horizontal max
        pltpu.VMEM((m3 + 2 * pad3, C2), jnp.float32),    # pool2 out / conv3 input
        pltpu.VMEM((m3, 9 * C2), jnp.bfloat16),          # conv3 compact im2col
    ]
    scratch_bytes = ((m1 + m1 // 2 + m2 + 2 * pad2) * C1
                     + (m2 + m2 // 2 + m3 + 2 * pad3) * C2) * 4 \
                    + (m2 * 9 * C1 + m3 * 9 * C2) * 2
    return kernel, scratch, scratch_bytes


def vgg_forward(x_nchw, p, *, num_classes=10, batch_tile=1):
    """x_nchw: (N, 3, H, W) float32 (PyTorch layout) -> logits (N, num_classes)."""
    n, cin, h, w = x_nchw.shape
    assert cin == 3
    assert h >= 8 and w >= 8 and (h & (h - 1)) == 0 and (w & (w - 1)) == 0, \
        "spatial dims must be powers of two >= 8 (CIFAR-style)"
    assert n % batch_tile == 0
    nt, g = batch_tile, n // batch_tile
    nc_pad = _round_up(num_classes, 128)

    x = jnp.transpose(x_nchw, (0, 2, 3, 1)).astype(jnp.float32)        # NHWC
    # conv1 im2col in the wrapper (Cin=3 -> 27 cols, zero-padded to 32 so the HBM
    # input block is lane-friendly); conv2/conv3 im2col is built in-kernel in VMEM.
    xp = jnp.pad(x, ((0, 0), (1, 1), (1, 1), (0, 0)))
    cols = jnp.concatenate([xp[:, dy:dy + h, dx:dx + w, :]
                            for dy in range(3) for dx in range(3)], axis=-1)
    x1 = jnp.pad(cols.reshape(n * h * w, 9 * cin),
                 ((0, 0), (0, K1 - 9 * cin))).astype(jnp.bfloat16)      # (N*H*W, 32)

    # conv1 padded to 128 output channels (lane-dense activations); conv2's
    # input-channel axis padded to match (extra rows/lanes are zeros -> no effect).
    cw1 = jnp.pad(p["conv1_w"].reshape(9 * cin, C1_REAL),
                  ((0, K1 - 9 * cin), (0, C1 - C1_REAL))).astype(jnp.bfloat16)
    cb1 = jnp.pad(p["conv1_b"], (0, C1 - C1_REAL)).reshape(1, C1)
    cw2 = jnp.pad(p["conv2_w"], ((0, 0), (0, 0), (0, C1 - C1_REAL), (0, 0))
                  ).reshape(9 * C1, C2).astype(jnp.bfloat16)
    cb2 = p["conv2_b"].reshape(1, C2)
    cw3 = p["conv3_w"].reshape(9 * C2, C3).astype(jnp.bfloat16)
    cb3 = p["conv3_b"].reshape(1, C3)
    fw1 = p["fc1_w"].astype(jnp.bfloat16)
    fb1 = p["fc1_b"]
    fw2 = p["fc2_w"].astype(jnp.bfloat16)
    fb2 = p["fc2_b"]
    # pad the final Linear to 128 output lanes -> lane-dense HBM store; slice below
    fw3 = jnp.pad(p["fc3_w"], ((0, 0), (0, nc_pad - num_classes))).astype(jnp.bfloat16)
    fb3 = jnp.pad(p["fc3_b"], ((0, 0), (0, nc_pad - num_classes)))

    kernel, scratch, scratch_bytes = _make_kernel(nt, h, w)

    weights = (cw1, cb1, cw2, cb2, cw3, cb3, fw1, fb1, fw2, fb2, fw3, fb3)
    resident = lambda a: pl.BlockSpec(a.shape, lambda i: (0, 0))  # constant index map
    in_specs = [pl.BlockSpec((nt * h * w, K1), lambda i: (i, 0))] + \
               [resident(a) for a in weights]

    # scratch + resident weights + double-buffered input/output blocks (+ slack),
    # clamped to stay under the v7x 64 MiB/TC ceiling.
    est = (scratch_bytes
           + 2 * sum(a.size * a.dtype.itemsize for a in weights)
           + 2 * nt * h * w * K1 * 2 + 2 * nt * nc_pad * 4 + (4 << 20))
    vmem_limit = min(56 * 1024 * 1024, max(32 * 1024 * 1024, int(est)))

    out = pl.pallas_call(
        kernel,
        out_shape=jax.ShapeDtypeStruct((g, nt, nc_pad), jnp.float32),
        grid=(g,),
        in_specs=in_specs,
        out_specs=pl.BlockSpec((None, nt, nc_pad), lambda i: (i, 0, 0)),
        scratch_shapes=scratch,
        compiler_params=pltpu.CompilerParams(
            dimension_semantics=("parallel",),     # megacore-shard the batch tiles
            vmem_limit_bytes=vmem_limit),
    )(x1, *weights)
    return out.reshape(n, nc_pad)[:, :num_classes]


# -----------------------------------------------------------------------------
# Deterministic parameter init (mirrors VGG._initialize_weights)
# -----------------------------------------------------------------------------
def init_params(key, dim=256, num_classes=10):
    ks = jax.random.split(key, 6)

    def conv_w(k, cin, cout):
        # kaiming_normal_(mode='fan_out', nonlinearity='relu'); stored (3,3,Cin,Cout)
        std = (2.0 / (cout * 9)) ** 0.5
        return jax.random.normal(k, (3, 3, cin, cout), jnp.float32) * std

    def lin_w(k, fin, fout):
        # nn.init.normal_(weight, 0, 0.01); stored as (in, out)
        return jax.random.normal(k, (fin, fout), jnp.float32) * 0.01

    return {
        "conv1_w": conv_w(ks[0], 3, C1_REAL),
        "conv1_b": jnp.zeros((C1_REAL,), jnp.float32),
        "conv2_w": conv_w(ks[1], C1_REAL, C2),
        "conv2_b": jnp.zeros((C2,), jnp.float32),
        "conv3_w": conv_w(ks[2], C2, C3),
        "conv3_b": jnp.zeros((C3,), jnp.float32),
        "fc1_w": lin_w(ks[3], C3, dim), "fc1_b": jnp.zeros((1, dim), jnp.float32),
        "fc2_w": lin_w(ks[4], dim, dim), "fc2_b": jnp.zeros((1, dim), jnp.float32),
        "fc3_w": lin_w(ks[5], dim, num_classes),
        "fc3_b": jnp.zeros((1, num_classes), jnp.float32),
    }


if __name__ == "__main__":
    key = jax.random.PRNGKey(0)
    k_x, k_p = jax.random.split(key)

    # Small CIFAR-style shapes: batch=2, 3 input channels, 16x16 spatial.
    x = jax.random.normal(k_x, (2, 3, 16, 16), jnp.float32)   # NCHW like PyTorch
    params = init_params(k_p, dim=256, num_classes=10)

    fwd = jax.jit(lambda xx, pp: vgg_forward(xx, pp, num_classes=10, batch_tile=1))
    logits = jax.block_until_ready(fwd(x, params))

    assert logits.shape == (2, 10) and logits.dtype == jnp.float32
    assert bool(jnp.all(jnp.isfinite(logits)))
    print("KERNEL_OK")
</pallas_src>

<mosaic_0001>
module attributes {stable_mosaic.version = 11 : i64} {
  func.func @kernel(%arg0: i32, %arg1: memref<256x32xbf16, #tpu.memory_space<vmem>>, %arg2: memref<32x128xbf16, #tpu.memory_space<vmem>>, %arg3: memref<1x128xf32, #tpu.memory_space<vmem>>, %arg4: memref<1152x128xbf16, #tpu.memory_space<vmem>>, %arg5: memref<1x128xf32, #tpu.memory_space<vmem>>, %arg6: memref<1152x512xbf16, #tpu.memory_space<vmem>>, %arg7: memref<1x512xf32, #tpu.memory_space<vmem>>, %arg8: memref<512x256xbf16, #tpu.memory_space<vmem>>, %arg9: memref<1x256xf32, #tpu.memory_space<vmem>>, %arg10: memref<256x256xbf16, #tpu.memory_space<vmem>>, %arg11: memref<1x256xf32, #tpu.memory_space<vmem>>, %arg12: memref<256x128xbf16, #tpu.memory_space<vmem>>, %arg13: memref<1x128xf32, #tpu.memory_space<vmem>>, %arg14: memref<1x1x128xf32, #tpu.memory_space<vmem>>, %arg15: memref<256x128xf32, #tpu.memory_space<vmem>>, %arg16: memref<128x128xf32, #tpu.memory_space<vmem>>, %arg17: memref<96x128xf32, #tpu.memory_space<vmem>>, %arg18: memref<64x1152xbf16, #tpu.memory_space<vmem>>, %arg19: memref<64x128xf32, #tpu.memory_space<vmem>>, %arg20: memref<32x128xf32, #tpu.memory_space<vmem>>, %arg21: memref<32x128xf32, #tpu.memory_space<vmem>>, %arg22: memref<16x1152xbf16, #tpu.memory_space<vmem>>) attributes {dimension_semantics = [#tpu.dimension_semantics<parallel>], iteration_bounds = array<i64: 2>, scalar_prefetch = 0 : i64, scratch_operands = 8 : i64, tpu.core_type = #tpu.core_type<tc>, window_params = [{transform_indices = @transform_0, window_bounds = array<i64: 256, 32>}, {pipeline_mode = #tpu.pipeline_mode<synchronous>, transform_indices = @transform_1, window_bounds = array<i64: 32, 128>}, {pipeline_mode = #tpu.pipeline_mode<synchronous>, transform_indices = @transform_2, window_bounds = array<i64: 1, 128>}, {pipeline_mode = #tpu.pipeline_mode<synchronous>, transform_indices = @transform_3, window_bounds = array<i64: 1152, 128>}, {pipeline_mode = #tpu.pipeline_mode<synchronous>, transform_indices = @transform_4, window_bounds = array<i64: 1, 128>}, {pipeline_mode = #tpu.pipeline_mode<synchronous>, transform_indices = @transform_5, window_bounds = array<i64: 1152, 512>}, {pipeline_mode = #tpu.pipeline_mode<synchronous>, transform_indices = @transform_6, window_bounds = array<i64: 1, 512>}, {pipeline_mode = #tpu.pipeline_mode<synchronous>, transform_indices = @transform_7, window_bounds = array<i64: 512, 256>}, {pipeline_mode = #tpu.pipeline_mode<synchronous>, transform_indices = @transform_8, window_bounds = array<i64: 1, 256>}, {pipeline_mode = #tpu.pipeline_mode<synchronous>, transform_indices = @transform_9, window_bounds = array<i64: 256, 256>}, {pipeline_mode = #tpu.pipeline_mode<synchronous>, transform_indices = @transform_10, window_bounds = array<i64: 1, 256>}, {pipeline_mode = #tpu.pipeline_mode<synchronous>, transform_indices = @transform_11, window_bounds = array<i64: 256, 128>}, {pipeline_mode = #tpu.pipeline_mode<synchronous>, transform_indices = @transform_12, window_bounds = array<i64: 1, 128>}, {transform_indices = @transform_13, window_bounds = array<i64: 1, 1, 128>}]} {
    %c0 = arith.constant 0 : index
    %c0_0 = arith.constant 0 : index
    %0 = vector.load %arg1[%c0, %c0_0] : memref<256x32xbf16, #tpu.memory_space<vmem>>, vector<256x32xbf16>
    %c0_1 = arith.constant 0 : index
    %c0_2 = arith.constant 0 : index
    %1 = vector.load %arg2[%c0_1, %c0_2] : memref<32x128xbf16, #tpu.memory_space<vmem>>, vector<32x128xbf16>
    %cst = arith.constant dense<0.000000e+00> : vector<256x128xf32>
    %2 = tpu.matmul %0, %1, %cst {dimension_numbers = #tpu.dot_dimension_numbers<[1], [0], [0], [1], [0, 0, 1, 1], [], []>} : vector<256x32xbf16>, vector<32x128xbf16>, vector<256x128xf32> -> vector<256x128xf32>
    %c0_3 = arith.constant 0 : index
    %c0_4 = arith.constant 0 : index
    %3 = vector.load %arg3[%c0_3, %c0_4] : memref<1x128xf32, #tpu.memory_space<vmem>>, vector<1x128xf32>
    %4 = vector.broadcast %3 : vector<1x128xf32> to vector<256x128xf32>
    %5 = arith.addf %2, %4 : vector<256x128xf32>
    %cst_5 = arith.constant 0.000000e+00 : f32
    %6 = vector.broadcast %cst_5 : f32 to vector<256x128xf32>
    %7 = arith.maximumf %5, %6 : vector<256x128xf32>
    %c0_6 = arith.constant 0 : index
    %c0_7 = arith.constant 0 : index
    %8 = vector.load %arg15[%c0_6, %c0_7] : memref<256x128xf32, #tpu.memory_space<vmem>>, vector<256x128xf32>
    tpu.vector_store %arg15[%c0_6, %c0_7], %7 {strides = array<i32>} : memref<256x128xf32, #tpu.memory_space<vmem>>, vector<256x128xf32>,
    %c0_8 = arith.constant 0 : index
    %c0_9 = arith.constant 0 : index
    %9 = tpu.strided_load %arg15[%c0_8, %c0_9] {strides = array<i32: 2, 1>} : memref<256x128xf32, #tpu.memory_space<vmem>>, vector<128x128xf32>
    %c1 = arith.constant 1 : index
    %c0_10 = arith.constant 0 : index
    %10 = tpu.strided_load %arg15[%c1, %c0_10] {strides = array<i32: 2, 1>} : memref<256x128xf32, #tpu.memory_space<vmem>>, vector<128x128xf32>
    %11 = arith.maximumf %9, %10 : vector<128x128xf32>
    %c0_11 = arith.constant 0 : index
    %c0_12 = arith.constant 0 : index
    %12 = vector.load %arg16[%c0_11, %c0_12] : memref<128x128xf32, #tpu.memory_space<vmem>>, vector<128x128xf32>
    tpu.vector_store %arg16[%c0_11, %c0_12], %11 {strides = array<i32>} : memref<128x128xf32, #tpu.memory_space<vmem>>, vector<128x128xf32>,
    %c0_13 = arith.constant 0 : index
    %c0_14 = arith.constant 0 : index
    %13 = vector.load %arg16[%c0_13, %c0_14] : memref<128x128xf32, #tpu.memory_space<vmem>>, vector<8x128xf32>
    %c8 = arith.constant 8 : index
    %c0_15 = arith.constant 0 : index
    %14 = vector.load %arg16[%c8, %c0_15] : memref<128x128xf32, #tpu.memory_space<vmem>>, vector<8x128xf32>
    %15 = arith.maximumf %13, %14 : vector<8x128xf32>
    %c16 = arith.constant 16 : index
    %c0_16 = arith.constant 0 : index
    %16 = vector.load %arg17[%c16, %c0_16] : memref<96x128xf32, #tpu.memory_space<vmem>>, vector<8x128xf32>
    tpu.vector_store %arg17[%c16, %c0_16], %15 {strides = array<i32>} : memref<96x128xf32, #tpu.memory_space<vmem>>, vector<8x128xf32>,
    %c16_17 = arith.constant 16 : index
    %c0_18 = arith.constant 0 : index
    %17 = vector.load %arg16[%c16_17, %c0_18] : memref<128x128xf32, #tpu.memory_space<vmem>>, vector<8x128xf32>
    %c24 = arith.constant 24 : index
    %c0_19 = arith.constant 0 : index
    %18 = vector.load %arg16[%c24, %c0_19] : memref<128x128xf32, #tpu.memory_space<vmem>>, vector<8x128xf32>
    %19 = arith.maximumf %17, %18 : vector<8x128xf32>
    %c24_20 = arith.constant 24 : index
    %c0_21 = arith.constant 0 : index
    %20 = vector.load %arg17[%c24_20, %c0_21] : memref<96x128xf32, #tpu.memory_space<vmem>>, vector<8x128xf32>
    tpu.vector_store %arg17[%c24_20, %c0_21], %19 {strides = array<i32>} : memref<96x128xf32, #tpu.memory_space<vmem>>, vector<8x128xf32>,
    %c32 = arith.constant 32 : index
    %c0_22 = arith.constant 0 : index
    %21 = vector.load %arg16[%c32, %c0_22] : memref<128x128xf32, #tpu.memory_space<vmem>>, vector<8x128xf32>
    %c40 = arith.constant 40 : index
    %c0_23 = arith.constant 0 : index
    %22 = vector.load %arg16[%c40, %c0_23] : memref<128x128xf32, #tpu.memory_space<vmem>>, vector<8x128xf32>
    %23 = arith.maximumf %21, %22 : vector<8x128xf32>
    %c32_24 = arith.constant 32 : index
    %c0_25 = arith.constant 0 : index
    %24 = vector.load %arg17[%c32_24, %c0_25] : memref<96x128xf32, #tpu.memory_space<vmem>>, vector<8x128xf32>
    tpu.vector_store %arg17[%c32_24, %c0_25], %23 {strides = array<i32>} : memref<96x128xf32, #tpu.memory_space<vmem>>, vector<8x128xf32>,
    %c48 = arith.constant 48 : index
    %c0_26 = arith.constant 0 : index
    %25 = vector.load %arg16[%c48, %c0_26] : memref<128x128xf32, #tpu.memory_space<vmem>>, vector<8x128xf32>
    %c56 = arith.constant 56 : index
    %c0_27 = arith.constant 0 : index
    %26 = vector.load %arg16[%c56, %c0_27] : memref<128x128xf32, #tpu.memory_space<vmem>>, vector<8x128xf32>
    %27 = arith.maximumf %25, %26 : vector<8x128xf32>
    %c40_28 = arith.constant 40 : index
    %c0_29 = arith.constant 0 : index
    %28 = vector.load %arg17[%c40_28, %c0_29] : memref<96x128xf32, #tpu.memory_space<vmem>>, vector<8x128xf32>
    tpu.vector_store %arg17[%c40_28, %c0_29], %27 {strides = array<i32>} : memref<96x128xf32, #tpu.memory_space<vmem>>, vector<8x128xf32>,
    %c64 = arith.constant 64 : index
    %c0_30 = arith.constant 0 : index
    %29 = vector.load %arg16[%c64, %c0_30] : memref<128x128xf32, #tpu.memory_space<vmem>>, vector<8x128xf32>
    %c72 = arith.constant 72 : index
    %c0_31 = arith.constant 0 : index
    %30 = vector.load %arg16[%c72, %c0_31] : memref<128x128xf32, #tpu.memory_space<vmem>>, vector<8x128xf32>
    %31 = arith.maximumf %29, %30 : vector<8x128xf32>
    %c48_32 = arith.constant 48 : index
    %c0_33 = arith.constant 0 : index
    %32 = vector.load %arg17[%c48_32, %c0_33] : memref<96x128xf32, #tpu.memory_space<vmem>>, vector<8x128xf32>
    tpu.vector_store %arg17[%c48_32, %c0_33], %31 {strides = array<i32>} : memref<96x128xf32, #tpu.memory_space<vmem>>, vector<8x128xf32>,
    %c80 = arith.constant 80 : index
    %c0_34 = arith.constant 0 : index
    %33 = vector.load %arg16[%c80, %c0_34] : memref<128x128xf32, #tpu.memory_space<vmem>>, vector<8x128xf32>
    %c88 = arith.constant 88 : index
    %c0_35 = arith.constant 0 : index
    %34 = vector.load %arg16[%c88, %c0_35] : memref<128x128xf32, #tpu.memory_space<vmem>>, vector<8x128xf32>
    %35 = arith.maximumf %33, %34 : vector<8x128xf32>
    %c56_36 = arith.constant 56 : index
    %c0_37 = arith.constant 0 : index
    %36 = vector.load %arg17[%c56_36, %c0_37] : memref<96x128xf32, #tpu.memory_space<vmem>>, vector<8x128xf32>
    tpu.vector_store %arg17[%c56_36, %c0_37], %35 {strides = array<i32>} : memref<96x128xf32, #tpu.memory_space<vmem>>, vector<8x128xf32>,
    %c96 = arith.constant 96 : index
    %c0_38 = arith.constant 0 : index
    %37 = vector.load %arg16[%c96, %c0_38] : memref<128x128xf32, #tpu.memory_space<vmem>>, vector<8x128xf32>
    %c104 = arith.constant 104 : index
    %c0_39 = arith.constant 0 : index
    %38 = vector.load %arg16[%c104, %c0_39] : memref<128x128xf32, #tpu.memory_space<vmem>>, vector<8x128xf32>
    %39 = arith.maximumf %37, %38 : vector<8x128xf32>
    %c64_40 = arith.constant 64 : index
    %c0_41 = arith.constant 0 : index
    %40 = vector.load %arg17[%c64_40, %c0_41] : memref<96x128xf32, #tpu.memory_space<vmem>>, vector<8x128xf32>
    tpu.vector_store %arg17[%c64_40, %c0_41], %39 {strides = array<i32>} : memref<96x128xf32, #tpu.memory_space<vmem>>, vector<8x128xf32>,
    %c112 = arith.constant 112 : index
    %c0_42 = arith.constant 0 : index
    %41 = vector.load %arg16[%c112, %c0_42] : memref<128x128xf32, #tpu.memory_space<vmem>>, vector<8x128xf32>
    %c120 = arith.constant 120 : index
    %c0_43 = arith.constant 0 : index
    %42 = vector.load %arg16[%c120, %c0_43] : memref<128x128xf32, #tpu.memory_space<vmem>>, vector<8x128xf32>
    %43 = arith.maximumf %41, %42 : vector<8x128xf32>
    %c72_44 = arith.constant 72 : index
    %c0_45 = arith.constant 0 : index
    %44 = vector.load %arg17[%c72_44, %c0_45] : memref<96x128xf32, #tpu.memory_space<vmem>>, vector<8x128xf32>
    tpu.vector_store %arg17[%c72_44, %c0_45], %43 {strides = array<i32>} : memref<96x128xf32, #tpu.memory_space<vmem>>, vector<8x128xf32>,
    %45 = tpu.iota {dimensions = array<i32: 0>} : vector<64x1xi32>
    %c63_i32 = arith.constant 63 : i32
    %46 = vector.broadcast %c63_i32 : i32 to vector<64x1xi32>
    %47 = arith.andi %45, %46 : vector<64x1xi32>
    %c3_i32 = arith.constant 3 : i32
    %48 = vector.broadcast %c3_i32 : i32 to vector<64x1xi32>
    %49 = arith.shrsi %47, %48 : vector<64x1xi32>
    %c7_i32 = arith.constant 7 : i32
    %50 = vector.broadcast %c7_i32 : i32 to vector<64x1xi32>
    %51 = arith.andi %47, %50 : vector<64x1xi32>
    %c7 = arith.constant 7 : index
    %c0_46 = arith.constant 0 : index
    %52 = vector.load %arg17[%c7, %c0_46] : memref<96x128xf32, #tpu.memory_space<vmem>>, vector<64x128xf32>
    %c1_i32 = arith.constant 1 : i32
    %53 = vector.broadcast %c1_i32 : i32 to vector<64x1xi32>
    %54 = arith.cmpi sge, %49, %53 : vector<64x1xi32>
    %c1_i32_47 = arith.constant 1 : i32
    %55 = vector.broadcast %c1_i32_47 : i32 to vector<64x1xi32>
    %56 = arith.cmpi sge, %51, %55 : vector<64x1xi32>
    %57 = arith.andi %54, %56 : vector<64x1xi1>
    %cst_48 = arith.constant 0.000000e+00 : f32
    %58 = vector.shape_cast %57 : vector<64x1xi1> to vector<64x1xi1>
    %59 = vector.broadcast %58 : vector<64x1xi1> to vector<64x128xi1>
    %60 = vector.broadcast %cst_48 : f32 to vector<64x128xf32>
    %61 = arith.select %59, %52, %60 : vector<64x128xi1>, vector<64x128xf32>
    %62 = arith.truncf %61 : vector<64x128xf32> to vector<64x128xbf16>
    %c0_49 = arith.constant 0 : index
    %c0_50 = arith.constant 0 : index
    %63 = vector.load %arg18[%c0_49, %c0_50] : memref<64x1152xbf16, #tpu.memory_space<vmem>>, vector<64x128xbf16>
    tpu.vector_store %arg18[%c0_49, %c0_50], %62 {strides = array<i32>} : memref<64x1152xbf16, #tpu.memory_space<vmem>>, vector<64x128xbf16>,
    %c8_51 = arith.constant 8 : index
    %c0_52 = arith.constant 0 : index
    %64 = vector.load %arg17[%c8_51, %c0_52] : memref<96x128xf32, #tpu.memory_space<vmem>>, vector<64x128xf32>
    %c1_i32_53 = arith.constant 1 : i32
    %65 = vector.broadcast %c1_i32_53 : i32 to vector<64x1xi32>
    %66 = arith.cmpi sge, %49, %65 : vector<64x1xi32>
    %cst_54 = arith.constant 0.000000e+00 : f32
    %67 = vector.shape_cast %66 : vector<64x1xi1> to vector<64x1xi1>
    %68 = vector.broadcast %67 : vector<64x1xi1> to vector<64x128xi1>
    %69 = vector.broadcast %cst_54 : f32 to vector<64x128xf32>
    %70 = arith.select %68, %64, %69 : vector<64x128xi1>, vector<64x128xf32>
    %71 = arith.truncf %70 : vector<64x128xf32> to vector<64x128xbf16>
    %c0_55 = arith.constant 0 : index
    %c128 = arith.constant 128 : index
    %72 = vector.load %arg18[%c0_55, %c128] : memref<64x1152xbf16, #tpu.memory_space<vmem>>, vector<64x128xbf16>
    tpu.vector_store %arg18[%c0_55, %c128], %71 {strides = array<i32>} : memref<64x1152xbf16, #tpu.memory_space<vmem>>, vector<64x128xbf16>,
    %c9 = arith.constant 9 : index
    %c0_56 = arith.constant 0 : index
    %73 = vector.load %arg17[%c9, %c0_56] : memref<96x128xf32, #tpu.memory_space<vmem>>, vector<64x128xf32>
    %c1_i32_57 = arith.constant 1 : i32
    %74 = vector.broadcast %c1_i32_57 : i32 to vector<64x1xi32>
    %75 = arith.cmpi sge, %49, %74 : vector<64x1xi32>
    %c7_i32_58 = arith.constant 7 : i32
    %76 = vector.broadcast %c7_i32_58 : i32 to vector<64x1xi32>
    %77 = arith.cmpi slt, %51, %76 : vector<64x1xi32>
    %78 = arith.andi %75, %77 : vector<64x1xi1>
    %cst_59 = arith.constant 0.000000e+00 : f32
    %79 = vector.shape_cast %78 : vector<64x1xi1> to vector<64x1xi1>
    %80 = vector.broadcast %79 : vector<64x1xi1> to vector<64x128xi1>
    %81 = vector.broadcast %cst_59 : f32 to vector<64x128xf32>
    %82 = arith.select %80, %73, %81 : vector<64x128xi1>, vector<64x128xf32>
    %83 = arith.truncf %82 : vector<64x128xf32> to vector<64x128xbf16>
    %c0_60 = arith.constant 0 : index
    %c256 = arith.constant 256 : index
    %84 = vector.load %arg18[%c0_60, %c256] : memref<64x1152xbf16, #tpu.memory_space<vmem>>, vector<64x128xbf16>
    tpu.vector_store %arg18[%c0_60, %c256], %83 {strides = array<i32>} : memref<64x1152xbf16, #tpu.memory_space<vmem>>, vector<64x128xbf16>,
    %c15 = arith.constant 15 : index
    %c0_61 = arith.constant 0 : index
    %85 = vector.load %arg17[%c15, %c0_61] : memref<96x128xf32, #tpu.memory_space<vmem>>, vector<64x128xf32>
    %c1_i32_62 = arith.constant 1 : i32
    %86 = vector.broadcast %c1_i32_62 : i32 to vector<64x1xi32>
    %87 = arith.cmpi sge, %51, %86 : vector<64x1xi32>
    %cst_63 = arith.constant 0.000000e+00 : f32
    %88 = vector.shape_cast %87 : vector<64x1xi1> to vector<64x1xi1>
    %89 = vector.broadcast %88 : vector<64x1xi1> to vector<64x128xi1>
    %90 = vector.broadcast %cst_63 : f32 to vector<64x128xf32>
    %91 = arith.select %89, %85, %90 : vector<64x128xi1>, vector<64x128xf32>
    %92 = arith.truncf %91 : vector<64x128xf32> to vector<64x128xbf16>
    %c0_64 = arith.constant 0 : index
    %c384 = arith.constant 384 : index
    %93 = vector.load %arg18[%c0_64, %c384] : memref<64x1152xbf16, #tpu.memory_space<vmem>>, vector<64x128xbf16>
    tpu.vector_store %arg18[%c0_64, %c384], %92 {strides = array<i32>} : memref<64x1152xbf16, #tpu.memory_space<vmem>>, vector<64x128xbf16>,
    %c16_65 = arith.constant 16 : index
    %c0_66 = arith.constant 0 : index
    %94 = vector.load %arg17[%c16_65, %c0_66] : memref<96x128xf32, #tpu.memory_space<vmem>>, vector<64x128xf32>
    %95 = arith.truncf %94 : vector<64x128xf32> to vector<64x128xbf16>
    %c0_67 = arith.constant 0 : index
    %c512 = arith.constant 512 : index
    %96 = vector.load %arg18[%c0_67, %c512] : memref<64x1152xbf16, #tpu.memory_space<vmem>>, vector<64x128xbf16>
    tpu.vector_store %arg18[%c0_67, %c512], %95 {strides = array<i32>} : memref<64x1152xbf16, #tpu.memory_space<vmem>>, vector<64x128xbf16>,
    %c17 = arith.constant 17 : index
    %c0_68 = arith.constant 0 : index
    %97 = vector.load %arg17[%c17, %c0_68] : memref<96x128xf32, #tpu.memory_space<vmem>>, vector<64x128xf32>
    %c7_i32_69 = arith.constant 7 : i32
    %98 = vector.broadcast %c7_i32_69 : i32 to vector<64x1xi32>
    %99 = arith.cmpi slt, %51, %98 : vector<64x1xi32>
    %cst_70 = arith.constant 0.000000e+00 : f32
    %100 = vector.shape_cast %99 : vector<64x1xi1> to vector<64x1xi1>
    %101 = vector.broadcast %100 : vector<64x1xi1> to vector<64x128xi1>
    %102 = vector.broadcast %cst_70 : f32 to vector<64x128xf32>
    %103 = arith.select %101, %97, %102 : vector<64x128xi1>, vector<64x128xf32>
    %104 = arith.truncf %103 : vector<64x128xf32> to vector<64x128xbf16>
    %c0_71 = arith.constant 0 : index
    %c640 = arith.constant 640 : index
    %105 = vector.load %arg18[%c0_71, %c640] : memref<64x1152xbf16, #tpu.memory_space<vmem>>, vector<64x128xbf16>
    tpu.vector_store %arg18[%c0_71, %c640], %104 {strides = array<i32>} : memref<64x1152xbf16, #tpu.memory_space<vmem>>, vector<64x128xbf16>,
    %c23 = arith.constant 23 : index
    %c0_72 = arith.constant 0 : index
    %106 = vector.load %arg17[%c23, %c0_72] : memref<96x128xf32, #tpu.memory_space<vmem>>, vector<64x128xf32>
    %c7_i32_73 = arith.constant 7 : i32
    %107 = vector.broadcast %c7_i32_73 : i32 to vector<64x1xi32>
    %108 = arith.cmpi slt, %49, %107 : vector<64x1xi32>
    %c1_i32_74 = arith.constant 1 : i32
    %109 = vector.broadcast %c1_i32_74 : i32 to vector<64x1xi32>
    %110 = arith.cmpi sge, %51, %109 : vector<64x1xi32>
    %111 = arith.andi %108, %110 : vector<64x1xi1>
    %cst_75 = arith.constant 0.000000e+00 : f32
    %112 = vector.shape_cast %111 : vector<64x1xi1> to vector<64x1xi1>
    %113 = vector.broadcast %112 : vector<64x1xi1> to vector<64x128xi1>
    %114 = vector.broadcast %cst_75 : f32 to vector<64x128xf32>
    %115 = arith.select %113, %106, %114 : vector<64x128xi1>, vector<64x128xf32>
    %116 = arith.truncf %115 : vector<64x128xf32> to vector<64x128xbf16>
    %c0_76 = arith.constant 0 : index
    %c768 = arith.constant 768 : index
    %117 = vector.load %arg18[%c0_76, %c768] : memref<64x1152xbf16, #tpu.memory_space<vmem>>, vector<64x128xbf16>
    tpu.vector_store %arg18[%c0_76, %c768], %116 {strides = array<i32>} : memref<64x1152xbf16, #tpu.memory_space<vmem>>, vector<64x128xbf16>,
    %c24_77 = arith.constant 24 : index
    %c0_78 = arith.constant 0 : index
    %118 = vector.load %arg17[%c24_77, %c0_78] : memref<96x128xf32, #tpu.memory_space<vmem>>, vector<64x128xf32>
    %c7_i32_79 = arith.constant 7 : i32
    %119 = vector.broadcast %c7_i32_79 : i32 to vector<64x1xi32>
    %120 = arith.cmpi slt, %49, %119 : vector<64x1xi32>
    %cst_80 = arith.constant 0.000000e+00 : f32
    %121 = vector.shape_cast %120 : vector<64x1xi1> to vector<64x1xi1>
    %122 = vector.broadcast %121 : vector<64x1xi1> to vector<64x128xi1>
    %123 = vector.broadcast %cst_80 : f32 to vector<64x128xf32>
    %124 = arith.select %122, %118, %123 : vector<64x128xi1>, vector<64x128xf32>
    %125 = arith.truncf %124 : vector<64x128xf32> to vector<64x128xbf16>
    %c0_81 = arith.constant 0 : index
    %c896 = arith.constant 896 : index
    %126 = vector.load %arg18[%c0_81, %c896] : memref<64x1152xbf16, #tpu.memory_space<vmem>>, vector<64x128xbf16>
    tpu.vector_store %arg18[%c0_81, %c896], %125 {strides = array<i32>} : memref<64x1152xbf16, #tpu.memory_space<vmem>>, vector<64x128xbf16>,
    %c25 = arith.constant 25 : index
    %c0_82 = arith.constant 0 : index
    %127 = vector.load %arg17[%c25, %c0_82] : memref<96x128xf32, #tpu.memory_space<vmem>>, vector<64x128xf32>
    %c7_i32_83 = arith.constant 7 : i32
    %128 = vector.broadcast %c7_i32_83 : i32 to vector<64x1xi32>
    %129 = arith.cmpi slt, %49, %128 : vector<64x1xi32>
    %c7_i32_84 = arith.constant 7 : i32
    %130 = vector.broadcast %c7_i32_84 : i32 to vector<64x1xi32>
    %131 = arith.cmpi slt, %51, %130 : vector<64x1xi32>
    %132 = arith.andi %129, %131 : vector<64x1xi1>
    %cst_85 = arith.constant 0.000000e+00 : f32
    %133 = vector.shape_cast %132 : vector<64x1xi1> to vector<64x1xi1>
    %134 = vector.broadcast %133 : vector<64x1xi1> to vector<64x128xi1>
    %135 = vector.broadcast %cst_85 : f32 to vector<64x128xf32>
    %136 = arith.select %134, %127, %135 : vector<64x128xi1>, vector<64x128xf32>
    %137 = arith.truncf %136 : vector<64x128xf32> to vector<64x128xbf16>
    %c0_86 = arith.constant 0 : index
    %c1024 = arith.constant 1024 : index
    %138 = vector.load %arg18[%c0_86, %c1024] : memref<64x1152xbf16, #tpu.memory_space<vmem>>, vector<64x128xbf16>
    tpu.vector_store %arg18[%c0_86, %c1024], %137 {strides = array<i32>} : memref<64x1152xbf16, #tpu.memory_space<vmem>>, vector<64x128xbf16>,
    %c0_87 = arith.constant 0 : index
    %c0_88 = arith.constant 0 : index
    %139 = vector.load %arg18[%c0_87, %c0_88] : memref<64x1152xbf16, #tpu.memory_space<vmem>>, vector<64x1152xbf16>
    %c0_89 = arith.constant 0 : index
    %c0_90 = arith.constant 0 : index
    %140 = vector.load %arg4[%c0_89, %c0_90] : memref<1152x128xbf16, #tpu.memory_space<vmem>>, vector<1152x128xbf16>
    %cst_91 = arith.constant dense<0.000000e+00> : vector<64x128xf32>
    %141 = tpu.matmul %139, %140, %cst_91 {dimension_numbers = #tpu.dot_dimension_numbers<[1], [0], [0], [1], [0, 0, 1, 1], [], []>} : vector<64x1152xbf16>, vector<1152x128xbf16>, vector<64x128xf32> -> vector<64x128xf32>
    %c0_92 = arith.constant 0 : index
    %c0_93 = arith.constant 0 : index
    %142 = vector.load %arg5[%c0_92, %c0_93] : memref<1x128xf32, #tpu.memory_space<vmem>>, vector<1x128xf32>
    %143 = vector.broadcast %142 : vector<1x128xf32> to vector<64x128xf32>
    %144 = arith.addf %141, %143 : vector<64x128xf32>
    %cst_94 = arith.constant 0.000000e+00 : f32
    %145 = vector.broadcast %cst_94 : f32 to vector<64x128xf32>
    %146 = arith.maximumf %144, %145 : vector<64x128xf32>
    %c0_95 = arith.constant 0 : index
    %c0_96 = arith.constant 0 : index
    %147 = vector.load %arg19[%c0_95, %c0_96] : memref<64x128xf32, #tpu.memory_space<vmem>>, vector<64x128xf32>
    tpu.vector_store %arg19[%c0_95, %c0_96], %146 {strides = array<i32>} : memref<64x128xf32, #tpu.memory_space<vmem>>, vector<64x128xf32>,
    %c0_97 = arith.constant 0 : index
    %c0_98 = arith.constant 0 : index
    %148 = tpu.strided_load %arg19[%c0_97, %c0_98] {strides = array<i32: 2, 1>} : memref<64x128xf32, #tpu.memory_space<vmem>>, vector<32x128xf32>
    %c1_99 = arith.constant 1 : index
    %c0_100 = arith.constant 0 : index
    %149 = tpu.strided_load %arg19[%c1_99, %c0_100] {strides = array<i32: 2, 1>} : memref<64x128xf32, #tpu.memory_space<vmem>>, vector<32x128xf32>
    %150 = arith.maximumf %148, %149 : vector<32x128xf32>
    %c0_101 = arith.constant 0 : index
    %c0_102 = arith.constant 0 : index
    %151 = vector.load %arg20[%c0_101, %c0_102] : memref<32x128xf32, #tpu.memory_space<vmem>>, vector<32x128xf32>
    tpu.vector_store %arg20[%c0_101, %c0_102], %150 {strides = array<i32>} : memref<32x128xf32, #tpu.memory_space<vmem>>, vector<32x128xf32>,
    %c0_103 = arith.constant 0 : index
    %c0_104 = arith.constant 0 : index
    %152 = vector.load %arg20[%c0_103, %c0_104] : memref<32x128xf32, #tpu.memory_space<vmem>>, vector<4x128xf32>
    %c4 = arith.constant 4 : index
    %c0_105 = arith.constant 0 : index
    %153 = vector.load %arg20[%c4, %c0_105] : memref<32x128xf32, #tpu.memory_space<vmem>>, vector<4x128xf32>
    %154 = arith.maximumf %152, %153 : vector<4x128xf32>
    %c8_106 = arith.constant 8 : index
    %c0_107 = arith.constant 0 : index
    %155 = vector.load %arg21[%c8_106, %c0_107] : memref<32x128xf32, #tpu.memory_space<vmem>>, vector<4x128xf32>
    tpu.vector_store %arg21[%c8_106, %c0_107], %154 {strides = array<i32>} : memref<32x128xf32, #tpu.memory_space<vmem>>, vector<4x128xf32>,
    %c8_108 = arith.constant 8 : index
    %c0_109 = arith.constant 0 : index
    %156 = vector.load %arg20[%c8_108, %c0_109] : memref<32x128xf32, #tpu.memory_space<vmem>>, vector<4x128xf32>
    %c12 = arith.constant 12 : index
    %c0_110 = arith.constant 0 : index
    %157 = vector.load %arg20[%c12, %c0_110] : memref<32x128xf32, #tpu.memory_space<vmem>>, vector<4x128xf32>
    %158 = arith.maximumf %156, %157 : vector<4x128xf32>
    %c12_111 = arith.constant 12 : index
    %c0_112 = arith.constant 0 : index
    %159 = vector.load %arg21[%c12_111, %c0_112] : memref<32x128xf32, #tpu.memory_space<vmem>>, vector<4x128xf32>
    tpu.vector_store %arg21[%c12_111, %c0_112], %158 {strides = array<i32>} : memref<32x128xf32, #tpu.memory_space<vmem>>, vector<4x128xf32>,
    %c16_113 = arith.constant 16 : index
    %c0_114 = arith.constant 0 : index
    %160 = vector.load %arg20[%c16_113, %c0_114] : memref<32x128xf32, #tpu.memory_space<vmem>>, vector<4x128xf32>
    %c20 = arith.constant 20 : index
    %c0_115 = arith.constant 0 : index
    %161 = vector.load %arg20[%c20, %c0_115] : memref<32x128xf32, #tpu.memory_space<vmem>>, vector<4x128xf32>
    %162 = arith.maximumf %160, %161 : vector<4x128xf32>
    %c16_116 = arith.constant 16 : index
    %c0_117 = arith.constant 0 : index
    %163 = vector.load %arg21[%c16_116, %c0_117] : memref<32x128xf32, #tpu.memory_space<vmem>>, vector<4x128xf32>
    tpu.vector_store %arg21[%c16_116, %c0_117], %162 {strides = array<i32>} : memref<32x128xf32, #tpu.memory_space<vmem>>, vector<4x128xf32>,
    %c24_118 = arith.constant 24 : index
    %c0_119 = arith.constant 0 : index
    %164 = vector.load %arg20[%c24_118, %c0_119] : memref<32x128xf32, #tpu.memory_space<vmem>>, vector<4x128xf32>
    %c28 = arith.constant 28 : index
    %c0_120 = arith.constant 0 : index
    %165 = vector.load %arg20[%c28, %c0_120] : memref<32x128xf32, #tpu.memory_space<vmem>>, vector<4x128xf32>
    %166 = arith.maximumf %164, %165 : vector<4x128xf32>
    %c20_121 = arith.constant 20 : index
    %c0_122 = arith.constant 0 : index
    %167 = vector.load %arg21[%c20_121, %c0_122] : memref<32x128xf32, #tpu.memory_space<vmem>>, vector<4x128xf32>
    tpu.vector_store %arg21[%c20_121, %c0_122], %166 {strides = array<i32>} : memref<32x128xf32, #tpu.memory_space<vmem>>, vector<4x128xf32>,
    %168 = tpu.iota {dimensions = array<i32: 0>} : vector<16x1xi32>
    %c15_i32 = arith.constant 15 : i32
    %169 = vector.broadcast %c15_i32 : i32 to vector<16x1xi32>
    %170 = arith.andi %168, %169 : vector<16x1xi32>
    %c2_i32 = arith.constant 2 : i32
    %171 = vector.broadcast %c2_i32 : i32 to vector<16x1xi32>
    %172 = arith.shrsi %170, %171 : vector<16x1xi32>
    %c3_i32_123 = arith.constant 3 : i32
    %173 = vector.broadcast %c3_i32_123 : i32 to vector<16x1xi32>
    %174 = arith.andi %170, %173 : vector<16x1xi32>
    %c3 = arith.constant 3 : index
    %c0_124 = arith.constant 0 : index
    %175 = vector.load %arg21[%c3, %c0_124] : memref<32x128xf32, #tpu.memory_space<vmem>>, vector<16x128xf32>
    %c1_i32_125 = arith.constant 1 : i32
    %176 = vector.broadcast %c1_i32_125 : i32 to vector<16x1xi32>
    %177 = arith.cmpi sge, %172, %176 : vector<16x1xi32>
    %c1_i32_126 = arith.constant 1 : i32
    %178 = vector.broadcast %c1_i32_126 : i32 to vector<16x1xi32>
    %179 = arith.cmpi sge, %174, %178 : vector<16x1xi32>
    %180 = arith.andi %177, %179 : vector<16x1xi1>
    %cst_127 = arith.constant 0.000000e+00 : f32
    %181 = vector.shape_cast %180 : vector<16x1xi1> to vector<16x1xi1>
    %182 = vector.broadcast %181 : vector<16x1xi1> to vector<16x128xi1>
    %183 = vector.broadcast %cst_127 : f32 to vector<16x128xf32>
    %184 = arith.select %182, %175, %183 : vector<16x128xi1>, vector<16x128xf32>
    %185 = arith.truncf %184 : vector<16x128xf32> to vector<16x128xbf16>
    %c0_128 = arith.constant 0 : index
    %c0_129 = arith.constant 0 : index
    %186 = vector.load %arg22[%c0_128, %c0_129] : memref<16x1152xbf16, #tpu.memory_space<vmem>>, vector<16x128xbf16>
    tpu.vector_store %arg22[%c0_128, %c0_129], %185 {strides = array<i32>} : memref<16x1152xbf16, #tpu.memory_space<vmem>>, vector<16x128xbf16>,
    %c4_130 = arith.constant 4 : index
    %c0_131 = arith.constant 0 : index
    %187 = vector.load %arg21[%c4_130, %c0_131] : memref<32x128xf32, #tpu.memory_space<vmem>>, vector<16x128xf32>
    %c1_i32_132 = arith.constant 1 : i32
    %188 = vector.broadcast %c1_i32_132 : i32 to vector<16x1xi32>
    %189 = arith.cmpi sge, %172, %188 : vector<16x1xi32>
    %cst_133 = arith.constant 0.000000e+00 : f32
    %190 = vector.shape_cast %189 : vector<16x1xi1> to vector<16x1xi1>
    %191 = vector.broadcast %190 : vector<16x1xi1> to vector<16x128xi1>
    %192 = vector.broadcast %cst_133 : f32 to vector<16x128xf32>
    %193 = arith.select %191, %187, %192 : vector<16x128xi1>, vector<16x128xf32>
    %194 = arith.truncf %193 : vector<16x128xf32> to vector<16x128xbf16>
    %c0_134 = arith.constant 0 : index
    %c128_135 = arith.constant 128 : index
    %195 = vector.load %arg22[%c0_134, %c128_135] : memref<16x1152xbf16, #tpu.memory_space<vmem>>, vector<16x128xbf16>
    tpu.vector_store %arg22[%c0_134, %c128_135], %194 {strides = array<i32>} : memref<16x1152xbf16, #tpu.memory_space<vmem>>, vector<16x128xbf16>,
    %c5 = arith.constant 5 : index
    %c0_136 = arith.constant 0 : index
    %196 = vector.load %arg21[%c5, %c0_136] : memref<32x128xf32, #tpu.memory_space<vmem>>, vector<16x128xf32>
    %c1_i32_137 = arith.constant 1 : i32
    %197 = vector.broadcast %c1_i32_137 : i32 to vector<16x1xi32>
    %198 = arith.cmpi sge, %172, %197 : vector<16x1xi32>
    %c3_i32_138 = arith.constant 3 : i32
    %199 = vector.broadcast %c3_i32_138 : i32 to vector<16x1xi32>
    %200 = arith.cmpi slt, %174, %199 : vector<16x1xi32>
    %201 = arith.andi %198, %200 : vector<16x1xi1>
    %cst_139 = arith.constant 0.000000e+00 : f32
    %202 = vector.shape_cast %201 : vector<16x1xi1> to vector<16x1xi1>
    %203 = vector.broadcast %202 : vector<16x1xi1> to vector<16x128xi1>
    %204 = vector.broadcast %cst_139 : f32 to vector<16x128xf32>
    %205 = arith.select %203, %196, %204 : vector<16x128xi1>, vector<16x128xf32>
    %206 = arith.truncf %205 : vector<16x128xf32> to vector<16x128xbf16>
    %c0_140 = arith.constant 0 : index
    %c256_141 = arith.constant 256 : index
    %207 = vector.load %arg22[%c0_140, %c256_141] : memref<16x1152xbf16, #tpu.memory_space<vmem>>, vector<16x128xbf16>
    tpu.vector_store %arg22[%c0_140, %c256_141], %206 {strides = array<i32>} : memref<16x1152xbf16, #tpu.memory_space<vmem>>, vector<16x128xbf16>,
    %c7_142 = arith.constant 7 : index
    %c0_143 = arith.constant 0 : index
    %208 = vector.load %arg21[%c7_142, %c0_143] : memref<32x128xf32, #tpu.memory_space<vmem>>, vector<16x128xf32>
    %c1_i32_144 = arith.constant 1 : i32
    %209 = vector.broadcast %c1_i32_144 : i32 to vector<16x1xi32>
    %210 = arith.cmpi sge, %174, %209 : vector<16x1xi32>
    %cst_145 = arith.constant 0.000000e+00 : f32
    %211 = vector.shape_cast %210 : vector<16x1xi1> to vector<16x1xi1>
    %212 = vector.broadcast %211 : vector<16x1xi1> to vector<16x128xi1>
    %213 = vector.broadcast %cst_145 : f32 to vector<16x128xf32>
    %214 = arith.select %212, %208, %213 : vector<16x128xi1>, vector<16x128xf32>
    %215 = arith.truncf %214 : vector<16x128xf32> to vector<16x128xbf16>
    %c0_146 = arith.constant 0 : index
    %c384_147 = arith.constant 384 : index
    %216 = vector.load %arg22[%c0_146, %c384_147] : memref<16x1152xbf16, #tpu.memory_space<vmem>>, vector<16x128xbf16>
    tpu.vector_store %arg22[%c0_146, %c384_147], %215 {strides = array<i32>} : memref<16x1152xbf16, #tpu.memory_space<vmem>>, vector<16x128xbf16>,
    %c8_148 = arith.constant 8 : index
    %c0_149 = arith.constant 0 : index
    %217 = vector.load %arg21[%c8_148, %c0_149] : memref<32x128xf32, #tpu.memory_space<vmem>>, vector<16x128xf32>
    %218 = arith.truncf %217 : vector<16x128xf32> to vector<16x128xbf16>
    %c0_150 = arith.constant 0 : index
    %c512_151 = arith.constant 512 : index
    %219 = vector.load %arg22[%c0_150, %c512_151] : memref<16x1152xbf16, #tpu.memory_space<vmem>>, vector<16x128xbf16>
    tpu.vector_store %arg22[%c0_150, %c512_151], %218 {strides = array<i32>} : memref<16x1152xbf16, #tpu.memory_space<vmem>>, vector<16x128xbf16>,
    %c9_152 = arith.constant 9 : index
    %c0_153 = arith.constant 0 : index
    %220 = vector.load %arg21[%c9_152, %c0_153] : memref<32x128xf32, #tpu.memory_space<vmem>>, vector<16x128xf32>
    %c3_i32_154 = arith.constant 3 : i32
    %221 = vector.broadcast %c3_i32_154 : i32 to vector<16x1xi32>
    %222 = arith.cmpi slt, %174, %221 : vector<16x1xi32>
    %cst_155 = arith.constant 0.000000e+00 : f32
    %223 = vector.shape_cast %222 : vector<16x1xi1> to vector<16x1xi1>
    %224 = vector.broadcast %223 : vector<16x1xi1> to vector<16x128xi1>
    %225 = vector.broadcast %cst_155 : f32 to vector<16x128xf32>
    %226 = arith.select %224, %220, %225 : vector<16x128xi1>, vector<16x128xf32>
    %227 = arith.truncf %226 : vector<16x128xf32> to vector<16x128xbf16>
    %c0_156 = arith.constant 0 : index
    %c640_157 = arith.constant 640 : index
    %228 = vector.load %arg22[%c0_156, %c640_157] : memref<16x1152xbf16, #tpu.memory_space<vmem>>, vector<16x128xbf16>
    tpu.vector_store %arg22[%c0_156, %c640_157], %227 {strides = array<i32>} : memref<16x1152xbf16, #tpu.memory_space<vmem>>, vector<16x128xbf16>,
    %c11 = arith.constant 11 : index
    %c0_158 = arith.constant 0 : index
    %229 = vector.load %arg21[%c11, %c0_158] : memref<32x128xf32, #tpu.memory_space<vmem>>, vector<16x128xf32>
    %c3_i32_159 = arith.constant 3 : i32
    %230 = vector.broadcast %c3_i32_159 : i32 to vector<16x1xi32>
    %231 = arith.cmpi slt, %172, %230 : vector<16x1xi32>
    %c1_i32_160 = arith.constant 1 : i32
    %232 = vector.broadcast %c1_i32_160 : i32 to vector<16x1xi32>
    %233 = arith.cmpi sge, %174, %232 : vector<16x1xi32>
    %234 = arith.andi %231, %233 : vector<16x1xi1>
    %cst_161 = arith.constant 0.000000e+00 : f32
    %235 = vector.shape_cast %234 : vector<16x1xi1> to vector<16x1xi1>
    %236 = vector.broadcast %235 : vector<16x1xi1> to vector<16x128xi1>
    %237 = vector.broadcast %cst_161 : f32 to vector<16x128xf32>
    %238 = arith.select %236, %229, %237 : vector<16x128xi1>, vector<16x128xf32>
    %239 = arith.truncf %238 : vector<16x128xf32> to vector<16x128xbf16>
    %c0_162 = arith.constant 0 : index
    %c768_163 = arith.constant 768 : index
    %240 = vector.load %arg22[%c0_162, %c768_163] : memref<16x1152xbf16, #tpu.memory_space<vmem>>, vector<16x128xbf16>
    tpu.vector_store %arg22[%c0_162, %c768_163], %239 {strides = array<i32>} : memref<16x1152xbf16, #tpu.memory_space<vmem>>, vector<16x128xbf16>,
    %c12_164 = arith.constant 12 : index
    %c0_165 = arith.constant 0 : index
    %241 = vector.load %arg21[%c12_164, %c0_165] : memref<32x128xf32, #tpu.memory_space<vmem>>, vector<16x128xf32>
    %c3_i32_166 = arith.constant 3 : i32
    %242 = vector.broadcast %c3_i32_166 : i32 to vector<16x1xi32>
    %243 = arith.cmpi slt, %172, %242 : vector<16x1xi32>
    %cst_167 = arith.constant 0.000000e+00 : f32
    %244 = vector.shape_cast %243 : vector<16x1xi1> to vector<16x1xi1>
    %245 = vector.broadcast %244 : vector<16x1xi1> to vector<16x128xi1>
    %246 = vector.broadcast %cst_167 : f32 to vector<16x128xf32>
    %247 = arith.select %245, %241, %246 : vector<16x128xi1>, vector<16x128xf32>
    %248 = arith.truncf %247 : vector<16x128xf32> to vector<16x128xbf16>
    %c0_168 = arith.constant 0 : index
    %c896_169 = arith.constant 896 : index
    %249 = vector.load %arg22[%c0_168, %c896_169] : memref<16x1152xbf16, #tpu.memory_space<vmem>>, vector<16x128xbf16>
    tpu.vector_store %arg22[%c0_168, %c896_169], %248 {strides = array<i32>} : memref<16x1152xbf16, #tpu.memory_space<vmem>>, vector<16x128xbf16>,
    %c13 = arith.constant 13 : index
    %c0_170 = arith.constant 0 : index
    %250 = vector.load %arg21[%c13, %c0_170] : memref<32x128xf32, #tpu.memory_space<vmem>>, vector<16x128xf32>
    %c3_i32_171 = arith.constant 3 : i32
    %251 = vector.broadcast %c3_i32_171 : i32 to vector<16x1xi32>
    %252 = arith.cmpi slt, %172, %251 : vector<16x1xi32>
    %c3_i32_172 = arith.constant 3 : i32
    %253 = vector.broadcast %c3_i32_172 : i32 to vector<16x1xi32>
    %254 = arith.cmpi slt, %174, %253 : vector<16x1xi32>
    %255 = arith.andi %252, %254 : vector<16x1xi1>
    %cst_173 = arith.constant 0.000000e+00 : f32
    %256 = vector.shape_cast %255 : vector<16x1xi1> to vector<16x1xi1>
    %257 = vector.broadcast %256 : vector<16x1xi1> to vector<16x128xi1>
    %258 = vector.broadcast %cst_173 : f32 to vector<16x128xf32>
    %259 = arith.select %257, %250, %258 : vector<16x128xi1>, vector<16x128xf32>
    %260 = arith.truncf %259 : vector<16x128xf32> to vector<16x128xbf16>
    %c0_174 = arith.constant 0 : index
    %c1024_175 = arith.constant 1024 : index
    %261 = vector.load %arg22[%c0_174, %c1024_175] : memref<16x1152xbf16, #tpu.memory_space<vmem>>, vector<16x128xbf16>
    tpu.vector_store %arg22[%c0_174, %c1024_175], %260 {strides = array<i32>} : memref<16x1152xbf16, #tpu.memory_space<vmem>>, vector<16x128xbf16>,
    %c0_176 = arith.constant 0 : index
    %c0_177 = arith.constant 0 : index
    %262 = vector.load %arg22[%c0_176, %c0_177] : memref<16x1152xbf16, #tpu.memory_space<vmem>>, vector<16x1152xbf16>
    %c0_178 = arith.constant 0 : index
    %c0_179 = arith.constant 0 : index
    %263 = vector.load %arg6[%c0_178, %c0_179] : memref<1152x512xbf16, #tpu.memory_space<vmem>>, vector<1152x512xbf16>
    %cst_180 = arith.constant dense<0.000000e+00> : vector<16x512xf32>
    %264 = tpu.matmul %262, %263, %cst_180 {dimension_numbers = #tpu.dot_dimension_numbers<[1], [0], [0], [1], [0, 0, 1, 1], [], []>} : vector<16x1152xbf16>, vector<1152x512xbf16>, vector<16x512xf32> -> vector<16x512xf32>
    %c0_181 = arith.constant 0 : index
    %c0_182 = arith.constant 0 : index
    %265 = vector.load %arg7[%c0_181, %c0_182] : memref<1x512xf32, #tpu.memory_space<vmem>>, vector<1x512xf32>
    %266 = vector.broadcast %265 : vector<1x512xf32> to vector<16x512xf32>
    %267 = arith.addf %264, %266 : vector<16x512xf32>
    %cst_183 = arith.constant 0.000000e+00 : f32
    %268 = vector.broadcast %cst_183 : f32 to vector<16x512xf32>
    %269 = arith.maximumf %267, %268 : vector<16x512xf32>
    %cst_184 = arith.constant dense<0.000000e+00> : vector<512xf32>
    %270 = vector.multi_reduction <add>, %269, %cst_184 [0] : vector<16x512xf32> to vector<512xf32>
    %271 = vector.shape_cast %270 : vector<512xf32> to vector<1x512xf32>
    %cst_185 = arith.constant 6.250000e-02 : f32
    %272 = vector.broadcast %cst_185 : f32 to vector<1x512xf32>
    %273 = arith.mulf %271, %272 : vector<1x512xf32>
    %cst_186 = arith.constant 0.000000e+00 : f32
    %274 = vector.broadcast %cst_186 : f32 to vector<7x512xf32>
    %275 = tpu.concatenate %273, %274 in 0 : vector<1x512xf32>, vector<7x512xf32> -> vector<8x512xf32>
    %276 = arith.truncf %275 : vector<8x512xf32> to vector<8x512xbf16>
    %c0_187 = arith.constant 0 : index
    %c0_188 = arith.constant 0 : index
    %277 = vector.load %arg8[%c0_187, %c0_188] : memref<512x256xbf16, #tpu.memory_space<vmem>>, vector<512x256xbf16>
    %cst_189 = arith.constant dense<0.000000e+00> : vector<8x256xf32>
    %278 = tpu.matmul %276, %277, %cst_189 {dimension_numbers = #tpu.dot_dimension_numbers<[1], [0], [0], [1], [0, 0, 1, 1], [], []>} : vector<8x512xbf16>, vector<512x256xbf16>, vector<8x256xf32> -> vector<8x256xf32>
    %c0_190 = arith.constant 0 : index
    %c0_191 = arith.constant 0 : index
    %279 = vector.load %arg9[%c0_190, %c0_191] : memref<1x256xf32, #tpu.memory_space<vmem>>, vector<1x256xf32>
    %280 = vector.broadcast %279 : vector<1x256xf32> to vector<8x256xf32>
    %281 = arith.addf %278, %280 : vector<8x256xf32>
    %cst_192 = arith.constant 0.000000e+00 : f32
    %282 = vector.broadcast %cst_192 : f32 to vector<8x256xf32>
    %283 = arith.maximumf %281, %282 : vector<8x256xf32>
    %284 = arith.truncf %283 : vector<8x256xf32> to vector<8x256xbf16>
    %c0_193 = arith.constant 0 : index
    %c0_194 = arith.constant 0 : index
    %285 = vector.load %arg10[%c0_193, %c0_194] : memref<256x256xbf16, #tpu.memory_space<vmem>>, vector<256x256xbf16>
    %cst_195 = arith.constant dense<0.000000e+00> : vector<8x256xf32>
    %286 = tpu.matmul %284, %285, %cst_195 {dimension_numbers = #tpu.dot_dimension_numbers<[1], [0], [0], [1], [0, 0, 1, 1], [], []>} : vector<8x256xbf16>, vector<256x256xbf16>, vector<8x256xf32> -> vector<8x256xf32>
    %c0_196 = arith.constant 0 : index
    %c0_197 = arith.constant 0 : index
    %287 = vector.load %arg11[%c0_196, %c0_197] : memref<1x256xf32, #tpu.memory_space<vmem>>, vector<1x256xf32>
    %288 = vector.broadcast %287 : vector<1x256xf32> to vector<8x256xf32>
    %289 = arith.addf %286, %288 : vector<8x256xf32>
    %cst_198 = arith.constant 0.000000e+00 : f32
    %290 = vector.broadcast %cst_198 : f32 to vector<8x256xf32>
    %291 = arith.maximumf %289, %290 : vector<8x256xf32>
    %292 = arith.truncf %291 : vector<8x256xf32> to vector<8x256xbf16>
    %c0_199 = arith.constant 0 : index
    %c0_200 = arith.constant 0 : index
    %293 = vector.load %arg12[%c0_199, %c0_200] : memref<256x128xbf16, #tpu.memory_space<vmem>>, vector<256x128xbf16>
    %cst_201 = arith.constant dense<0.000000e+00> : vector<8x128xf32>
    %294 = tpu.matmul %292, %293, %cst_201 {dimension_numbers = #tpu.dot_dimension_numbers<[1], [0], [0], [1], [0, 0, 1, 1], [], []>} : vector<8x256xbf16>, vector<256x128xbf16>, vector<8x128xf32> -> vector<8x128xf32>
    %c0_202 = arith.constant 0 : index
    %c0_203 = arith.constant 0 : index
    %295 = vector.load %arg13[%c0_202, %c0_203] : memref<1x128xf32, #tpu.memory_space<vmem>>, vector<1x128xf32>
    %296 = vector.broadcast %295 : vector<1x128xf32> to vector<8x128xf32>
    %297 = arith.addf %294, %296 : vector<8x128xf32>
    %298 = vector.extract_strided_slice %297 {offsets = [0, 0], sizes = [1, 128], strides = [1, 1]} : vector<8x128xf32> to vector<1x128xf32>
    %c0_204 = arith.constant 0 : index
    %c0_205 = arith.constant 0 : index
    %c0_206 = arith.constant 0 : index
    %299 = vector.load %arg14[%c0_204, %c0_205, %c0_206] : memref<1x1x128xf32, #tpu.memory_space<vmem>>, vector<1x1x128xf32>
    %300 = vector.shape_cast %299 : vector<1x1x128xf32> to vector<1x128xf32>
    %301 = vector.shape_cast %298 : vector<1x128xf32> to vector<1x1x128xf32>
    tpu.vector_store %arg14[%c0_204, %c0_205, %c0_206], %301 {strides = array<i32>} : memref<1x1x128xf32, #tpu.memory_space<vmem>>, vector<1x1x128xf32>,
    return
  }
  func.func @transform_0(%arg0: i32) -> (i32, i32) {
    %c0_i32 = arith.constant 0 : i32
    %c0_i32_0 = arith.constant 0 : i32
    return %arg0, %c0_i32 : i32, i32
  }
  func.func @transform_1(%arg0: i32) -> (i32, i32) {
    %c0_i32 = arith.constant 0 : i32
    %c0_i32_0 = arith.constant 0 : i32
    %c0_i32_1 = arith.constant 0 : i32
    return %c0_i32, %c0_i32_0 : i32, i32
  }
  func.func @transform_2(%arg0: i32) -> (i32, i32) {
    %c0_i32 = arith.constant 0 : i32
    %c0_i32_0 = arith.constant 0 : i32
    %c0_i32_1 = arith.constant 0 : i32
    return %c0_i32, %c0_i32_0 : i32, i32
  }
  func.func @transform_3(%arg0: i32) -> (i32, i32) {
    %c0_i32 = arith.constant 0 : i32
    %c0_i32_0 = arith.constant 0 : i32
    %c0_i32_1 = arith.constant 0 : i32
    return %c0_i32, %c0_i32_0 : i32, i32
  }
  func.func @transform_4(%arg0: i32) -> (i32, i32) {
    %c0_i32 = arith.constant 0 : i32
    %c0_i32_0 = arith.constant 0 : i32
    %c0_i32_1 = arith.constant 0 : i32
    return %c0_i32, %c0_i32_0 : i32, i32
  }
  func.func @transform_5(%arg0: i32) -> (i32, i32) {
    %c0_i32 = arith.constant 0 : i32
    %c0_i32_0 = arith.constant 0 : i32
    %c0_i32_1 = arith.constant 0 : i32
    return %c0_i32, %c0_i32_0 : i32, i32
  }
  func.func @transform_6(%arg0: i32) -> (i32, i32) {
    %c0_i32 = arith.constant 0 : i32
    %c0_i32_0 = arith.constant 0 : i32
    %c0_i32_1 = arith.constant 0 : i32
    return %c0_i32, %c0_i32_0 : i32, i32
  }
  func.func @transform_7(%arg0: i32) -> (i32, i32) {
    %c0_i32 = arith.constant 0 : i32
    %c0_i32_0 = arith.constant 0 : i32
    %c0_i32_1 = arith.constant 0 : i32
    return %c0_i32, %c0_i32_0 : i32, i32
  }
  func.func @transform_8(%arg0: i32) -> (i32, i32) {
    %c0_i32 = arith.constant 0 : i32
    %c0_i32_0 = arith.constant 0 : i32
    %c0_i32_1 = arith.constant 0 : i32
    return %c0_i32, %c0_i32_0 : i32, i32
  }
  func.func @transform_9(%arg0: i32) -> (i32, i32) {
    %c0_i32 = arith.constant 0 : i32
    %c0_i32_0 = arith.constant 0 : i32
    %c0_i32_1 = arith.constant 0 : i32
    return %c0_i32, %c0_i32_0 : i32, i32
  }
  func.func @transform_10(%arg0: i32) -> (i32, i32) {
    %c0_i32 = arith.constant 0 : i32
    %c0_i32_0 = arith.constant 0 : i32
    %c0_i32_1 = arith.constant 0 : i32
    return %c0_i32, %c0_i32_0 : i32, i32
  }
  func.func @transform_11(%arg0: i32) -> (i32, i32) {
    %c0_i32 = arith.constant 0 : i32
    %c0_i32_0 = arith.constant 0 : i32
    %c0_i32_1 = arith.constant 0 : i32
    return %c0_i32, %c0_i32_0 : i32, i32
  }
  func.func @transform_12(%arg0: i32) -> (i32, i32) {
    %c0_i32 = arith.constant 0 : i32
    %c0_i32_0 = arith.constant 0 : i32
    %c0_i32_1 = arith.constant 0 : i32
    return %c0_i32, %c0_i32_0 : i32, i32
  }
  func.func @transform_13(%arg0: i32) -> (i32, i32, i32) {
    %c0_i32 = arith.constant 0 : i32
    %c0_i32_0 = arith.constant 0 : i32
    %c0_i32_1 = arith.constant 0 : i32
    return %arg0, %c0_i32, %c0_i32_0 : i32, i32, i32
  }
}

</mosaic_0001>

<bundles_post_ra>
// kernel: _lambda_.1
= control target key start
LH: loop header
LB: loop body
LE: loop exit
PB: predicated region body
PF: predicated region fallthrough
CT: control target
= control target key end

     0   :  { %s10020_s0 = inlined_call_operand.vmem [shape: bf16[512,32], index: 0, kind: input, shape index: {}]   ;;  %s10021_s1 = inlined_call_operand.vmem [shape: bf16[32,128], index: 1, kind: input, shape index: {}]   ;;  %s10022_s2 = inlined_call_operand.vmem [shape: f32[1,128], index: 2, kind: input, shape index: {}]   ;;  %s10023_s3 = inlined_call_operand.vmem [shape: bf16[1152,128], index: 3, kind: input, shape index: {}]   ;;  %s10024_s4 = inlined_call_operand.vmem [shape: f32[1,128], index: 4, kind: input, shape index: {}]   ;;  %s10025_s5 = inlined_call_operand.vmem [shape: bf16[1152,512], index: 5, kind: input, shape index: {}]   ;;  %s10026_s6 = inlined_call_operand.vmem [shape: f32[1,512], index: 6, kind: input, shape index: {}]   ;;  %s10027_s7 = inlined_call_operand.vmem [shape: bf16[512,256], index: 7, kind: input, shape index: {}]   ;;  %s10028_s8 = inlined_call_operand.vmem [shape: f32[1,256], index: 8, kind: input, shape index: {}]   ;;  %s10029_s9 = inlined_call_operand.vmem [shape: bf16[256,256], index: 9, kind: input, shape index: {}]   ;;  %s10030_s10 = inlined_call_operand.vmem [shape: f32[1,256], index: 10, kind: input, shape index: {}]   ;;  %s10031_s11 = inlined_call_operand.vmem [shape: bf16[256,128], index: 11, kind: input, shape index: {}]   ;;  %s10032_s12 = inlined_call_operand.vmem [shape: f32[1,128], index: 12, kind: input, shape index: {}]   ;;  %s10033_s13 = inlined_call_operand.hbm [shape: f32[2,1,128], index: 13, kind: output, shape index: {}]  }
   0x1   :  { %10061 = sst [smem:[#allocation14_spill]] %s10020_s0 }
   0x2   :  { %10062 = sst [smem:[#allocation15_spill]] %s10021_s1 }
   0x3   :  { %18 = vsyncpa [#allocation11], 0 }
   0x4   :  { %20 = vsyncpa [#allocation11 + $0x1], 0  ;;  %s7578_s25 = smov 0   ;;  %s7580_s26 = smov 0  }
   0x5   :  { %s7582_s27 = smov 0   ;;  %s7584_s28 = smov 0  }
   0x6 LB: > { %s7599_s29 = sadd.s32 4294967295, %s7504_s28   ;;  %s5728_s30 = sadd.s32 4294967294, %s7504_s28   ;;  %s7504_s28 = sphi %s7584_s28, %s10209_s28   ;;  %s7500_s27 = sphi %s7582_s27, %s10208_s27   ;;  %s7496_s26 = sphi %s7580_s26, %s10207_s26   ;;  %s7492_s25 = sphi %s7578_s25, %s10206_s25  }
   0x7   : > { %s7603_s14 = sadd.s32 1, %s7504_s28   ;;  %s311_s15 = sadd.s32 1, %s7500_s27 }
   0x8   : > { %s308_s16 = ssub.s32 %s7504_s28, %s7603_s14  ;;  %p321_p0 = scmp.ne.s32.totalorder %s7500_s27, %s7496_s26 }
   0x9   : > { %p309_p1 = scmp.eq.s32.totalorder %s308_s16, 0  ;;  %p322_p2 = scmp.eq.s32.totalorder %s7599_s29, 1 }
   0xa   : > { %p327_p3 = scmp.ne.s32.totalorder %s7496_s26, %s7492_s25  ;;  %p328_p4 = scmp.eq.s32.totalorder %s5728_s30, 1 }
   0xb   : > { %s7614_s17 = scalar_select %p309_p1, %s7500_s27, %s311_s15  }
   0xc   : > { %p7616_p5 = por %p322_p2, %p321_p0  ;;  %p7620_p6 = por %p328_p4, %p327_p3 }
   0xd   : > { %10063 = sst [smem:[#allocation13_spill]] %s7614_s17  ;;  %p5731_p7 = scmp.ge.s32.totalorder %s7504_s28, 1 }
   0xe   : > { %p391_p8 = scmp.lt.s32.totalorder %s7504_s28, 3 }
  0x10   : > { %p392_p9 = pnand %p5731_p7, %p391_p8 }
  0x11   : > { %s10066_s1 = sld [smem:[#allocation15_spill]] (!%p392_p9)  ;;  %s5732_s22 = sshll.u32 (!%p392_p9), %s7599_s29, 5  ;;  %vm576_vm0 = vcmask (!%p392_p9), 261120   ;;  %v6778_v2 = vld [vmem:[%s10023_s3 + $0x40] sm:$0xff] (!%p392_p9)   ;;  %v6780_v20 = vld [vmem:[%s10023_s3 + $0x48] sm:$0xff] (!%p392_p9)   ;;  %v6782_v22 = vld [vmem:[%s10023_s3 + $0x50] sm:$0xff] (!%p392_p9)   ;;  %v977_v52 = vlaneseq (!%p392_p9) }
  0x12   : > { %395 = sbr.rel (%p392_p9) target bundleno = 1829 (0x725), region = 72  ;;  %p435_p10 = scmp.lt.s32.totalorder (!%p392_p9), %s5732_s22, 63  ;;  %6420 = vmatprep.subr.bf16.mxu1 (!%p392_p9), %v6778_v2  ;;  %v6779_v19 = vld [vmem:[%s10023_s3] sm:$0xff] (!%p392_p9)   ;;  %v6781_v21 = vld [vmem:[%s10023_s3 + $0x8] sm:$0xff] (!%p392_p9)   ;;  %v6783_v23 = vld [vmem:[%s10023_s3 + $0x10] sm:$0xff] (!%p392_p9)  }
  0x13   : > { %s10067_s0 = sld [smem:[#allocation14_spill]] (!%p392_p9)  ;;  %6421 = vmatpush3.bf16.msra.mxu1 (!%p392_p9), %v6779_v19  ;;  %v6784_v24 = vld [vmem:[%s10023_s3 + $0x58] sm:$0xff] (!%p392_p9)   ;;  %v6786_v26 = vld [vmem:[%s10023_s3 + $0x60] sm:$0xff] (!%p392_p9)   ;;  %v6790_v30 = vld [vmem:[%s10023_s3 + $0x68] sm:$0xff] (!%p392_p9)   ;;  %v7775_v53 = vshrl.u32 (!%p392_p9), %v977_v52, 7  ;;  %s432_s24 = sand.u32 (!%p392_p9), 1, %s7496_s26  }
  0x14   : > { %6422 = vmatprep.subr.bf16.mxu1 (!%p392_p9), %v6780_v20  ;;  %v6785_v25 = vld [vmem:[%s10023_s3 + $0x18] sm:$0xff] (!%p392_p9)   ;;  %v6787_v27 = vld [vmem:[%s10023_s3 + $0x140] sm:$0xff] (!%p392_p9)   ;;  %v6791_v31 = vld [vmem:[%s10023_s3 + $0x148] sm:$0xff] (!%p392_p9)   ;;  %s433_s20 = scalar_lea.vmem (!%p392_p9), [#allocation10], %s432_s24  ;;  %s5661_s23 = scalar_lea.sflag (!%p392_p9), [#allocation11], %s432_s24 }
  0x15   : > { %v6788_v28 = vld [vmem:[%s10023_s3 + $0x20] sm:$0xff] (!%p392_p9)   ;;  %v6792_v32 = vld [vmem:[%s10023_s3 + $0x28] sm:$0xff] (!%p392_p9)   ;;  %v6794_v34 = vld [vmem:[%s10023_s3 + $0x70] sm:$0xff] (!%p392_p9)   ;;  %v7778_v54 = vadd.s32 (!%p392_p9), 8, %v7775_v53  ;;  %v986_v55 = vand.u32 (!%p392_p9), 63, %v7775_v53  ;;  %v984_v63 = vadd.s32 (!%p392_p9), 48, %v7775_v53 }
  0x16   : > { %v6789_v29 = vld [vmem:[%s10023_s3 + $0x100] sm:$0xff] (!%p392_p9)   ;;  %v6793_v33 = vld [vmem:[%s10023_s3 + $0x108] sm:$0xff] (!%p392_p9)   ;;  %v6795_v35 = vld [vmem:[%s10023_s3 + $0x150] sm:$0xff] (!%p392_p9)   ;;  %s5673_s21 = sshll.u32 (!%p392_p9), %s433_s20, 4  ;;  %s9980_s21 = int_to_ptr.vmem [resolvable:$true] %s5673_s21 }
  0x17   : > { %v6760_v0 = vld [vmem:[%s10066_s1] sm:$0xff] (!%p392_p9)   ;;  %v6761_v1 = vld [vmem:[%s10066_s1 + $0x8] sm:$0xff] (!%p392_p9)   ;;  %6423 = vmatpush3.bf16.msra.mxu1 (!%p392_p9), %v6781_v21  ;;  %v6796_v36 = vld [vmem:[%s10023_s3 + $0x30] sm:$0xff] (!%p392_p9)   ;;  %v987_v56 = vand.u32 (!%p392_p9), 63, %v7778_v54  ;;  %v7782_v57 = vand.u32 (!%p392_p9), 7, %v986_v55  ;;  %v7786_v59 = vshra.s32 (!%p392_p9), %v986_v55, 3 }
  0x18   : > { %6614 = vmatprep.subr.bf16.mxu0 (!%p392_p9), %v6760_v0  ;;  %6424 = vmatprep.subr.bf16.mxu1 (!%p392_p9), %v6782_v22  ;;  %v6797_v37 = vld [vmem:[%s10023_s3 + $0x110] sm:$0xff] (!%p392_p9)   ;;  %v6798_v38 = vld [vmem:[%s10023_s3 + $0x78] sm:$0xff] (!%p392_p9)   ;;  %v6802_v42 = vld [vmem:[%s10023_s3 + $0x160] sm:$0xff] (!%p392_p9)   ;;  %v10072_v21 = vmov (!%p392_p9), 0  ;;  %s7442_s30 = scalar_lea.vmem (!%p392_p9), %s9980_s21, 16 }
  0x19   : > { %6615 = vmatpush3.bf16.msra.mxu0 %v6760_v0  ;;  %s10211_s22 = smov (!%p435_p10, %s5732_s22), 63  ;;  %v6799_v39 = vld [vmem:[%s10023_s3 + $0x158] sm:$0xff]   ;;  %v6803_v43 = vld [vmem:[%s10023_s3 + $0x120] sm:$0xff]   ;;  %v6804_v44 = vld [vmem:[%s10023_s3 + $0x168] sm:$0xff]   ;;  %v7784_v58 = vand.u32 7, %v987_v56  ;;  %v7788_v60 = vshra.s32 %v987_v56, 3  ;;  %p7443_p11 = scmp.ne.s32.totalorder %s9980_s21, %s7442_s30 }
  0x1a   : > { %6616 = vmatprep.subr.bf16.mxu0 %v6761_v1  ;;  %s5733_s16 = sshll.u32 %s10211_s22, 2  ;;  %v6800_v40 = vld [vmem:[%s10023_s3 + $0x38] sm:$0xff]   ;;  %v6805_v45 = vld [vmem:[%s10023_s3 + $0x128] sm:$0xff]   ;;  %v6806_v46 = vld [vmem:[%s10023_s3 + $0x170] sm:$0xff]   ;;  %vm10038_vm1 = vcmp.ge.s32.totalorder %v7782_v57, 1  ;;  %vm10037_vm2 = vcmp.lt.s32.totalorder %v7786_v59, 7 }
  0x1b   : > { %s7639_s17 = scalar_lea.vmem %s10067_s0, %s5733_s16  ;;  %6425 = vmatpush3.bf16.msra.mxu1 %v6783_v23  ;;  %v6801_v41 = vld [vmem:[%s10023_s3 + $0x118] sm:$0xff]   ;;  %v6807_v47 = vld [vmem:[%s10023_s3 + $0x130] sm:$0xff]   ;;  %v6810_v50 = vld [vmem:[%s10023_s3 + $0xc0] sm:$0xff]   ;;  %vm10039_vm3 = vcmp.ge.s32.totalorder %v7784_v58, 1  ;;  %vm10036_vm4 = vcmp.lt.s32.totalorder %v7788_v60, 7  ;;  %v985_v0 = vadd.s32 56, %v7775_v53  ;;  %p7444_p12 = pnand %p7443_p11, %p7616_p5 }
  0x1c   : > { %v6762_v3 = vld [vmem:[%s7639_s17] sm:$0xff]   ;;  %v6763_v4 = vld [vmem:[%s7639_s17 + $0x8] sm:$0xff]   ;;  %v6764_v5 = vld [vmem:[%s7639_s17 + $0x10] sm:$0xff]   ;;  %6426 = vmatprep.subr.bf16.mxu1 %v6784_v24  ;;  %vm1018_vm13 = vcmp.ge.s32.totalorder %v7786_v59, 1  ;;  %vm10040_vm14 = vcmp.ge.s32.totalorder %v7788_v60, 1  ;;  %v981_v23 = vadd.s32 24, %v7775_v53 }
  0x1d   : > { %6617 = vmatpush3.bf16.msra.mxu0 %v6761_v1  ;;  %6618 = vmatprep.mubr.msk.bf16.mxu0 %vm576_vm0, %v6762_v3  ;;  %v6765_v6 = vld [vmem:[%s7639_s17 + $0x18] sm:$0xff]   ;;  %v6766_v7 = vld [vmem:[%s7639_s17 + $0x20] sm:$0xff]   ;;  %v6767_v8 = vld [vmem:[%s7639_s17 + $0x28] sm:$0xff]   ;;  %v992_v3 = vand.u32 63, %v984_v63  ;;  %v10074_v24 = vmov 0  ;;  %s6255_s16 = sshll.u32 %s7599_s29, 4  ;;  %p7445_p13 = pneg %p7444_p12 }
  0x1e   : > { %v6768_v9 = vld [vmem:[%s7639_s17 + $0x30] sm:$0xff]   ;;  %v6769_v10 = vld [vmem:[%s7639_s17 + $0x38] sm:$0xff]   ;;  %v6770_v11 = vld [vmem:[%s7639_s17 + $0x40] sm:$0xff]   ;;  %6500 = vmatprep.subr.bf16.mxu0 %v6787_v27  ;;  %s9978_s22 = scalar_lea.hbm %s10033_s13, %s6255_s16  ;;  %s7507_s29 = smov [#allocation10]  }
  0x1f   : > { %v6771_v12 = vld [vmem:[%s7639_s17 + $0x48] sm:$0xff]   ;;  %v6772_v13 = vld [vmem:[%s7639_s17 + $0x50] sm:$0xff]   ;;  %v6773_v14 = vld [vmem:[%s7639_s17 + $0x58] sm:$0xff]   ;;  %6427 = vmatpush3.bf16.msra.mxu1 %v6785_v25  ;;  %s7446_s15 = sshll.u32 %s7507_s29, 4  ;;  %s7447_s15 = int_to_ptr.vmem [resolvable:$false] %s7446_s15 }
  0x20   : > { %6619 = vmatmul.mubr.msk.bf16.vlgmr.msra.gmra.mrb[0].mxu0 %vm576_vm0, %v6763_v4  ;;  %v6774_v15 = vld [vmem:[%s7639_s17 + $0x60] sm:$0xff]   ;;  %v6775_v16 = vld [vmem:[%s7639_s17 + $0x68] sm:$0xff]   ;;  %v6776_v17 = vld [vmem:[%s7639_s17 + $0x70] sm:$0xff]   ;;  %6428 = vmatprep.subr.bf16.mxu1 %v6786_v26  ;;  %s7448_s1 = scalar_lea.vmem %s7447_s15, 32  ;;  %p7449_p0 = scmp.lt.s32.totalorder %s9980_s21, %s7447_s15 }
  0x21   : > { %6622 = vmatprep.mubr.msk.bf16.mxu0 %vm576_vm0, %v6764_v5  ;;  %v6777_v18 = vld [vmem:[%s7639_s17 + $0x78] sm:$0xff]   ;;  %6501 = vmatpush3.bf16.msra.mxu0 %v6789_v29  ;;  %v7772_v51 = vld [vmem:[%s10023_s3 + $0x200] sm:$0xff]   ;;  %vm7798_vm5 = vmand %vm10037_vm2, %vm10038_vm1  ;;  %p7450_p1 = scmp.lt.s32.totalorder %s7448_s1, %s7442_s30 }
  0x22   : > { %6502 = vmatprep.subr.bf16.mxu0 %v6791_v31  ;;  %v6808_v48 = vld [vmem:[%s10023_s3 + $0x178] sm:$0xff]   ;;  %vm7806_vm6 = vmand %vm10036_vm4, %vm10039_vm3  ;;  %v7819_v1 = vld [vmem:[%s10022_s2] ss:$0 sm:$0xff] }
  0x23   : > { %6429 = vmatpush3.bf16.msra.mxu1 %v6788_v28  ;;  %v6809_v49 = vld [vmem:[%s10023_s3 + $0x138] sm:$0xff]   ;;  %vm7868_vm7 = vmpackc.low %vm10040_vm14, %vm1018_vm13  ;;  %p7451_p2 = por %p7450_p1, %p7449_p0 }
  0x24   : > { %6430 = vmatprep.subr.bf16.mxu1 %v6790_v30  ;;  %vm7905_vm4 = vmand %vm10040_vm14, %vm10039_vm3  ;;  %vm1123_vm3 = vcmp.lt.s32.totalorder %v7784_v58, 7 }
  0x25   : > { %6503 = vmatpush3.bf16.msra.mxu0 %v6793_v33  ;;  %p7452_p3 = pnand %p7451_p2, %p7445_p13 }
  0x26   : > { %6504 = vmatprep.subr.bf16.mxu0 %v6795_v35 }
  0x27   : > { %6431 = vmatpush3.bf16.msra.mxu1 %v6792_v32 }
  0x28   : > { %6623 = vmatmul.mubr.msk.bf16.gmra.mrb[4].mxu0 %vm576_vm0, %v6765_v6  ;;  %6432 = vmatprep.subr.bf16.mxu1 %v6794_v34  ;;  %v993_v6 = vand.u32 63, %v985_v0 }
  0x29   : > { %6626 = vmatprep.mubr.msk.bf16.mxu0 %vm576_vm0, %v6766_v7  ;;  %6505 = vmatpush3.bf16.msra.mxu0 %v6797_v37 }
  0x2a   : > { %6506 = vmatprep.subr.bf16.mxu0 %v6799_v39  ;;  %v7832_v19 = vshra.s32 %v993_v6, 3 }
  0x2b   : > { %6433 = vmatpush3.bf16.msra.mxu1 %v6796_v36  ;;  %v989_v36 = vand.u32 63, %v981_v23 }
  0x2c   : > { %6434 = vmatprep.subr.bf16.mxu1 %v6798_v38  ;;  %vm10034_vm11 = vcmp.lt.s32.totalorder %v7832_v19, 7 }
  0x2d   : > { %6507 = vmatpush3.bf16.msra.mxu0 %v6801_v41 }
  0x2e   : > { %6508 = vmatprep.subr.bf16.mxu0 %v6802_v42 }
  0x2f   : > { %6435 = vmatpush3.bf16.msra.mxu1 %v6800_v40 }
  0x30   : > { %6627 = vmatmul.mubr.msk.bf16.gmra.mrb[8].mxu0 %vm576_vm0, %v6767_v8  ;;  %6460 = vmatprep.subr.bf16.mxu1 %v6810_v50 }
  0x31   : > { %6630 = vmatprep.mubr.msk.bf16.mxu0 %vm576_vm0, %v6768_v9  ;;  %6509 = vmatpush3.bf16.msra.mxu0 %v6803_v43  ;;  %v7823_v9 = vand.u32 7, %v992_v3 }
  0x32   : > { %6510 = vmatprep.subr.bf16.mxu0 %v6804_v44 }
  0x33   : > { %vm10055_vm8 = vcmp.ge.s32.totalorder %v7823_v9, 1 }
  0x35   : > { %6511 = vmatpush3.bf16.msra.mxu0 %v6805_v45  ;;  %v1074_v45 = vld [vmem:[#allocation4 + $0x8] sm:$0xff] }
  0x36   : > { %6512 = vmatprep.subr.bf16.mxu0 %v6806_v46 }
  0x38   : > { %6631 = vmatmul.mubr.msk.bf16.gmra.mrb[12].mxu0 %vm576_vm0, %v6769_v10 }
  0x39   : > { %6634 = vmatprep.mubr.msk.bf16.mxu0 %vm576_vm0, %v6770_v11  ;;  %6513 = vmatpush3.bf16.msra.mxu0 %v6807_v47 }
  0x3a   : > { %6514 = vmatprep.subr.bf16.mxu0 %v6808_v48 }
  0x3d   : > { %6515 = vmatpush3.bf16.msra.mxu0 %v6809_v49  ;;  %v7883_v49 = vshra.s32 %v989_v36, 3 }
  0x3e   : > { %6650 = vmatprep.subr.bf16.mxu0 %v7772_v51 }
  0x40   : > { %6635 = vmatmul.mubr.msk.bf16.gmra.mrb[16].mxu0 %vm576_vm0, %v6771_v12 }
  0x41   : > { %6638 = vmatprep.mubr.msk.bf16.mxu0 %vm576_vm0, %v6772_v13  ;;  %v7826_v13 = vand.u32 7, %v993_v6 }
  0x43   : > { %vm10041_vm10 = vcmp.ge.s32.totalorder %v7826_v13, 1 }
  0x44   : > { %vm7853_vm15 = vmand %vm10034_vm11, %vm10041_vm10 }
  0x45   : > { %v10075_v24 = vsel %vm7853_vm15, 4294967295, %v10074_v24 }
  0x48   : > { %6639 = vmatmul.mubr.msk.bf16.gmra.mrb[20].mxu0 %vm576_vm0, %v6773_v14 }
  0x49   : > { %6642 = vmatprep.mubr.msk.bf16.mxu0 %vm576_vm0, %v6774_v15 }
  0x50   : > { %6643 = vmatmul.mubr.msk.bf16.gmra.mrb[24].mxu0 %vm576_vm0, %v6775_v16  ;;  %v7829_v16 = vshra.s32 %v992_v3, 3 }
  0x51   : > { %6646 = vmatprep.mubr.msk.bf16.mxu0 %vm576_vm0, %v6776_v17 }
  0x52   : > { %vm10035_vm9 = vcmp.lt.s32.totalorder %v7829_v16, 7 }
  0x53   : > { %vm7842_vm12 = vmand %vm10035_vm9, %vm10055_vm8  ;;  %vm10042_vm9 = vcmp.ge.s32.totalorder %v7883_v49, 1 }
  0x54   : > { %v10073_v21 = vsel %vm7842_vm12, 4294967295, %v10072_v21 }
  0x58   : > { %6647 = vmatmul.mubr.msk.bf16.gmra.mrb[28].mxu0 %vm576_vm0, %v6777_v18  ;;  %v980_v18 = vadd.s32 16, %v7775_v53  ;;  %vm7879_vm0 = vmand %vm1018_vm13, %vm10038_vm1 }
  0x59   : > { %vm6261_vm14 = vmpackc.low %vm7905_vm4, %vm7879_vm0 }
  0x5a   : > { %v988_v27 = vand.u32 63, %v980_v18 }
  0x5c   : > { %v7873_v38 = vshra.s32 %v988_v27, 3  ;;  %v7890_v0 = vand.u32 7, %v988_v27 }
  0x5e   : > { %vm10043_vm11 = vcmp.ge.s32.totalorder %v7873_v38, 1  ;;  %vm10045_vm2 = vcmp.ge.s32.totalorder %v7890_v0, 1 }
  0x5f   : > { %vm7940_vm10 = vmpackc.low %vm10042_vm9, %vm10043_vm11 }
  0x60   : > { %vm7963_vm4 = vmand %vm10043_vm11, %vm10045_vm2  ;;  %vm10051_vm11 = vcmp.lt.s32.totalorder %v7890_v0, 7 }
  0xf3   : > { %v6620_v2 = vpop.f32.mrb[0].mxu0 }
  0xf4   : > { %v668_v4 = vadd.f32 %v6620_v2, %v7819_v1  ;;  %v659_v5 = vpop.f32.mrb[1].mxu0 }
  0xf5   : > { %v660_v7 = vadd.f32 %v7819_v1, %v659_v5  ;;  %v6621_v8 = vpop.f32.mrb[2].mxu0  ;;  %v7893_v5 = vand.u32 7, %v989_v36  ;;  %v6811_v36 = vld [vmem:[%s10023_s3 + $0x80] sm:$0xff]  }
  0xf6   : > { %v788_v10 = vmax.f32 %v668_v4, 0.0  ;;  %v671_v11 = vadd.f32 %v6621_v8, %v7819_v1  ;;  %v662_v12 = vpop.f32.mrb[3].mxu0 }
  0xf7   : > { %v786_v14 = vmax.f32 %v660_v7, 0.0  ;;  %v663_v15 = vadd.f32 %v7819_v1, %v662_v12  ;;  %vm10044_vm1 = vcmp.ge.s32.totalorder %v7893_v5, 1  ;;  %vm10050_vm2 = vcmp.lt.s32.totalorder %v7893_v5, 7 }
  0xf8   : > { %820 = vst [vmem:[#allocation2 + $0x10] sm:$0xff] %v788_v10  ;;  %v789_v17 = vmax.f32 %v671_v11, 0.0 }
  0xf9   : > { %818 = vst [vmem:[#allocation2] sm:$0xff] %v786_v14  ;;  %v787_v20 = vmax.f32 %v663_v15, 0.0 }
  0xfa   : > { %821 = vst [vmem:[#allocation2 + $0x18] sm:$0xff] %v789_v17 }
  0xfb   : > { %819 = vst [vmem:[#allocation2 + $0x8] sm:$0xff] %v787_v20  ;;  %v6624_v22 = vpop.f32.mrb[4].mxu0 }
  0xfc   : > { %v684_v25 = vadd.f32 %v6624_v22, %v7819_v1  ;;  %v675_v26 = vpop.f32.mrb[5].mxu0  ;;  %v1010_v22 = vld [vmem:[#allocation4 + $0x7] sm:$0xff] }
  0xfd   : > { %v676_v28 = vadd.f32 %v7819_v1, %v675_v26  ;;  %v6625_v29 = vpop.f32.mrb[6].mxu0 }
  0xfe   : > { %v792_v30 = vmax.f32 %v684_v25, 0.0  ;;  %v687_v31 = vadd.f32 %v6625_v29, %v7819_v1  ;;  %v678_v32 = vpop.f32.mrb[7].mxu0 }
  0xff   : > { %v790_v34 = vmax.f32 %v676_v28, 0.0  ;;  %v679_v35 = vadd.f32 %v7819_v1, %v678_v32 }
 0x100   : > { %824 = vst [vmem:[#allocation2 + $0x30] sm:$0xff] %v792_v30  ;;  %v793_v37 = vmax.f32 %v687_v31, 0.0  ;;  %v7922_v31 = vadd.s32 32, %v7775_v53 }
 0x101   : > { %v852_v39 = vld [vmem:[#allocation2 + $0x10] ss:$2 sm:$0xff]  ;;  %v884_v40 = vld [vmem:[#allocation2 + $0x11] ss:$2 sm:$0xff]  ;;  %822 = vst [vmem:[#allocation2 + $0x20] sm:$0xff] %v790_v34  ;;  %v791_v41 = vmax.f32 %v679_v35, 0.0 }
 0x102   : > { %v914_v42 = vmax.f32 %v852_v39, %v884_v40  ;;  %v850_v43 = vld [vmem:[#allocation2] ss:$2 sm:$0xff]  ;;  %v882_v44 = vld [vmem:[#allocation2 + $0x1] ss:$2 sm:$0xff]  ;;  %825 = vst [vmem:[#allocation2 + $0x38] sm:$0xff] %v793_v37 }
 0x103   : > { %v913_v47 = vmax.f32 %v850_v43, %v882_v44  ;;  %823 = vst [vmem:[#allocation2 + $0x28] sm:$0xff] %v791_v41  ;;  %v6628_v48 = vpop.f32.mrb[8].mxu0  ;;  %v6812_v41 = vld [vmem:[%s10023_s3 + $0xc8] sm:$0xff]   ;;  %v7945_v44 = vadd.s32 40, %v7775_v53 }
 0x104   : > { %v700_v50 = vadd.f32 %v6628_v48, %v7819_v1  ;;  %v691_v52 = vpop.f32.mrb[9].mxu0 }
 0x105   : > { %v692_v55 = vadd.f32 %v7819_v1, %v691_v52  ;;  %v6629_v56 = vpop.f32.mrb[10].mxu0  ;;  %v7887_v63 = vmax.f32 %v913_v47, %v914_v42 }
 0x106   : > { %v796_v2 = vmax.f32 %v700_v50, 0.0  ;;  %v703_v3 = vadd.f32 %v6629_v56, %v7819_v1  ;;  %v694_v4 = vpop.f32.mrb[11].mxu0  ;;  %v6813_v50 = vld [vmem:[%s10023_s3 + $0x88] sm:$0xff]  }
 0x107   : > { %v794_v6 = vmax.f32 %v692_v55, 0.0  ;;  %v695_v7 = vadd.f32 %v7819_v1, %v694_v4  ;;  %948 = vst [vmem:[#allocation4 + $0x10] sm:$0xff] %v7887_v63  ;;  %v6259_v8 = vpack.c.bf16 %v7887_v63, %v1074_v45  ;;  %v6814_v4 = vld [vmem:[%s10023_s3 + $0xd0] sm:$0xff]  }
 0x108   : > { %828 = vst [vmem:[#allocation2 + $0x50] sm:$0xff] %v796_v2  ;;  %v797_v10 = vmax.f32 %v703_v3, 0.0 }
 0x109   : > { %v856_v11 = vld [vmem:[#allocation2 + $0x30] ss:$2 sm:$0xff]  ;;  %v888_v12 = vld [vmem:[#allocation2 + $0x31] ss:$2 sm:$0xff]  ;;  %826 = vst [vmem:[#allocation2 + $0x40] sm:$0xff] %v794_v6  ;;  %v795_v14 = vmax.f32 %v695_v7, 0.0  ;;  %6260 = vmatprep.mubr.msk.bf16.mxu1 %vm7868_vm7, %v6259_v8 }
 0x10a   : > { %v916_v17 = vmax.f32 %v856_v11, %v888_v12  ;;  %v854_v18 = vld [vmem:[#allocation2 + $0x20] ss:$2 sm:$0xff]  ;;  %v886_v20 = vld [vmem:[#allocation2 + $0x21] ss:$2 sm:$0xff]  ;;  %829 = vst [vmem:[#allocation2 + $0x58] sm:$0xff] %v797_v10  ;;  %vm10052_vm7 = vcmp.lt.s32.totalorder %v7782_v57, 7 }
 0x10b   : > { %v915_v23 = vmax.f32 %v854_v18, %v886_v20  ;;  %827 = vst [vmem:[#allocation2 + $0x48] sm:$0xff] %v795_v14  ;;  %v6632_v25 = vpop.f32.mrb[12].mxu0  ;;  %v990_v8 = vand.u32 63, %v7922_v31  ;;  %vm7984_vm0 = vmpackc.low %vm1123_vm3, %vm10052_vm7  ;;  %v6824_v7 = vld [vmem:[%s10023_s3 + $0xa8] sm:$0xff]   ;;  %v6826_v31 = vld [vmem:[%s10023_s3 + $0xf0] sm:$0xff]  }
 0x10c   : > { %v716_v26 = vadd.f32 %v6632_v25, %v7819_v1  ;;  %v707_v27 = vpop.f32.mrb[13].mxu0 }
 0x10d   : > { %v7914_v28 = vmax.f32 %v915_v23, %v916_v17  ;;  %v708_v29 = vadd.f32 %v7819_v1, %v707_v27  ;;  %v6633_v30 = vpop.f32.mrb[14].mxu0  ;;  %v6815_v23 = vld [vmem:[%s10023_s3 + $0x90] sm:$0xff]  }
 0x10e   : > { %v800_v32 = vmax.f32 %v716_v26, 0.0  ;;  %v719_v33 = vadd.f32 %v6633_v30, %v7819_v1  ;;  %v710_v34 = vpop.f32.mrb[15].mxu0  ;;  %v7925_v35 = vld [vmem:[#allocation4 + $0xf] sm:$0xff] }
 0x10f   : > { %952 = vst [vmem:[#allocation4 + $0x18] sm:$0xff] %v7914_v28  ;;  %v798_v37 = vmax.f32 %v708_v29, 0.0  ;;  %v711_v39 = vadd.f32 %v7819_v1, %v710_v34  ;;  %v6262_v40 = vpack.c.bf16 %v7925_v35, %v1010_v22  ;;  %v991_v22 = vand.u32 63, %v7945_v44  ;;  %v6817_v29 = vld [vmem:[%s10023_s3 + $0xd8] sm:$0xff]  }
 0x110   : > { %832 = vst [vmem:[#allocation2 + $0x70] sm:$0xff] %v800_v32  ;;  %v801_v42 = vmax.f32 %v719_v33, 0.0  ;;  %v8005_v32 = vshra.s32 %v990_v8, 3 }
 0x111   : > { %v860_v45 = vld [vmem:[#allocation2 + $0x50] ss:$2 sm:$0xff]  ;;  %v892_v47 = vld [vmem:[#allocation2 + $0x51] ss:$2 sm:$0xff]  ;;  %830 = vst [vmem:[#allocation2 + $0x60] sm:$0xff] %v798_v37  ;;  %v799_v48 = vmax.f32 %v711_v39, 0.0  ;;  %6263 = vmatmul.mubr.msk.bf16.vlgmr.msra.gmra.mrb[0].mxu1 %vm6261_vm14, %v6262_v40  ;;  %vm7975_vm14 = vmand %vm10042_vm9, %vm10044_vm1 }
 0x112   : > { %v918_v52 = vmax.f32 %v860_v45, %v892_v47  ;;  %v858_v55 = vld [vmem:[#allocation2 + $0x40] ss:$2 sm:$0xff]  ;;  %v890_v56 = vld [vmem:[#allocation2 + $0x41] ss:$2 sm:$0xff]  ;;  %833 = vst [vmem:[#allocation2 + $0x78] sm:$0xff] %v801_v42  ;;  %6461 = vmatpush3.bf16.msra.mxu1 %v6811_v36  ;;  %vm6267_vm9 = vmpackc.low %vm7975_vm14, %vm7963_vm4  ;;  %v8065_v20 = vand.u32 7, %v991_v22 }
 0x113   : > { %v917_v2 = vmax.f32 %v858_v55, %v890_v56  ;;  %831 = vst [vmem:[#allocation2 + $0x68] sm:$0xff] %v799_v48  ;;  %v6636_v3 = vpop.f32.mrb[16].mxu0  ;;  %6462 = vmatprep.subr.bf16.mxu1 %v6812_v41  ;;  %v6818_v37 = vld [vmem:[%s10023_s3 + $0x98] sm:$0xff]   ;;  %v6820_v47 = vld [vmem:[%s10023_s3 + $0xe0] sm:$0xff]  }
 0x114   : > { %v732_v46 = vadd.f32 %v6636_v3, %v7819_v1  ;;  %v723_v6 = vpop.f32.mrb[17].mxu0 }
 0x115   : > { %v7968_v10 = vmax.f32 %v917_v2, %v918_v52  ;;  %v724_v11 = vadd.f32 %v7819_v1, %v723_v6  ;;  %v6637_v12 = vpop.f32.mrb[18].mxu0 }
 0x116   : > { %v804_v15 = vmax.f32 %v732_v46, 0.0  ;;  %v735_v17 = vadd.f32 %v6637_v12, %v7819_v1  ;;  %v726_v18 = vpop.f32.mrb[19].mxu0  ;;  %6463 = vmatpush3.bf16.msra.mxu1 %v6813_v50  ;;  %v6821_v50 = vld [vmem:[%s10023_s3 + $0xa0] sm:$0xff]   ;;  %v8022_v2 = vld [vmem:[#allocation4 + $0x11] sm:$0xff] }
 0x117   : > { %956 = vst [vmem:[#allocation4 + $0x20] sm:$0xff] %v7968_v10  ;;  %v802_v25 = vmax.f32 %v724_v11, 0.0  ;;  %v727_v26 = vadd.f32 %v7819_v1, %v726_v18  ;;  %v6265_v27 = vpack.c.bf16 %v7968_v10, %v7914_v28  ;;  %6464 = vmatprep.subr.bf16.mxu1 %v6814_v4  ;;  %v8027_v11 = vld [vmem:[#allocation4 + $0x17] sm:$0xff] }
 0x118   : > { %836 = vst [vmem:[#allocation2 + $0x90] sm:$0xff] %v804_v15  ;;  %v805_v30 = vmax.f32 %v735_v17, 0.0  ;;  %v8033_v15 = vshra.s32 %v991_v22, 3  ;;  %v6822_v22 = vld [vmem:[%s10023_s3 + $0x210] sm:$0xff]  }
 0x119   : > { %v864_v33 = vld [vmem:[#allocation2 + $0x70] ss:$2 sm:$0xff]  ;;  %v896_v34 = vld [vmem:[#allocation2 + $0x71] ss:$2 sm:$0xff]  ;;  %834 = vst [vmem:[#allocation2 + $0x80] sm:$0xff] %v802_v25  ;;  %v803_v36 = vmax.f32 %v727_v26, 0.0  ;;  %6266 = vmatprep.mubr.msk.bf16.mxu1 %vm7940_vm10, %v6265_v27 }
 0x11a   : > { %v920_v39 = vmax.f32 %v864_v33, %v896_v34  ;;  %v862_v40 = vld [vmem:[#allocation2 + $0x60] ss:$2 sm:$0xff]  ;;  %v894_v41 = vld [vmem:[#allocation2 + $0x61] ss:$2 sm:$0xff]  ;;  %837 = vst [vmem:[#allocation2 + $0x98] sm:$0xff] %v805_v30  ;;  %6465 = vmatpush3.bf16.msra.mxu1 %v6815_v23  ;;  %vm10047_vm10 = vcmp.ge.s32.totalorder %v8033_v15, 1 }
 0x11b   : > { %v919_v42 = vmax.f32 %v862_v40, %v894_v41  ;;  %835 = vst [vmem:[#allocation2 + $0x88] sm:$0xff] %v803_v36  ;;  %v6640_v45 = vpop.f32.mrb[20].mxu0  ;;  %6466 = vmatprep.subr.bf16.mxu1 %v6817_v29  ;;  %v6823_v26 = vld [vmem:[%s10023_s3 + $0xe8] sm:$0xff]   ;;  %v1218_v29 = vpack.c.bf16 %v7914_v28, %v7887_v63  ;;  %v8061_v63 = vand.u32 7, %v990_v8 }
 0x11c   : > { %v748_v43 = vadd.f32 %v6640_v45, %v7819_v1  ;;  %v739_v48 = vpop.f32.mrb[21].mxu0  ;;  %v6819_v30 = vld [vmem:[%s10023_s3 + $0x208] sm:$0xff]  }
 0x11d   : > { %v8019_v52 = vmax.f32 %v919_v42, %v920_v39  ;;  %v740_v55 = vadd.f32 %v7819_v1, %v739_v48  ;;  %v6641_v56 = vpop.f32.mrb[22].mxu0  ;;  %vm10049_vm4 = vcmp.ge.s32.totalorder %v8061_v63, 1 }
 0x11e   : > { %v808_v3 = vmax.f32 %v748_v43, 0.0  ;;  %v751_v4 = vadd.f32 %v6641_v56, %v7819_v1  ;;  %v742_v46 = vpop.f32.mrb[23].mxu0  ;;  %v8025_v6 = vld [vmem:[#allocation4 + $0x19] sm:$0xff]  ;;  %6467 = vmatpush3.bf16.msra.mxu1 %v6818_v37 }
 0x11f   : > { %v8029_v12 = vld [vmem:[#allocation4 + $0x1f] sm:$0xff]  ;;  %960 = vst [vmem:[#allocation4 + $0x28] sm:$0xff] %v8019_v52  ;;  %v806_v17 = vmax.f32 %v740_v55, 0.0  ;;  %v743_v18 = vadd.f32 %v7819_v1, %v742_v46  ;;  %v6307_v23 = vpack.c.bf16 %v8025_v6, %v8022_v2  ;;  %6468 = vmatprep.subr.bf16.mxu1 %v6820_v47 }
 0x120   : > { %v8041_v25 = vpack.c.bf16 %v8029_v12, %v8027_v11  ;;  %840 = vst [vmem:[#allocation2 + $0xb0] sm:$0xff] %v808_v3  ;;  %v809_v27 = vmax.f32 %v751_v4, 0.0  ;;  %v6829_v4 = vld [vmem:[%s10023_s3 + $0xf8] sm:$0xff]  }
 0x121   : > { %v868_v33 = vld [vmem:[#allocation2 + $0x90] ss:$2 sm:$0xff]  ;;  %v900_v34 = vld [vmem:[#allocation2 + $0x91] ss:$2 sm:$0xff]  ;;  %838 = vst [vmem:[#allocation2 + $0xa0] sm:$0xff] %v806_v17  ;;  %v807_v36 = vmax.f32 %v743_v18, 0.0  ;;  %6308 = vmatprep.mubr.msk.bf16.mxu0 %vm7984_vm0, %v6307_v23 }
 0x122   : > { %6269 = vmatmul.mubr.msk.bf16.gmra.mrb[4].mxu1 %vm6267_vm9, %v8041_v25  ;;  %v922_v28 = vmax.f32 %v868_v33, %v900_v34  ;;  %v866_v37 = vld [vmem:[#allocation2 + $0x80] ss:$2 sm:$0xff]  ;;  %v898_v39 = vld [vmem:[#allocation2 + $0x81] ss:$2 sm:$0xff]  ;;  %841 = vst [vmem:[#allocation2 + $0xb8] sm:$0xff] %v809_v27  ;;  %2192 = vmatmul.mubr.bf16.vlgmr.msra.gmra.mrb[32].mxu0 %v1218_v29  ;;  %vm10046_vm9 = vcmp.ge.s32.totalorder %v8005_v32, 1 }
 0x123   : > { %6469 = vmatpush3.bf16.msra.mxu1 %v6821_v50  ;;  %v921_v14 = vmax.f32 %v866_v37, %v898_v39  ;;  %839 = vst [vmem:[#allocation2 + $0xa8] sm:$0xff] %v807_v36  ;;  %v6644_v40 = vpop.f32.mrb[24].mxu0  ;;  %6651 = vmatpush3.bf16.msra.mxu0 %v7772_v51  ;;  %vm8089_vm14 = vmpackc.low %vm10047_vm10, %vm10046_vm9  ;;  %vm10048_vm0 = vcmp.ge.s32.totalorder %v8065_v20, 1  ;;  %v6827_v50 = vld [vmem:[%s10023_s3 + $0xb0] sm:$0xff]   ;;  %v6825_v18 = vld [vmem:[%s10023_s3 + $0x218] sm:$0xff]  }
 0x124   : > { %6470 = vmatprep.subr.bf16.mxu1 %v6823_v26  ;;  %v764_v44 = vadd.f32 %v6644_v40, %v7819_v1  ;;  %v755_v8 = vpop.f32.mrb[25].mxu0  ;;  %6652 = vmatprep.subr.bf16.mxu0 %v6819_v30  ;;  %vm8109_vm1 = vmand %vm10046_vm9, %vm10049_vm4  ;;  %v6830_v36 = vld [vmem:[%s10023_s3 + $0xb8] sm:$0xff]   ;;  %v6832_v39 = vld [vmem:[%s10023_s3 + $0x1c0] sm:$0xff]   ;;  %vm10054_vm4 = vcmp.ge.s32.totalorder %v7832_v19, 1 }
 0x125   : > { %v8080_v41 = vmax.f32 %v921_v14, %v922_v28  ;;  %v756_v42 = vadd.f32 %v7819_v1, %v755_v8  ;;  %v6645_v45 = vpop.f32.mrb[26].mxu0  ;;  %vm8123_vm9 = vmand %vm10047_vm10, %vm10048_vm0  ;;  %vm10053_vm0 = vcmp.ge.s32.totalorder %v7829_v16, 1  ;;  %v6834_v29 = vld [vmem:[%s10023_s3 + $0x230] sm:$0xff]  }
 0x126   : > { %v812_v51 = vmax.f32 %v764_v44, 0.0  ;;  %v767_v47 = vadd.f32 %v6645_v45, %v7819_v1  ;;  %v758_v43 = vpop.f32.mrb[27].mxu0  ;;  %vm6273_vm10 = vmpackc.low %vm8123_vm9, %vm8109_vm1  ;;  %v8157_v48 = vld [vmem:[#allocation4 + $0x27] sm:$0xff] }
 0x127   : > { %6471 = vmatpush3.bf16.msra.mxu1 %v6824_v7  ;;  %964 = vst [vmem:[#allocation4 + $0x30] sm:$0xff] %v8080_v41  ;;  %v810_v55 = vmax.f32 %v756_v42, 0.0  ;;  %v759_v56 = vadd.f32 %v7819_v1, %v758_v43  ;;  %v6271_v3 = vpack.c.bf16 %v8080_v41, %v8019_v52  ;;  %6653 = vmatpush3.bf16.msra.mxu0 %v6819_v30  ;;  %v8148_v42 = vld [vmem:[#allocation4 + $0x21] sm:$0xff]  ;;  %vm6276_vm1 = vmpackc.low %vm10054_vm4, %vm10053_vm0 }
 0x128   : > { %6472 = vmatprep.subr.bf16.mxu1 %v6826_v31  ;;  %844 = vst [vmem:[#allocation2 + $0xd0] sm:$0xff] %v812_v51  ;;  %v813_v46 = vmax.f32 %v767_v47, 0.0  ;;  %6654 = vmatprep.subr.bf16.mxu0 %v6822_v22  ;;  %v6828_v31 = vld [vmem:[%s10023_s3 + $0x220] sm:$0xff]   ;;  %vm8202_vm9 = vmand %vm1018_vm13, %vm10052_vm7 }
 0x129   : > { %v872_v23 = vld [vmem:[#allocation2 + $0xb0] ss:$2 sm:$0xff]  ;;  %v904_v26 = vld [vmem:[#allocation2 + $0xb1] ss:$2 sm:$0xff]  ;;  %842 = vst [vmem:[#allocation2 + $0xc0] sm:$0xff] %v810_v55  ;;  %v811_v27 = vmax.f32 %v759_v56, 0.0  ;;  %6272 = vmatprep.mubr.msk.bf16.mxu1 %vm8089_vm14, %v6271_v3  ;;  %vm8138_vm14 = vmpackc.low %vm10050_vm2, %vm10051_vm11 }
 0x12a   : > { %v924_v30 = vmax.f32 %v872_v23, %v904_v26  ;;  %v870_v33 = vld [vmem:[#allocation2 + $0xa0] ss:$2 sm:$0xff]  ;;  %v902_v34 = vld [vmem:[#allocation2 + $0xa1] ss:$2 sm:$0xff]  ;;  %845 = vst [vmem:[#allocation2 + $0xd8] sm:$0xff] %v813_v46  ;;  %v1219_v23 = vpack.c.bf16 %v8019_v52, %v7968_v10  ;;  %vm8216_vm13 = vmand %vm10053_vm0, %vm10055_vm8  ;;  %vm10102_vm2 = vcmp.ge.s32.totalorder %v7826_v13, 1 }
 0x12b   : > { %6473 = vmatpush3.bf16.msra.mxu1 %v6827_v50  ;;  %v923_v28 = vmax.f32 %v870_v33, %v902_v34  ;;  %843 = vst [vmem:[#allocation2 + $0xc8] sm:$0xff] %v811_v27  ;;  %v6648_v37 = vpop.f32.mrb[28].mxu0  ;;  %6655 = vmatpush3.bf16.msra.mxu0 %v6822_v22  ;;  %v6831_v26 = vld [vmem:[%s10023_s3 + $0x228] sm:$0xff]   ;;  %vm10105_vm11 = vcmp.ge.s32.totalorder %v7788_v60, 1 }
 0x12c   : > { %6474 = vmatprep.subr.bf16.mxu1 %v6829_v4  ;;  %v780_v7 = vadd.f32 %v6648_v37, %v7819_v1  ;;  %v771_v14 = vpop.f32.mrb[29].mxu0  ;;  %6656 = vmatprep.subr.bf16.mxu0 %v6825_v18  ;;  %vm8232_vm7 = vmand %vm10105_vm11, %vm1123_vm3  ;;  %vm10110_vm11 = vcmp.ge.s32.totalorder %v7782_v57, 1 }
 0x12d   : > { %v8145_v44 = vmax.f32 %v923_v28, %v924_v30  ;;  %v772_v8 = vadd.f32 %v7819_v1, %v771_v14  ;;  %v6649_v22 = vpop.f32.mrb[30].mxu0  ;;  %v6837_v28 = vld [vmem:[%s10023_s3 + $0x238] sm:$0xff]   ;;  %vm10137_vm15 = vmpackc.low %vm8232_vm7, %vm8202_vm9 }
 0x12e   : > { %v816_v45 = vmax.f32 %v780_v7, 0.0  ;;  %v783_v51 = vadd.f32 %v6649_v22, %v7819_v1  ;;  %v774_v47 = vpop.f32.mrb[31].mxu0  ;;  %v8155_v43 = vld [vmem:[#allocation4 + $0x29] sm:$0xff]  ;;  %v6343_v7 = vpack.c.bf16 %v8148_v42, %v8025_v6 }
 0x12f   : > { %v8159_v50 = vld [vmem:[#allocation4 + $0x2f] sm:$0xff]  ;;  %6475 = vmatpush3.bf16.msra.mxu1 %v6830_v36  ;;  %968 = vst [vmem:[#allocation4 + $0x38] sm:$0xff] %v8145_v44  ;;  %v814_v55 = vmax.f32 %v772_v8, 0.0  ;;  %v775_v56 = vadd.f32 %v7819_v1, %v774_v47  ;;  %v6310_v3 = vpack.c.bf16 %v8155_v43, %v8148_v42  ;;  %6657 = vmatpush3.bf16.msra.mxu0 %v6825_v18 }
 0x130   : > { %v8167_v4 = vpack.c.bf16 %v8159_v50, %v8157_v48  ;;  %6540 = vmatprep.subr.bf16.mxu1 %v6832_v39  ;;  %848 = vst [vmem:[#allocation2 + $0xf0] sm:$0xff] %v816_v45  ;;  %v817_v46 = vmax.f32 %v783_v51, 0.0  ;;  %6658 = vmatprep.subr.bf16.mxu0 %v6828_v31  ;;  %v6836_v36 = vld [vmem:[%s10023_s3 + $0x188] sm:$0xff]   ;;  %v6838_v6 = vld [vmem:[%s10023_s3 + $0x1d0] sm:$0xff]  }
 0x131   : > { %v876_v1 = vld [vmem:[#allocation2 + $0xd0] ss:$2 sm:$0xff]  ;;  %v908_v27 = vld [vmem:[#allocation2 + $0xd1] ss:$2 sm:$0xff]  ;;  %846 = vst [vmem:[#allocation2 + $0xe0] sm:$0xff] %v814_v55  ;;  %v815_v30 = vmax.f32 %v775_v56, 0.0  ;;  %6311 = vmatprep.mubr.msk.bf16.mxu0 %vm8138_vm14, %v6310_v3 }
 0x132   : > { %6275 = vmatmul.mubr.msk.bf16.gmra.mrb[8].mxu1 %vm6273_vm10, %v8167_v4  ;;  %v926_v10 = vmax.f32 %v876_v1, %v908_v27  ;;  %v874_v52 = vld [vmem:[#allocation2 + $0xc0] ss:$2 sm:$0xff]  ;;  %v906_v18 = vld [vmem:[#allocation2 + $0xc1] ss:$2 sm:$0xff]  ;;  %849 = vst [vmem:[#allocation2 + $0xf8] sm:$0xff] %v817_v46  ;;  %2200 = vmatmul.mubr.bf16.gmra.mrb[36].mxu0 %v1219_v23  ;;  %vm10057_vm10 = vcmp.lt.s32.totalorder %v8061_v63, 7  ;;  %v1220_v1 = vpack.c.bf16 %v8145_v44, %v8080_v41 }
 0x133   : > { %v925_v33 = vmax.f32 %v874_v52, %v906_v18  ;;  %847 = vst [vmem:[#allocation2 + $0xe8] sm:$0xff] %v815_v30  ;;  %6659 = vmatpush3.bf16.msra.mxu0 %v6828_v31  ;;  %vm10056_vm14 = vcmp.lt.s32.totalorder %v8065_v20, 7  ;;  %v6283_v27 = vpack.c.bf16 %v8027_v11, %v7925_v35  ;;  %v6833_v11 = vld [vmem:[%s10023_s3 + $0x180] sm:$0xff]   ;;  %v1114_v52 = vld [vmem:[#allocation4 + $0x9] sm:$0xff] }
 0x134   : > { %6660 = vmatprep.subr.bf16.mxu0 %v6831_v26  ;;  %vm8240_vm0 = vmpackc.low %vm10056_vm14, %vm10057_vm10  ;;  %v6844_v30 = vld [vmem:[%s10023_s3 + $0x1e8] sm:$0xff]   ;;  %v6892_v42 = vld [vmem:[%s10025_s5 + $0xe0] ss:$16 sps:$4 sm:$0xff]  }
 0x135   : > { %v8187_v17 = vmax.f32 %v925_v33, %v926_v10  ;;  %v6286_v33 = vpack.c.bf16 %v8022_v2, %v1114_v52  ;;  %v1324_v52 = vld [vmem:[#allocation4 + $0x28] sm:$0xff]  ;;  %v6880_v2 = vld [vmem:[%s10025_s5 + $0xa0] ss:$16 sps:$4 sm:$0xff]  }
 0x136   : > { %v1230_v55 = vld [vmem:[#allocation4 + $0x31] sm:$0xff] }
 0x137   : > { %972 = vst [vmem:[#allocation4 + $0x40] sm:$0xff] %v8187_v17  ;;  %v8196_v34 = vpack.c.bf16 %v8187_v17, %v8145_v44  ;;  %6661 = vmatpush3.bf16.msra.mxu0 %v6831_v26  ;;  %v8250_v3 = vld [vmem:[#allocation4 + $0x37] sm:$0xff] }
 0x138   : > { %6662 = vmatprep.subr.bf16.mxu0 %v6834_v29  ;;  %v6295_v8 = vpack.c.bf16 %v8250_v3, %v8159_v50  ;;  %v6842_v50 = vld [vmem:[%s10023_s3 + $0x1e0] sm:$0xff]   ;;  %v6907_v51 = vld [vmem:[%s10025_s5 + $0x128] ss:$16 sps:$4 sm:$0xff]  }
 0x139   : > { %v880_v37 = vld [vmem:[#allocation2 + $0xf0] ss:$2 sm:$0xff]  ;;  %v912_v39 = vld [vmem:[#allocation2 + $0xf1] ss:$2 sm:$0xff]  ;;  %6278 = vmatprep.mubr.msk.bf16.mxu1 %vm6276_vm1, %v8196_v34  ;;  %vm8224_vm1 = vmand %vm10054_vm4, %vm10102_vm2  ;;  %vm10111_vm4 = vcmp.ge.s32.totalorder %v7784_v58, 1 }
 0x13a   : > { %v928_v14 = vmax.f32 %v880_v37, %v912_v39  ;;  %v878_v40 = vld [vmem:[#allocation2 + $0xe0] ss:$2 sm:$0xff]  ;;  %v910_v31 = vld [vmem:[#allocation2 + $0xe1] ss:$2 sm:$0xff]  ;;  %vm6279_vm2 = vmpackc.low %vm8224_vm1, %vm8216_vm13  ;;  %vm10058_vm1 = vcmp.lt.s32.totalorder %v7823_v9, 7  ;;  %vm10116_vm13 = vcmp.lt.s32.totalorder %v7788_v60, 7 }
 0x13b   : > { %v927_v45 = vmax.f32 %v878_v40, %v910_v31  ;;  %6663 = vmatpush3.bf16.msra.mxu0 %v6834_v29  ;;  %vm6282_vm8 = vmpackc.low %vm10111_vm4, %vm10110_vm11  ;;  %vm10112_vm4 = vcmp.lt.s32.totalorder %v7782_v57, 7  ;;  %vm10113_vm11 = vcmp.lt.s32.totalorder %v7786_v59, 7  ;;  %v6835_v37 = vld [vmem:[%s10023_s3 + $0x1c8] sm:$0xff]   ;;  %v6346_v40 = vpack.c.bf16 %v1230_v55, %v8155_v43  ;;  %v6840_v31 = vld [vmem:[%s10023_s3 + $0x1d8] sm:$0xff]  }
 0x13c   : > { %6664 = vmatprep.subr.bf16.mxu0 %v6837_v28  ;;  %vm8280_vm10 = vmand %vm10113_vm11, %vm10112_vm4  ;;  %vm10122_vm4 = vcmp.ge.s32.totalorder %v7890_v0, 1  ;;  %v6841_v43 = vld [vmem:[%s10023_s3 + $0x198] sm:$0xff]   ;;  %v6845_v57 = vld [vmem:[%s10023_s3 + $0x1a8] sm:$0xff]  }
 0x13d   : > { %v8244_v47 = vmax.f32 %v927_v45, %v928_v14  ;;  %vm8288_vm14 = vmand %vm10116_vm13, %vm1123_vm3  ;;  %vm10130_vm3 = vcmp.lt.s32.totalorder %v7893_v5, 7  ;;  %v1323_v58 = vld [vmem:[#allocation4 + $0x20] sm:$0xff]  ;;  %v6877_v29 = vld [vmem:[%s10025_s5 + $0x88] ss:$16 sps:$4 sm:$0xff]  }
 0x13e   : > { %v1231_v56 = vld [vmem:[#allocation4 + $0x39] sm:$0xff]  ;;  %vm10142_vm7 = vmpackc.low %vm8288_vm14, %vm8280_vm10  ;;  %vm10146_vm10 = vcmp.lt.s32.totalorder %v8065_v20, 7 }
 0x13f   : > { %v8252_v46 = vld [vmem:[#allocation4 + $0x3f] sm:$0xff]  ;;  %976 = vst [vmem:[#allocation4 + $0x48] sm:$0xff] %v8244_v47  ;;  %v6313_v23 = vpack.c.bf16 %v1231_v56, %v1230_v55  ;;  %6665 = vmatpush3.bf16.msra.mxu0 %v6837_v28  ;;  %v1221_v28 = vpack.c.bf16 %v8244_v47, %v8187_v17  ;;  %v6289_v17 = vpack.c.bf16 %v8157_v48, %v8029_v12  ;;  %v6839_v48 = vld [vmem:[%s10023_s3 + $0x190] sm:$0xff]   ;;  %v6883_v39 = vld [vmem:[%s10025_s5 + $0xa8] ss:$16 sps:$4 sm:$0xff]  }
 0x140   : > { %v8257_v26 = vpack.c.bf16 %v8252_v46, %v8250_v3  ;;  %v1369_v55 = vld [vmem:[#allocation4 + $0x51] sm:$0xff]  ;;  %v6897_v12 = vld [vmem:[%s10025_s5 + $0xec] ss:$16 sps:$4 sm:$0xff]  }
 0x141   : > { %6314 = vmatprep.mubr.msk.bf16.mxu0 %vm8240_vm0, %v6313_v23  ;;  %vm10119_vm0 = vcmp.lt.s32.totalorder %v7826_v13, 7  ;;  %v6886_v14 = vld [vmem:[%s10025_s5 + $0xc0] ss:$16 sps:$4 sm:$0xff]   ;;  %v6909_v45 = vld [vmem:[%s10025_s5 + $0x12c] ss:$16 sps:$4 sm:$0xff]  }
 0x142   : > { %6281 = vmatmul.mubr.msk.bf16.gmra.mrb[12].mxu1 %vm6279_vm2, %v8257_v26  ;;  %2208 = vmatmul.mubr.bf16.gmra.mrb[40].mxu0 %v1220_v1  ;;  %vm8296_vm2 = vmpackc.low %vm10119_vm0, %vm10058_vm1  ;;  %vm10131_vm0 = vcmp.ge.s32.totalorder %v7883_v49, 1  ;;  %v6843_v1 = vld [vmem:[%s10023_s3 + $0x1a0] sm:$0xff]   ;;  %v6913_v23 = vld [vmem:[%s10025_s5 + $0x148] ss:$16 sps:$4 sm:$0xff]  }
 0x143   : > { %6284 = vmatprep.mubr.msk.bf16.mxu1 %vm6282_vm8, %v6283_v27  ;;  %vm10123_vm8 = vcmp.ge.s32.totalorder %v7893_v5, 1  ;;  %vm8338_vm13 = vmand %vm10131_vm0, %vm10130_vm3  ;;  %vm1278_vm3 = vcmp.lt.s32.totalorder %v8005_v32, 7  ;;  %vm10138_vm0 = vcmp.lt.s32.totalorder %v7893_v5, 7 }
 0x144   : > { %vm8304_vm11 = vmpackc.low %vm10123_vm8, %vm10122_vm4  ;;  %vm10126_vm4 = vcmp.lt.s32.totalorder %v7890_v0, 7  ;;  %vm10127_vm8 = vcmp.ge.s32.totalorder %v7873_v38, 1 }
 0x145   : > { %vm8325_vm1 = vmand %vm10127_vm8, %vm10126_vm4  ;;  %vm10134_vm8 = vcmp.lt.s32.totalorder %v7873_v38, 7 }
 0x146   : > { %v1232_v44 = vld [vmem:[#allocation4 + $0x41] sm:$0xff]  ;;  %v8316_v10 = vld [vmem:[#allocation4 + $0x49] sm:$0xff]  ;;  %vm8346_vm12 = vmand %vm10134_vm8, %vm10126_vm4  ;;  %vm10139_vm4 = vcmp.lt.s32.totalorder %v7883_v49, 7 }
 0x147   : > { %v6316_v18 = vpack.c.bf16 %v8316_v10, %v1232_v44  ;;  %vm8366_vm8 = vmand %vm10139_vm4, %vm10138_vm0  ;;  %vm10150_vm0 = vcmp.ge.s32.totalorder %v8065_v20, 1  ;;  %v6349_v22 = vpack.c.bf16 %v1232_v44, %v1231_v56  ;;  %v1177_v3 = vld [vmem:[#allocation4 + $0x47] sm:$0xff]  ;;  %v6352_v27 = vpack.c.bf16 %v1369_v55, %v8316_v10  ;;  %v6849_v10 = vld [vmem:[%s10023_s3 + $0x1b8] sm:$0xff]  }
 0x148   : > { %vm6291_vm9 = vmpackc.low %vm8338_vm13, %vm8325_vm1  ;;  %vm10149_vm13 = vcmp.ge.s32.totalorder %v8061_v63, 1  ;;  %v6301_v35 = vpack.c.bf16 %v1177_v3, %v8252_v46  ;;  %v6846_v46 = vld [vmem:[%s10023_s3 + $0x1f0] sm:$0xff]   ;;  %v6915_v56 = vld [vmem:[%s10025_s5 + $0x14c] ss:$16 sps:$4 sm:$0xff]  }
 0x149   : > { %6317 = vmatprep.mubr.msk.bf16.mxu0 %vm8296_vm2, %v6316_v18  ;;  %vm10143_vm2 = vcmp.lt.s32.totalorder %v8061_v63, 7  ;;  %vm6345_vm1 = vmpackc.low %vm8366_vm8, %vm8346_vm12  ;;  %vm10152_vm8 = vcmp.ge.s32.totalorder %v8005_v32, 1  ;;  %v1273_v62 = vld [vmem:[#allocation4 + $0x4f] sm:$0xff]  ;;  %v6859_v32 = vld [vmem:[%s10025_s5 + $0x28] ss:$16 sps:$4 sm:$0xff]  }
 0x14a   : > { %6287 = vmatmul.mubr.msk.bf16.vlgmr.msra.gmra.mrb[16].mxu1 %vm10137_vm15, %v6286_v33  ;;  %2216 = vmatmul.mubr.bf16.gmra.mrb[44].mxu0 %v1221_v28  ;;  %vm1279_vm15 = vcmp.lt.s32.totalorder %v8033_v15, 7  ;;  %vm6294_vm4 = vmpackc.low %vm10150_vm0, %vm10149_vm13  ;;  %vm10163_vm0 = vcmp.lt.s32.totalorder %v7826_v13, 7  ;;  %v6879_v18 = vld [vmem:[%s10025_s5 + $0x8c] ss:$16 sps:$4 sm:$0xff]   ;;  %v6874_v33 = vld [vmem:[%s10025_s5 + $0x80] ss:$16 sps:$4 sm:$0xff]  }
 0x14b   : > { %6541 = vmatpush3.bf16.msra.mxu1 %v6833_v11  ;;  %6290 = vmatprep.mubr.msk.bf16.mxu1 %vm8304_vm11, %v6289_v17  ;;  %vm8392_vm11 = vmand %vm1278_vm3, %vm10143_vm2  ;;  %v1322_v11 = vld [vmem:[#allocation4 + $0x18] sm:$0xff]  ;;  %v6882_v28 = vld [vmem:[%s10025_s5 + $0xa4] ss:$16 sps:$4 sm:$0xff]  }
 0x14c   : > { %6666 = vmatprep.mubr.msk.bf16.mxu0 %vm10142_vm7, %v6343_v7  ;;  %6542 = vmatprep.subr.bf16.mxu1 %v6835_v37  ;;  %vm8400_vm14 = vmand %vm1279_vm15, %vm10146_vm10  ;;  %v6319_v44 = vpack.c.bf16 %v1323_v58, %v1322_v11  ;;  %v6885_v37 = vld [vmem:[%s10025_s5 + $0xac] ss:$16 sps:$4 sm:$0xff]   ;;  %v6888_v17 = vld [vmem:[%s10025_s5 + $0xc4] ss:$16 sps:$4 sm:$0xff]  }
 0x14d   : > { %vm6348_vm7 = vmpackc.low %vm8400_vm14, %vm8392_vm11  ;;  %vm10156_vm11 = vcmp.ge.s32.totalorder %v8033_v15, 1  ;;  %vm10159_vm14 = vcmp.lt.s32.totalorder %v7823_v9, 7  ;;  %v6864_v15 = vld [vmem:[%s10025_s5 + $0x44] ss:$16 sps:$4 sm:$0xff]  }
 0x14e   : > { %vm10151_vm12 = vmmov %vm10143_vm2  ;;  %v6912_v55 = vld [vmem:[%s10025_s5 + $0x144] ss:$16 sps:$4 sm:$0xff]  }
 0x14f   : > { %6543 = vmatpush3.bf16.msra.mxu1 %v6836_v36  ;;  %vm8432_vm2 = vmand %vm10152_vm8, %vm10151_vm12  ;;  %vm10167_vm8 = vcmp.ge.s32.totalorder %v7823_v9, 1  ;;  %v6847_v9 = vld [vmem:[%s10023_s3 + $0x1b0] sm:$0xff]   ;;  %v6889_v36 = vld [vmem:[%s10025_s5 + $0xc8] ss:$16 sps:$4 sm:$0xff]  }
 0x150   : > { %6544 = vmatprep.subr.bf16.mxu1 %v6838_v6  ;;  %v6894_v6 = vld [vmem:[%s10025_s5 + $0xe4] ss:$16 sps:$4 sm:$0xff]  }
 0x151   : > { %v6924_v58 = vld [vmem:[%s10025_s5 + $0x184] ss:$16 sps:$4 sm:$0xff]  }
 0x152   : > { %6293 = vmatmul.mubr.msk.bf16.gmra.mrb[20].mxu1 %vm6291_vm9, %v6343_v7  ;;  %6667 = vmatmul.mubr.msk.bf16.vlgmr.msra.gmra.mrb[48].mxu0 %vm6345_vm1, %v6346_v40  ;;  %vm10155_vm9 = vmmov %vm10146_vm10  ;;  %vm10160_vm1 = vcmp.lt.s32.totalorder %v7829_v16, 7  ;;  %v6891_v7 = vld [vmem:[%s10025_s5 + $0xcc] ss:$16 sps:$4 sm:$0xff]  }
 0x153   : > { %6545 = vmatpush3.bf16.msra.mxu1 %v6839_v48  ;;  %6296 = vmatprep.mubr.msk.bf16.mxu1 %vm6294_vm4, %v6295_v8  ;;  %vm8443_vm10 = vmand %vm10156_vm11, %vm10155_vm9  ;;  %vm10164_vm4 = vcmp.lt.s32.totalorder %v7832_v19, 7  ;;  %vm10168_vm9 = vcmp.ge.s32.totalorder %v7826_v13, 1  ;;  %v6848_v13 = vld [vmem:[%s10023_s3 + $0x1f8] sm:$0xff]   ;;  %v6898_v8 = vld [vmem:[%s10025_s5 + $0x100] ss:$16 sps:$4 sm:$0xff]  }
 0x154   : > { %6670 = vmatprep.mubr.msk.bf16.mxu0 %vm6348_vm7, %v6349_v22  ;;  %6546 = vmatprep.subr.bf16.mxu1 %v6840_v31  ;;  %vm8451_vm13 = vmand %vm10160_vm1, %vm10159_vm14  ;;  %v6895_v48 = vld [vmem:[%s10025_s5 + $0xe8] ss:$16 sps:$4 sm:$0xff]   ;;  %v6903_v31 = vld [vmem:[%s10025_s5 + $0x10c] ss:$16 sps:$4 sm:$0xff]  }
 0x155   : > { %vm8459_vm7 = vmand %vm10164_vm4, %vm10163_vm0 }
 0x156   : > { %vm6297_vm12 = vmpackc.low %vm8443_vm10, %vm8432_vm2 }
 0x157   : > { %6547 = vmatpush3.bf16.msra.mxu1 %v6841_v43  ;;  %vm6300_vm11 = vmpackc.low %vm10168_vm9, %vm10167_vm8  ;;  %vm10174_vm8 = vcmp.lt.s32.totalorder %v7788_v60, 7  ;;  %v1329_v60 = vld [vmem:[#allocation4 + $0x50] sm:$0xff] }
 0x158   : > { %6548 = vmatprep.subr.bf16.mxu1 %v6842_v50  ;;  %vm6351_vm2 = vmpackc.low %vm8459_vm7, %vm8451_vm13  ;;  %v6337_v61 = vpack.c.bf16 %v1329_v60, %v8244_v47  ;;  %v6871_v47 = vld [vmem:[%s10025_s5 + $0x68] ss:$16 sps:$4 sm:$0xff]   ;;  %v6906_v43 = vld [vmem:[%s10025_s5 + $0x124] ss:$16 sps:$4 sm:$0xff]  }
 0x159   : > { %vm10169_vm10 = vmmov %vm10159_vm14  ;;  %vm10170_vm14 = vcmp.ge.s32.totalorder %v7829_v16, 1  ;;  %v6904_v50 = vld [vmem:[%s10025_s5 + $0x120] ss:$16 sps:$4 sm:$0xff]   ;;  %v6930_v60 = vld [vmem:[%s10025_s5 + $0x1a4] ss:$16 sps:$4 sm:$0xff]  }
 0x15a   : > { %6299 = vmatmul.mubr.msk.bf16.gmra.mrb[24].mxu1 %vm6297_vm12, %v6346_v40  ;;  %vm1136_vm1 = vmand %vm10170_vm14, %vm10169_vm10  ;;  %6671 = vmatmul.mubr.msk.bf16.gmra.mrb[52].mxu0 %vm6351_vm2, %v6352_v27  ;;  %vm10173_vm12 = vcmp.lt.s32.totalorder %v7786_v59, 7  ;;  %vm10176_vm2 = vcmp.lt.s32.totalorder %v7883_v49, 7  ;;  %v6325_v59 = vpack.c.bf16 %v8080_v41, %v1324_v52  ;;  %v6850_v49 = vld [vmem:[%s10025_s5] ss:$16 sps:$4 sm:$0xff]   ;;  %v6870_v41 = vld [vmem:[%s10025_s5 + $0x64] ss:$16 sps:$4 sm:$0xff]  }
 0x15b   : > { %6549 = vmatpush3.bf16.msra.mxu1 %v6843_v1  ;;  %6302 = vmatprep.mubr.msk.bf16.mxu1 %vm6300_vm11, %v6301_v35  ;;  %vm10171_vm13 = vmmov %vm10163_vm0  ;;  %vm10172_vm0 = vcmp.ge.s32.totalorder %v7832_v19, 1  ;;  %vm10175_vm11 = vcmp.lt.s32.totalorder %v7873_v38, 7  ;;  %v6340_v38 = vpack.c.bf16 %v1273_v62, %v1177_v3  ;;  %v6900_v40 = vld [vmem:[%s10025_s5 + $0x104] ss:$16 sps:$4 sm:$0xff]   ;;  %v6910_v3 = vld [vmem:[%s10025_s5 + $0x140] ss:$16 sps:$4 sm:$0xff]  }
 0x15c   : > { %6550 = vmatprep.subr.bf16.mxu1 %v6844_v30  ;;  %vm1137_vm4 = vmand %vm10172_vm0, %vm10171_vm13  ;;  %v6918_v1 = vld [vmem:[%s10025_s5 + $0x164] ss:$16 sps:$4 sm:$0xff]   ;;  %v6921_v27 = vld [vmem:[%s10025_s5 + $0x16c] ss:$16 sps:$4 sm:$0xff]  }
 0x15d   : > { %vm6303_vm7 = vmpackc.low %vm1137_vm4, %vm1136_vm1  ;;  %vm10178_vm1 = vcmp.ge.s32.totalorder %v7890_v0, 1  ;;  %vm10180_vm4 = vcmp.ge.s32.totalorder %v7893_v5, 1  ;;  %v6861_v0 = vld [vmem:[%s10025_s5 + $0x2c] ss:$16 sps:$4 sm:$0xff]   ;;  %v6856_v5 = vld [vmem:[%s10025_s5 + $0x20] ss:$16 sps:$4 sm:$0xff]  }
 0x15e   : > { %vm6318_vm9 = vmpackc.low %vm10174_vm8, %vm10173_vm12  ;;  %v6916_v30 = vld [vmem:[%s10025_s5 + $0x160] ss:$16 sps:$4 sm:$0xff]   ;;  %v6919_v35 = vld [vmem:[%s10025_s5 + $0x168] ss:$16 sps:$4 sm:$0xff]  }
 0x15f   : > { %6551 = vmatpush3.bf16.msra.mxu1 %v6845_v57  ;;  %vm6324_vm10 = vmpackc.low %vm10176_vm2, %vm10175_vm11  ;;  %v6928_v62 = vld [vmem:[%s10025_s5 + $0x1a0] ss:$16 sps:$4 sm:$0xff]  }
 0x160   : > { %6552 = vmatprep.subr.bf16.mxu1 %v6846_v46  ;;  %vm10177_vm14 = vmpackc.low %vm7806_vm6, %vm7798_vm5  ;;  %vm10182_vm5 = vcmp.ge.s32.totalorder %v8061_v63, 1  ;;  %v6862_v63 = vld [vmem:[%s10025_s5 + $0x40] ss:$16 sps:$4 sm:$0xff]  }
 0x161   : > { %vm10179_vm13 = vmmov %vm10175_vm11  ;;  %vm10183_vm11 = vcmp.ge.s32.totalorder %v8065_v20, 1  ;;  %v6865_v20 = vld [vmem:[%s10025_s5 + $0x48] ss:$16 sps:$4 sm:$0xff]  }
 0x162   : > { %6305 = vmatmul.mubr.msk.bf16.gmra.mrb[28].mxu1 %vm6303_vm7, %v6349_v22  ;;  %vm1284_vm0 = vmand %vm10179_vm13, %vm10178_vm1  ;;  %vm10185_vm1 = vcmp.lt.s32.totalorder %v7832_v19, 7  ;;  %v6855_v19 = vld [vmem:[%s10025_s5 + $0xc] ss:$16 sps:$4 sm:$0xff]   ;;  %v6901_v22 = vld [vmem:[%s10025_s5 + $0x108] ss:$16 sps:$4 sm:$0xff]  }
 0x163   : > { %6553 = vmatpush3.bf16.msra.mxu1 %v6847_v9  ;;  %6320 = vmatprep.mubr.msk.bf16.mxu1 %vm6318_vm9, %v6319_v44  ;;  %vm10181_vm7 = vmmov %vm10176_vm2  ;;  %v6927_v9 = vld [vmem:[%s10025_s5 + $0x18c] ss:$16 sps:$4 sm:$0xff]   ;;  %v6922_v44 = vld [vmem:[%s10025_s5 + $0x180] ss:$16 sps:$4 sm:$0xff]  }
 0x164   : > { %6554 = vmatprep.subr.bf16.mxu1 %v6848_v13  ;;  %vm1285_vm12 = vmand %vm10181_vm7, %vm10180_vm4  ;;  %4489 = vmatprep.subr.bf16.mxu0 %v6855_v19  ;;  %v6939_v19 = vld [vmem:[%s10025_s5 + $0x1cc] ss:$16 sps:$4 sm:$0xff]  }
 0x165   : > { %vm6327_vm8 = vmpackc.low %vm1285_vm12, %vm1284_vm0  ;;  %vm10187_vm0 = vnez %v10073_v21  ;;  %v6858_v21 = vld [vmem:[%s10025_s5 + $0x24] ss:$16 sps:$4 sm:$0xff]  }
 0x166   : > { %vm6330_vm9 = vmpackc.low %vm1279_vm15, %vm1278_vm3 }
 0x167   : > { %6555 = vmatpush3.bf16.msra.mxu1 %v6849_v10  ;;  %vm1286_vm6 = vmand %vm1278_vm3, %vm10182_vm5  ;;  %vm10186_vm3 = vnez %v10075_v24  ;;  %v6853_v24 = vld [vmem:[%s10025_s5 + $0x8] ss:$16 sps:$4 sm:$0xff]  }
 0x168   : > { %vm1287_vm2 = vmand %vm1279_vm15, %vm10183_vm11  ;;  %4490 = vmatpush1.bf16.msra.mxu0 %v6853_v24  ;;  %v6925_v10 = vld [vmem:[%s10025_s5 + $0x188] ss:$16 sps:$4 sm:$0xff]  }
 0x169   : > { %vm10188_vm4 = vmpackc.low %vm10186_vm3, %vm10187_vm0  ;;  %4491 = vmatprep.subr.bf16.mxu0 %v6861_v0  ;;  %v6937_v24 = vld [vmem:[%s10025_s5 + $0x1c8] ss:$16 sps:$4 sm:$0xff]   ;;  %v6945_v0 = vld [vmem:[%s10025_s5 + $0x1ec] ss:$16 sps:$4 sm:$0xff]  }
 0x16a   : > { %6323 = vmatmul.mubr.msk.bf16.vlgmr.msra.gmra.mrb[32].mxu1 %vm10177_vm14, %v8041_v25  ;;  %vm10184_vm14 = vcmp.lt.s32.totalorder %v7829_v16, 7  ;;  %v6852_v16 = vld [vmem:[%s10025_s5 + $0x4] ss:$16 sps:$4 sm:$0xff]   ;;  %v6867_v25 = vld [vmem:[%s10025_s5 + $0x4c] ss:$16 sps:$4 sm:$0xff]  }
 0x16b   : > { %6326 = vmatprep.mubr.msk.bf16.mxu1 %vm6324_vm10, %v6325_v59  ;;  %vm6333_vm10 = vmpackc.low %vm1287_vm2, %vm1286_vm6  ;;  %4274 = vmatprep.subr.bf16.mxu1 %v6852_v16  ;;  %v6936_v16 = vld [vmem:[%s10025_s5 + $0x1c4] ss:$16 sps:$4 sm:$0xff]  }
 0x16c   : > { %vm6336_vm13 = vmpackc.low %vm10185_vm1, %vm10184_vm14  ;;  %4275 = vmatpush1.bf16.msra.mxu1 %v6850_v49  ;;  %4492 = vmatpush1.bf16.msra.mxu0 %v6859_v32  ;;  %v6934_v49 = vld [vmem:[%s10025_s5 + $0x1c0] ss:$16 sps:$4 sm:$0xff]   ;;  %v6943_v32 = vld [vmem:[%s10025_s5 + $0x1e8] ss:$16 sps:$4 sm:$0xff]  }
 0x16d   : > { %4276 = vmatprep.subr.bf16.mxu1 %v6858_v21  ;;  %4493 = vmatprep.subr.bf16.mxu0 %v6867_v25  ;;  %v6942_v21 = vld [vmem:[%s10025_s5 + $0x1e4] ss:$16 sps:$4 sm:$0xff]  }
 0x170   : > { %4277 = vmatpush1.bf16.msra.mxu1 %v6856_v5  ;;  %4494 = vmatpush1.bf16.msra.mxu0 %v6865_v20  ;;  %v6940_v5 = vld [vmem:[%s10025_s5 + $0x1e0] ss:$16 sps:$4 sm:$0xff]   ;;  %v6948_v20 = vld [vmem:[%s10025_s5 + $0x204] ss:$16 sps:$4 sm:$0xff]  }
 0x171   : > { %4278 = vmatprep.subr.bf16.mxu1 %v6864_v15 }
 0x172   : > { %6329 = vmatmul.mubr.msk.bf16.gmra.mrb[36].mxu1 %vm6327_vm8, %v8167_v4  ;;  %v6873_v4 = vld [vmem:[%s10025_s5 + $0x6c] ss:$16 sps:$4 sm:$0xff]  }
 0x173   : > { %6332 = vmatprep.mubr.msk.bf16.mxu1 %vm6330_vm9, %v8196_v34  ;;  %v6868_v34 = vld [vmem:[%s10025_s5 + $0x60] ss:$16 sps:$4 sm:$0xff]   ;;  %4495 = vmatprep.subr.bf16.mxu0 %v6873_v4 }
 0x174   : > { %4279 = vmatpush1.bf16.msra.mxu1 %v6862_v63  ;;  %4496 = vmatpush1.bf16.msra.mxu0 %v6871_v47 }
 0x175   : > { %4280 = vmatprep.subr.bf16.mxu1 %v6870_v41  ;;  %4497 = vmatprep.subr.bf16.mxu0 %v6879_v18  ;;  %v6951_v41 = vld [vmem:[%s10025_s5 + $0x20c] ss:$16 sps:$4 sm:$0xff]  }
 0x178   : > { %4281 = vmatpush1.bf16.msra.mxu1 %v6868_v34  ;;  %4498 = vmatpush1.bf16.msra.mxu0 %v6877_v29 }
 0x179   : > { %4499 = vmatprep.subr.bf16.mxu0 %v6885_v37 }
 0x17a   : > { %6335 = vmatmul.mubr.msk.bf16.gmra.mrb[40].mxu1 %vm6333_vm10, %v8257_v26  ;;  %v6876_v26 = vld [vmem:[%s10025_s5 + $0x84] ss:$16 sps:$4 sm:$0xff]  }
 0x17b   : > { %6338 = vmatprep.mubr.msk.bf16.mxu1 %vm6336_vm13, %v6337_v61  ;;  %4282 = vmatprep.subr.bf16.mxu1 %v6876_v26  ;;  %v6933_v61 = vld [vmem:[%s10025_s5 + $0x1ac] ss:$16 sps:$4 sm:$0xff]  }
 0x17c   : > { %4283 = vmatpush1.bf16.msra.mxu1 %v6874_v33  ;;  %4500 = vmatpush1.bf16.msra.mxu0 %v6883_v39 }
 0x17d   : > { %4284 = vmatprep.subr.bf16.mxu1 %v6882_v28  ;;  %4501 = vmatprep.subr.bf16.mxu0 %v6891_v7 }
 0x180   : > { %4285 = vmatpush1.bf16.msra.mxu1 %v6880_v2  ;;  %4502 = vmatpush1.bf16.msra.mxu0 %v6889_v36 }
 0x181   : > { %4286 = vmatprep.subr.bf16.mxu1 %v6888_v17  ;;  %4503 = vmatprep.subr.bf16.mxu0 %v6897_v12 }
 0x182   : > { %6341 = vmatmul.mubr.msk.bf16.gmra.mrb[44].mxu1 %vm10188_vm4, %v6340_v38  ;;  %v6931_v38 = vld [vmem:[%s10025_s5 + $0x1a8] ss:$16 sps:$4 sm:$0xff]  }
 0x184   : > { %4287 = vmatpush1.bf16.msra.mxu1 %v6886_v14  ;;  %4504 = vmatpush1.bf16.msra.mxu0 %v6895_v48 }
 0x185   : > { %4288 = vmatprep.subr.bf16.mxu1 %v6894_v6  ;;  %4505 = vmatprep.subr.bf16.mxu0 %v6903_v31 }
 0x188   : > { %4289 = vmatpush1.bf16.msra.mxu1 %v6892_v42  ;;  %4506 = vmatpush1.bf16.msra.mxu0 %v6901_v22 }
 0x189   : > { %4290 = vmatprep.subr.bf16.mxu1 %v6900_v40  ;;  %4507 = vmatprep.subr.bf16.mxu0 %v6909_v45 }
 0x18c   : > { %4291 = vmatpush1.bf16.msra.mxu1 %v6898_v8  ;;  %4508 = vmatpush1.bf16.msra.mxu0 %v6907_v51 }
 0x18d   : > { %4292 = vmatprep.subr.bf16.mxu1 %v6906_v43  ;;  %4509 = vmatprep.subr.bf16.mxu0 %v6915_v56 }
 0x190   : > { %4293 = vmatpush1.bf16.msra.mxu1 %v6904_v50  ;;  %4510 = vmatpush1.bf16.msra.mxu0 %v6913_v23 }
 0x191   : > { %4294 = vmatprep.subr.bf16.mxu1 %v6912_v55  ;;  %4511 = vmatprep.subr.bf16.mxu0 %v6921_v27 }
 0x194   : > { %4295 = vmatpush1.bf16.msra.mxu1 %v6910_v3  ;;  %4512 = vmatpush1.bf16.msra.mxu0 %v6919_v35 }
 0x195   : > { %4296 = vmatprep.subr.bf16.mxu1 %v6918_v1  ;;  %4513 = vmatprep.subr.bf16.mxu0 %v6927_v9 }
 0x198   : > { %4297 = vmatpush1.bf16.msra.mxu1 %v6916_v30  ;;  %4514 = vmatpush1.bf16.msra.mxu0 %v6925_v10  ;;  %v8763_v30 = vld [vmem:[%s10024_s4] ss:$0 sm:$0xff] }
 0x199   : > { %4298 = vmatprep.subr.bf16.mxu1 %v6924_v58  ;;  %4515 = vmatprep.subr.bf16.mxu0 %v6933_v61 }
 0x19c   : > { %4299 = vmatpush1.bf16.msra.mxu1 %v6922_v44  ;;  %4516 = vmatpush1.bf16.msra.mxu0 %v6931_v38 }
 0x19d   : > { %4300 = vmatprep.subr.bf16.mxu1 %v6930_v60  ;;  %4517 = vmatprep.subr.bf16.mxu0 %v6939_v19 }
 0x1a0   : > { %4301 = vmatpush1.bf16.msra.mxu1 %v6928_v62  ;;  %4518 = vmatpush1.bf16.msra.mxu0 %v6937_v24 }
 0x1a1   : > { %4302 = vmatprep.subr.bf16.mxu1 %v6936_v16  ;;  %4519 = vmatprep.subr.bf16.mxu0 %v6945_v0 }
 0x1a4   : > { %4303 = vmatpush1.bf16.msra.mxu1 %v6934_v49  ;;  %4520 = vmatpush1.bf16.msra.mxu0 %v6943_v32 }
 0x1a5   : > { %4304 = vmatprep.subr.bf16.mxu1 %v6942_v21  ;;  %4532 = vmatprep.subr.bf16.mxu0 %v6951_v41 }
 0x1a8   : > { %4305 = vmatpush1.bf16.msra.mxu1 %v6940_v5 }
 0x1a9   : > { %4317 = vmatprep.subr.bf16.mxu1 %v6948_v20 }
 0x1e4   : > { %v6436_v57 = vpop.f32.mrb[0].mxu1 }
 0x1e5   : > { %v6437_v46 = vpop.f32.mrb[1].mxu1 }
 0x1e6   : > { %v8704_v11 = vadd.f32 %v6437_v46, %v6436_v57  ;;  %v6439_v13 = vpop.f32.mrb[2].mxu1 }
 0x1e7   : > { %v6440_v52 = vpop.f32.mrb[3].mxu1 }
 0x1e8   : > { %v8712_v59 = vadd.f32 %v6440_v52, %v6439_v13  ;;  %v2064_v58 = vadd.f32 %v8704_v11, %v8763_v30 }
 0x1ea   : > { %v2067_v61 = vadd.f32 %v8712_v59, %v8763_v30 }
 0x1f5   : > { %v6442_v15 = vpop.f32.mrb[4].mxu1  ;;  %v6516_v25 = vpop.f32.mrb[32].mxu0 }
 0x1f6   : > { %v6443_v63 = vpop.f32.mrb[5].mxu1  ;;  %v6517_v34 = vpop.f32.mrb[33].mxu0 }
 0x1f7   : > { %v6444_v4 = vadd.f32 %v6443_v63, %v6442_v15  ;;  %v6445_v47 = vpop.f32.mrb[6].mxu1  ;;  %v6518_v26 = vadd.f32 %v6517_v34, %v6516_v25  ;;  %v6519_v18 = vpop.f32.mrb[34].mxu0 }
 0x1f8   : > { %v6446_v33 = vpop.f32.mrb[7].mxu1  ;;  %v6520_v28 = vpop.f32.mrb[35].mxu0 }
 0x1f9   : > { %v6447_v29 = vadd.f32 %v6446_v33, %v6445_v47  ;;  %v6521_v37 = vadd.f32 %v6520_v28, %v6519_v18  ;;  %v2072_v32 = vadd.f32 %v6444_v4, %v8763_v30  ;;  %v2410_v4 = vand.u32 15, %v7778_v54 }
 0x1fb   : > { %v2075_v41 = vadd.f32 %v6447_v29, %v8763_v30  ;;  %v8797_v54 = vshra.s32 %v2410_v4, 2 }
 0x1fd   : > { %vm2418_vm8 = vcmp.ge.s32.totalorder %v8797_v54, 1 }
 0x205   : > { %v6448_v2 = vpop.f32.mrb[8].mxu1  ;;  %v6522_v39 = vpop.f32.mrb[36].mxu0 }
 0x206   : > { %v6449_v17 = vpop.f32.mrb[9].mxu1  ;;  %v6523_v14 = vpop.f32.mrb[37].mxu0 }
 0x207   : > { %v6450_v7 = vadd.f32 %v6449_v17, %v6448_v2  ;;  %v6451_v36 = vpop.f32.mrb[10].mxu1  ;;  %v6524_v6 = vadd.f32 %v6523_v14, %v6522_v39  ;;  %v6525_v12 = vpop.f32.mrb[38].mxu0  ;;  %v2409_v2 = vand.u32 15, %v7775_v53 }
 0x208   : > { %v6452_v42 = vpop.f32.mrb[11].mxu1  ;;  %v6526_v40 = vpop.f32.mrb[39].mxu0 }
 0x209   : > { %v6453_v48 = vadd.f32 %v6452_v42, %v6451_v36  ;;  %v6527_v31 = vadd.f32 %v6526_v40, %v6525_v12  ;;  %v2080_v17 = vadd.f32 %v6450_v7, %v8763_v30 }
 0x20b   : > { %v2083_v40 = vadd.f32 %v6453_v48, %v8763_v30 }
 0x215   : > { %v6454_v8 = vpop.f32.mrb[12].mxu1  ;;  %v6528_v22 = vpop.f32.mrb[40].mxu0 }
 0x216   : > { %v6455_v43 = vpop.f32.mrb[13].mxu1  ;;  %v6529_v50 = vpop.f32.mrb[41].mxu0 }
 0x217   : > { %v8756_v45 = vadd.f32 %v6455_v43, %v6454_v8  ;;  %v6457_v51 = vpop.f32.mrb[14].mxu1  ;;  %v6530_v55 = vadd.f32 %v6529_v50, %v6528_v22  ;;  %v6531_v56 = vpop.f32.mrb[42].mxu0  ;;  %v8793_v22 = vshra.s32 %v2409_v2, 2 }
 0x218   : > { %v6458_v3 = vpop.f32.mrb[15].mxu1  ;;  %v6532_v1 = vpop.f32.mrb[43].mxu0 }
 0x219   : > { %v8758_v23 = vadd.f32 %v6458_v3, %v6457_v51  ;;  %v6533_v27 = vadd.f32 %v6532_v1, %v6531_v56  ;;  %v8799_v51 = vand.u32 3, %v2409_v2  ;;  %v8801_v56 = vand.u32 3, %v2410_v4 }
 0x21a   : > { %vm2417_vm15 = vcmp.ge.s32.totalorder %v8793_v22, 1  ;;  %vm2481_vm4 = vcmp.lt.s32.totalorder %v8793_v22, 3 }
 0x21b   : > { %vm2443_vm7 = vcmp.lt.s32.totalorder %v8799_v51, 3  ;;  %vm2444_vm12 = vcmp.lt.s32.totalorder %v8801_v56, 3  ;;  %vm2419_vm11 = vcmp.ge.s32.totalorder %v8799_v51, 1  ;;  %vm2420_vm2 = vcmp.ge.s32.totalorder %v8801_v56, 1  ;;  %vm6354_vm1 = vmpackc.low %vm2418_vm8, %vm2417_vm15  ;;  %v7284_v51 = vld [vmem:[%s10027_s7 + $0x4] ss:$8 sps:$4 sm:$0xff]  }
 0x21c   : > { %vm8811_vm9 = vmand %vm2417_vm15, %vm2443_vm7 }
 0x21d   : > { %v6476_v35 = vpop.f32.mrb[16].mxu1  ;;  %v6534_v57 = vpop.f32.mrb[44].mxu0  ;;  %vm8821_vm5 = vmand %vm2418_vm8, %vm2444_vm12 }
 0x21e   : > { %v6477_v46 = vpop.f32.mrb[17].mxu1  ;;  %v6535_v13 = vpop.f32.mrb[45].mxu0  ;;  %vm6363_vm6 = vmpackc.low %vm8821_vm5, %vm8811_vm9 }
 0x21f   : > { %v6478_v9 = vadd.f32 %v6477_v46, %v6476_v35  ;;  %v6479_v44 = vpop.f32.mrb[18].mxu1  ;;  %v8767_v10 = vadd.f32 %v6535_v13, %v6534_v57  ;;  %v6537_v52 = vpop.f32.mrb[46].mxu0  ;;  %vm8847_vm10 = vmand %vm2417_vm15, %vm2419_vm11  ;;  %v7056_v46 = vld [vmem:[%s10025_s5 + $0x444] ss:$16 sps:$4 sm:$0xff]   ;;  %vm2482_vm15 = vcmp.lt.s32.totalorder %v8797_v54, 3 }
 0x220   : > { %v6480_v60 = vpop.f32.mrb[19].mxu1  ;;  %v6538_v16 = vpop.f32.mrb[47].mxu0  ;;  %vm8855_vm14 = vmand %vm2418_vm8, %vm2420_vm2  ;;  %v7287_v54 = vld [vmem:[%s10027_s7 + $0x14] ss:$8 sps:$4 sm:$0xff]  }
 0x221   : > { %v2129_v62 = vadd.f32 %v6478_v9, %v2064_v58  ;;  %v6481_v38 = vadd.f32 %v6480_v60, %v6479_v44  ;;  %v6539_v19 = vadd.f32 %v6538_v16, %v6537_v52  ;;  %v2091_v9 = vadd.f32 %v8758_v23, %v8763_v30  ;;  %vm6357_vm13 = vmpackc.low %vm8855_vm14, %vm8847_vm10 }
 0x222   : > { %vm6360_vm3 = vmpackc.low %vm2420_vm2, %vm2419_vm11 }
 0x223   : > { %v2132_v49 = vadd.f32 %v6481_v38, %v2067_v61  ;;  %v8771_v24 = vadd.f32 %v6518_v26, %v2129_v62  ;;  %vm6366_vm0 = vmpackc.low %vm2444_vm12, %vm2443_vm7 }
 0x224   : > { %vm6369_vm8 = vmpackc.low %vm2482_vm15, %vm2481_vm4 }
 0x225   : > { %v6482_v21 = vpop.f32.mrb[20].mxu1  ;;  %v8773_v0 = vadd.f32 %v6521_v37, %v2132_v49  ;;  %v8775_v11 = vpop.f32.mrb[48].mxu0  ;;  %vm9466_vm9 = vmand %vm2481_vm4, %vm2419_vm11 }
 0x226   : > { %v6483_v5 = vpop.f32.mrb[21].mxu1  ;;  %v2323_v25 = vpop.f32.mrb[49].mxu0  ;;  %vm9477_vm5 = vmand %vm2482_vm15, %vm2420_vm2 }
 0x227   : > { %v6484_v15 = vadd.f32 %v6483_v5, %v6482_v21  ;;  %v6485_v63 = vpop.f32.mrb[22].mxu1  ;;  %v8778_v20 = vpop.f32.mrb[50].mxu0  ;;  %vm9582_vm11 = vmand %vm2481_vm4, %vm2443_vm7 }
 0x228   : > { %v6486_v59 = vpop.f32.mrb[23].mxu1  ;;  %v2326_v26 = vpop.f32.mrb[51].mxu0  ;;  %vm2506_vm2 = vmand %vm2482_vm15, %vm2444_vm12  ;;  %vm4744_vm12 = vcmask 1040384  }
 0x229   : > { %v2137_v34 = vadd.f32 %v6484_v15, %v2072_v32  ;;  %v6487_v47 = vadd.f32 %v6486_v59, %v6485_v63  ;;  %vm6375_vm7 = vmpackc.low %vm2506_vm2, %vm9582_vm11 }
 0x22a   : > { %vm9793_vm10 = vmpackc.low %vm4744_vm12, %vm4744_vm12 }
 0x22b   : > { %v2140_v18 = vadd.f32 %v6487_v47, %v2075_v41  ;;  %v2202_v33 = vadd.f32 %v6524_v6, %v2137_v34 }
 0x22d   : > { %v6488_v28 = vpop.f32.mrb[24].mxu1  ;;  %v8781_v37 = vadd.f32 %v6527_v31, %v2140_v18  ;;  %v8786_v36 = vpop.f32.mrb[52].mxu0 }
 0x22e   : > { %v6489_v39 = vpop.f32.mrb[25].mxu1  ;;  %v8788_v29 = vpop.f32.mrb[53].mxu0 }
 0x22f   : > { %v6490_v14 = vadd.f32 %v6489_v39, %v6488_v28  ;;  %v6491_v12 = vpop.f32.mrb[26].mxu1  ;;  %v8791_v31 = vpop.f32.mrb[54].mxu0 }
 0x230   : > { %v6492_v42 = vpop.f32.mrb[27].mxu1  ;;  %v8795_v43 = vpop.f32.mrb[55].mxu0 }
 0x231   : > { %v2145_v6 = vadd.f32 %v6490_v14, %v2080_v17  ;;  %v6493_v8 = vadd.f32 %v6492_v42, %v6491_v12 }
 0x233   : > { %v2148_v7 = vadd.f32 %v6493_v8, %v2083_v40  ;;  %v2210_v50 = vadd.f32 %v6530_v55, %v2145_v6  ;;  %v7059_v55 = vld [vmem:[%s10025_s5 + $0x44c] ss:$16 sps:$4 sm:$0xff]  }
 0x235   : > { %v6494_v3 = vpop.f32.mrb[28].mxu1  ;;  %v2213_v1 = vadd.f32 %v6533_v27, %v2148_v7  ;;  %v2088_v27 = vadd.f32 %v8756_v45, %v8763_v30 }
 0x236   : > { %v6495_v48 = vpop.f32.mrb[29].mxu1 }
 0x237   : > { %v6496_v35 = vadd.f32 %v6495_v48, %v6494_v3  ;;  %v6497_v57 = vpop.f32.mrb[30].mxu1 }
 0x238   : > { %v6498_v58 = vpop.f32.mrb[31].mxu1 }
 0x239   : > { %v2153_v45 = vadd.f32 %v6496_v35, %v2088_v27  ;;  %v6499_v13 = vadd.f32 %v6498_v58, %v6497_v57 }
 0x23b   : > { %v2156_v44 = vadd.f32 %v6499_v13, %v2091_v9  ;;  %v2218_v52 = vadd.f32 %v8767_v10, %v2153_v45 }
 0x23d   : > { %v6556_v60 = vpop.f32.mrb[32].mxu1  ;;  %v2221_v61 = vadd.f32 %v6539_v19, %v2156_v44 }
 0x23e   : > { %v6557_v62 = vpop.f32.mrb[33].mxu1 }
 0x23f   : > { %v6558_v38 = vadd.f32 %v6557_v62, %v6556_v60  ;;  %v6559_v16 = vpop.f32.mrb[34].mxu1 }
 0x240   : > { %v6560_v49 = vpop.f32.mrb[35].mxu1 }
 0x241   : > { %v2259_v21 = vadd.f32 %v6558_v38, %v8771_v24  ;;  %v6561_v5 = vadd.f32 %v6560_v49, %v6559_v16 }
 0x243   : > { %v2324_v32 = vadd.f32 %v2323_v25, %v2259_v21  ;;  %v2262_v15 = vadd.f32 %v6561_v5, %v8773_v0 }
 0x245   : > { %v2354_v63 = vmax.f32 %v2324_v32, 0.0  ;;  %v2327_v59 = vadd.f32 %v2326_v26, %v2262_v15  ;;  %v6562_v23 = vpop.f32.mrb[36].mxu1 }
 0x246   : > { %v6563_v30 = vpop.f32.mrb[37].mxu1 }
 0x247   : > { %2362 = vst [vmem:[#allocation6] sm:$0xff] %v2354_v63  ;;  %v2355_v41 = vmax.f32 %v2327_v59, 0.0  ;;  %v6564_v34 = vadd.f32 %v6563_v30, %v6562_v23  ;;  %v6565_v10 = vpop.f32.mrb[38].mxu1 }
 0x248   : > { %v6566_v47 = vpop.f32.mrb[39].mxu1 }
 0x249   : > { %2363 = vst [vmem:[#allocation6 + $0x8] sm:$0xff] %v2355_v41  ;;  %v2267_v19 = vadd.f32 %v6564_v34, %v2202_v33  ;;  %v6567_v18 = vadd.f32 %v6566_v47, %v6565_v10  ;;  %v7012_v41 = vld [vmem:[%s10025_s5 + $0x360] ss:$16 sps:$4 sm:$0xff]  }
 0x24b   : > { %v2332_v28 = vadd.f32 %v8775_v11, %v2267_v19  ;;  %v2270_v24 = vadd.f32 %v6567_v18, %v8781_v37 }
 0x24d   : > { %v2356_v2 = vmax.f32 %v2332_v28, 0.0  ;;  %v2335_v25 = vadd.f32 %v8778_v20, %v2270_v24  ;;  %v6568_v0 = vpop.f32.mrb[40].mxu1 }
 0x24e   : > { %v6569_v39 = vpop.f32.mrb[41].mxu1 }
 0x24f   : > { %2364 = vst [vmem:[#allocation6 + $0x10] sm:$0xff] %v2356_v2  ;;  %v2357_v26 = vmax.f32 %v2335_v25, 0.0  ;;  %v6570_v4 = vadd.f32 %v6569_v39, %v6568_v0  ;;  %v6571_v17 = vpop.f32.mrb[42].mxu1  ;;  %v6946_v25 = vld [vmem:[%s10025_s5 + $0x200] ss:$16 sps:$4 sm:$0xff]  }
 0x250   : > { %v2370_v14 = vld [vmem:[#allocation6] ss:$2 sm:$0xff]  ;;  %v2378_v12 = vld [vmem:[#allocation6 + $0x1] ss:$2 sm:$0xff]  ;;  %v6572_v42 = vpop.f32.mrb[43].mxu1 }
 0x251   : > { %v2385_v40 = vmax.f32 %v2370_v14, %v2378_v12  ;;  %2365 = vst [vmem:[#allocation6 + $0x18] sm:$0xff] %v2357_v26  ;;  %v2275_v33 = vadd.f32 %v6570_v4, %v2210_v50  ;;  %v6573_v6 = vadd.f32 %v6572_v42, %v6571_v17  ;;  %v6949_v0 = vld [vmem:[%s10025_s5 + $0x208] ss:$16 sps:$4 sm:$0xff]   ;;  %v6954_v26 = vld [vmem:[%s10025_s5 + $0x224] ss:$16 sps:$4 sm:$0xff]  }
 0x252   : > { %v6957_v4 = vld [vmem:[%s10025_s5 + $0x22c] ss:$16 sps:$4 sm:$0xff]   ;;  %v6952_v17 = vld [vmem:[%s10025_s5 + $0x220] ss:$16 sps:$4 sm:$0xff]   ;;  %v6955_v14 = vld [vmem:[%s10025_s5 + $0x228] ss:$16 sps:$4 sm:$0xff]  }
 0x253   : > { %2389 = vst [vmem:[#allocation7] sm:$0xff] %v2385_v40  ;;  %v2340_v11 = vadd.f32 %v8788_v29, %v2275_v33  ;;  %v2278_v37 = vadd.f32 %v6573_v6, %v2213_v1  ;;  %v6960_v12 = vld [vmem:[%s10025_s5 + $0x244] ss:$16 sps:$4 sm:$0xff]   ;;  %v6963_v42 = vld [vmem:[%s10025_s5 + $0x24c] ss:$16 sps:$4 sm:$0xff]  }
 0x254   : > { %v6958_v6 = vld [vmem:[%s10025_s5 + $0x240] ss:$16 sps:$4 sm:$0xff]  }
 0x255   : > { %v2358_v8 = vmax.f32 %v2340_v11, 0.0  ;;  %v2343_v20 = vadd.f32 %v8795_v43, %v2278_v37  ;;  %v6574_v7 = vpop.f32.mrb[44].mxu1  ;;  %v6961_v37 = vld [vmem:[%s10025_s5 + $0x248] ss:$16 sps:$4 sm:$0xff]  }
 0x256   : > { %v6575_v3 = vpop.f32.mrb[45].mxu1 }
 0x257   : > { %2366 = vst [vmem:[#allocation6 + $0x20] sm:$0xff] %v2358_v8  ;;  %v2359_v48 = vmax.f32 %v2343_v20, 0.0  ;;  %v6576_v27 = vadd.f32 %v6575_v3, %v6574_v7  ;;  %v6577_v35 = vpop.f32.mrb[46].mxu1  ;;  %v6966_v8 = vld [vmem:[%s10025_s5 + $0x264] ss:$16 sps:$4 sm:$0xff]  }
 0x258   : > { %v2372_v57 = vld [vmem:[#allocation6 + $0x10] ss:$2 sm:$0xff]  ;;  %v2380_v58 = vld [vmem:[#allocation6 + $0x11] ss:$2 sm:$0xff]  ;;  %v6578_v9 = vpop.f32.mrb[47].mxu1 }
 0x259   : > { %v2386_v45 = vmax.f32 %v2372_v57, %v2380_v58  ;;  %2367 = vst [vmem:[#allocation6 + $0x28] sm:$0xff] %v2359_v48  ;;  %v2283_v50 = vadd.f32 %v6576_v27, %v2218_v52  ;;  %v6579_v13 = vadd.f32 %v6578_v9, %v6577_v35  ;;  %v6969_v20 = vld [vmem:[%s10025_s5 + $0x26c] ss:$16 sps:$4 sm:$0xff]   ;;  %v6964_v7 = vld [vmem:[%s10025_s5 + $0x260] ss:$16 sps:$4 sm:$0xff]  }
 0x25a   : > { %v2393_v44 = vld [vmem:[#allocation7] sm:$0xf]  ;;  %v2394_v60 = vld [vmem:[#allocation7 + $0x4] sm:$0xf]  ;;  %v6967_v3 = vld [vmem:[%s10025_s5 + $0x268] ss:$16 sps:$4 sm:$0xff]  }
 0x25b   : > { %2390 = vst [vmem:[#allocation7 + $0x8] sm:$0xff] %v2386_v45  ;;  %v2348_v29 = vadd.f32 %v8786_v36, %v2283_v50  ;;  %v2286_v1 = vadd.f32 %v6579_v13, %v2221_v61  ;;  %v2395_v43 = vmax.f32 %v2393_v44, %v2394_v60  ;;  %v6972_v48 = vld [vmem:[%s10025_s5 + $0x284] ss:$16 sps:$4 sm:$0xff]   ;;  %v6975_v27 = vld [vmem:[%s10025_s5 + $0x28c] ss:$16 sps:$4 sm:$0xff]  }
 0x25c   : > { %v6970_v35 = vld [vmem:[%s10025_s5 + $0x280] ss:$16 sps:$4 sm:$0xff]   ;;  %v6973_v57 = vld [vmem:[%s10025_s5 + $0x288] ss:$16 sps:$4 sm:$0xff]   ;;  %v6978_v58 = vld [vmem:[%s10025_s5 + $0x2a4] ss:$16 sps:$4 sm:$0xff]  }
 0x25d   : > { %v2360_v62 = vmax.f32 %v2348_v29, 0.0  ;;  %v2351_v38 = vadd.f32 %v8791_v31, %v2286_v1  ;;  %2396 = vst [vmem:[#allocation8 + $0x8] sm:$0xf] %v2395_v43  ;;  %v6981_v9 = vld [vmem:[%s10025_s5 + $0x2ac] ss:$16 sps:$4 sm:$0xff]  }
 0x25e   : > { %v6976_v45 = vld [vmem:[%s10025_s5 + $0x2a0] ss:$16 sps:$4 sm:$0xff]   ;;  %v6979_v50 = vld [vmem:[%s10025_s5 + $0x2a8] ss:$16 sps:$4 sm:$0xff]   ;;  %v6984_v13 = vld [vmem:[%s10025_s5 + $0x2c4] ss:$16 sps:$4 sm:$0xff]  }
 0x25f   : > { %2368 = vst [vmem:[#allocation6 + $0x30] sm:$0xff] %v2360_v62  ;;  %v2361_v16 = vmax.f32 %v2351_v38, 0.0  ;;  %v6987_v44 = vld [vmem:[%s10025_s5 + $0x2cc] ss:$16 sps:$4 sm:$0xff]   ;;  %v6982_v60 = vld [vmem:[%s10025_s5 + $0x2c0] ss:$16 sps:$4 sm:$0xff]  }
 0x260   : > { %v2374_v49 = vld [vmem:[#allocation6 + $0x20] ss:$2 sm:$0xff]  ;;  %v2382_v21 = vld [vmem:[#allocation6 + $0x21] ss:$2 sm:$0xff] }
 0x261   : > { %v2387_v5 = vmax.f32 %v2374_v49, %v2382_v21  ;;  %2369 = vst [vmem:[#allocation6 + $0x38] sm:$0xff] %v2361_v16  ;;  %v6985_v29 = vld [vmem:[%s10025_s5 + $0x2c8] ss:$16 sps:$4 sm:$0xff]   ;;  %v6990_v1 = vld [vmem:[%s10025_s5 + $0x2e4] ss:$16 sps:$4 sm:$0xff]  }
 0x262   : > { %v2397_v32 = vld [vmem:[#allocation7 + $0x8] sm:$0xf]  ;;  %v2398_v52 = vld [vmem:[#allocation7 + $0xc] sm:$0xf]  ;;  %v6988_v62 = vld [vmem:[%s10025_s5 + $0x2e0] ss:$16 sps:$4 sm:$0xff]  }
 0x263   : > { %2391 = vst [vmem:[#allocation7 + $0x10] sm:$0xff] %v2387_v5  ;;  %v2399_v15 = vmax.f32 %v2397_v32, %v2398_v52  ;;  %v6993_v43 = vld [vmem:[%s10025_s5 + $0x2ec] ss:$16 sps:$4 sm:$0xff]   ;;  %v6991_v38 = vld [vmem:[%s10025_s5 + $0x2e8] ss:$16 sps:$4 sm:$0xff]  }
 0x264   : > { %v2431_v47 = vld [vmem:[#allocation8 + $0x4] sm:$0xff]  ;;  %v6999_v49 = vld [vmem:[%s10025_s5 + $0x30c] ss:$16 sps:$4 sm:$0xff]   ;;  %v6994_v21 = vld [vmem:[%s10025_s5 + $0x300] ss:$16 sps:$4 sm:$0xff]  }
 0x265   : > { %2400 = vst [vmem:[#allocation8 + $0xc] sm:$0xf] %v2399_v15  ;;  %v2415_v28 = vld [vmem:[#allocation8 + $0x3] sm:$0xff]  ;;  %v7005_v52 = vld [vmem:[%s10025_s5 + $0x32c] ss:$16 sps:$4 sm:$0xff]  }
 0x266   : > { %v6996_v16 = vld [vmem:[%s10025_s5 + $0x304] ss:$16 sps:$4 sm:$0xff]   ;;  %v6997_v5 = vld [vmem:[%s10025_s5 + $0x308] ss:$16 sps:$4 sm:$0xff]   ;;  %v7000_v15 = vld [vmem:[%s10025_s5 + $0x320] ss:$16 sps:$4 sm:$0xff]  }
 0x267   : > { %v7002_v32 = vld [vmem:[%s10025_s5 + $0x324] ss:$16 sps:$4 sm:$0xff]   ;;  %v7017_v31 = vld [vmem:[%s10025_s5 + $0x36c] ss:$16 sps:$4 sm:$0xff]  }
 0x268   : > { %v2376_v63 = vld [vmem:[#allocation6 + $0x30] ss:$2 sm:$0xff]  ;;  %v2384_v59 = vld [vmem:[#allocation6 + $0x31] ss:$2 sm:$0xff] }
 0x269   : > { %v2388_v36 = vmax.f32 %v2376_v63, %v2384_v59  ;;  %v7003_v63 = vld [vmem:[%s10025_s5 + $0x328] ss:$16 sps:$4 sm:$0xff]   ;;  %v7008_v59 = vld [vmem:[%s10025_s5 + $0x344] ss:$16 sps:$4 sm:$0xff]  }
 0x26a   : > { %v2401_v61 = vld [vmem:[#allocation7 + $0x10] sm:$0xf]  ;;  %v2402_v23 = vld [vmem:[#allocation7 + $0x14] sm:$0xf] }
 0x26b   : > { %2392 = vst [vmem:[#allocation7 + $0x18] sm:$0xff] %v2388_v36  ;;  %v2403_v30 = vmax.f32 %v2401_v61, %v2402_v23  ;;  %v7011_v36 = vld [vmem:[%s10025_s5 + $0x34c] ss:$16 sps:$4 sm:$0xff]   ;;  %v7006_v61 = vld [vmem:[%s10025_s5 + $0x340] ss:$16 sps:$4 sm:$0xff]  }
 0x26c   : > { %v2455_v40 = vld [vmem:[#allocation8 + $0x7] sm:$0xff] }
 0x26d   : > { %2404 = vst [vmem:[#allocation8 + $0x10] sm:$0xf] %v2403_v30  ;;  %v7009_v23 = vld [vmem:[%s10025_s5 + $0x348] ss:$16 sps:$4 sm:$0xff]   ;;  %v7014_v30 = vld [vmem:[%s10025_s5 + $0x364] ss:$16 sps:$4 sm:$0xff]  }
 0x272   : > { %v2405_v34 = vld [vmem:[#allocation7 + $0x18] sm:$0xf]  ;;  %v2406_v10 = vld [vmem:[#allocation7 + $0x1c] sm:$0xf] }
 0x273   : > { %v2407_v19 = vmax.f32 %v2405_v34, %v2406_v10  ;;  %v7015_v34 = vld [vmem:[%s10025_s5 + $0x368] ss:$16 sps:$4 sm:$0xff]   ;;  %v7020_v10 = vld [vmem:[%s10025_s5 + $0x384] ss:$16 sps:$4 sm:$0xff]  }
 0x274   : > { %v8863_v18 = vld [vmem:[#allocation8 + $0xc] sm:$0xff] }
 0x275   : > { %v2416_v24 = vld [vmem:[#allocation8 + $0xb] sm:$0xff]  ;;  %v6355_v2 = vpack.c.bf16 %v8863_v18, %v2431_v47  ;;  %2408 = vst [vmem:[#allocation8 + $0x14] sm:$0xf] %v2407_v19 }
 0x276   : > { %v6358_v39 = vpack.c.bf16 %v2416_v24, %v2415_v28  ;;  %v7023_v47 = vld [vmem:[%s10025_s5 + $0x38c] ss:$16 sps:$4 sm:$0xff]   ;;  %v7018_v19 = vld [vmem:[%s10025_s5 + $0x380] ss:$16 sps:$4 sm:$0xff]   ;;  %v7021_v28 = vld [vmem:[%s10025_s5 + $0x388] ss:$16 sps:$4 sm:$0xff]  }
 0x277   : > { %6356 = vmatprep.mubr.msk.bf16.mxu1 %vm6354_vm1, %v6355_v2  ;;  %6380 = vmatprep.mubr.msk.bf16.mxu0 %vm6354_vm1, %v6355_v2  ;;  %v7026_v24 = vld [vmem:[%s10025_s5 + $0x3a4] ss:$16 sps:$4 sm:$0xff]   ;;  %v7029_v2 = vld [vmem:[%s10025_s5 + $0x3ac] ss:$16 sps:$4 sm:$0xff]  }
 0x278   : > { %6359 = vmatmul.mubr.msk.bf16.vlgmr.msra.gmra.mrb[48].mxu1 %vm6357_vm13, %v6358_v39  ;;  %6383 = vmatmul.mubr.msk.bf16.vlgmr.msra.gmra.mrb[56].mxu0 %vm6357_vm13, %v6358_v39  ;;  %v7032_v39 = vld [vmem:[%s10025_s5 + $0x3c4] ss:$16 sps:$4 sm:$0xff]  }
 0x279   : > { %4318 = vmatpush1.bf16.msra.mxu1 %v6946_v25  ;;  %4533 = vmatpush1.bf16.msra.mxu0 %v6949_v0  ;;  %v7024_v25 = vld [vmem:[%s10025_s5 + $0x3a0] ss:$16 sps:$4 sm:$0xff]   ;;  %v7027_v0 = vld [vmem:[%s10025_s5 + $0x3a8] ss:$16 sps:$4 sm:$0xff]  }
 0x27a   : > { %4319 = vmatprep.subr.bf16.mxu1 %v6954_v26  ;;  %4534 = vmatprep.subr.bf16.mxu0 %v6957_v4  ;;  %v7035_v26 = vld [vmem:[%s10025_s5 + $0x3cc] ss:$16 sps:$4 sm:$0xff]   ;;  %v7030_v4 = vld [vmem:[%s10025_s5 + $0x3c0] ss:$16 sps:$4 sm:$0xff]  }
 0x27c   : > { %v2456_v33 = vld [vmem:[#allocation8 + $0xf] sm:$0xff] }
 0x27d   : > { %4320 = vmatpush1.bf16.msra.mxu1 %v6952_v17  ;;  %4535 = vmatpush1.bf16.msra.mxu0 %v6955_v14  ;;  %v6361_v11 = vpack.c.bf16 %v2456_v33, %v2455_v40  ;;  %v7033_v17 = vld [vmem:[%s10025_s5 + $0x3c8] ss:$16 sps:$4 sm:$0xff]   ;;  %v7038_v14 = vld [vmem:[%s10025_s5 + $0x3e4] ss:$16 sps:$4 sm:$0xff]  }
 0x27e   : > { %4321 = vmatprep.subr.bf16.mxu1 %v6960_v12  ;;  %4536 = vmatprep.subr.bf16.mxu0 %v6963_v42  ;;  %v7041_v12 = vld [vmem:[%s10025_s5 + $0x3ec] ss:$16 sps:$4 sm:$0xff]   ;;  %v7036_v42 = vld [vmem:[%s10025_s5 + $0x3e0] ss:$16 sps:$4 sm:$0xff]   ;;  %v7039_v40 = vld [vmem:[%s10025_s5 + $0x3e8] ss:$16 sps:$4 sm:$0xff]  }
 0x27f   : > { %6362 = vmatprep.mubr.msk.bf16.mxu1 %vm6360_vm3, %v6361_v11  ;;  %6386 = vmatprep.mubr.msk.bf16.mxu0 %vm6360_vm3, %v6361_v11  ;;  %v7044_v33 = vld [vmem:[%s10025_s5 + $0x404] ss:$16 sps:$4 sm:$0xff]  }
 0x280   : > { %v2442_v11 = vld [vmem:[#allocation8 + $0xd] sm:$0xff] }
 0x281   : > { %4322 = vmatpush1.bf16.msra.mxu1 %v6958_v6  ;;  %4537 = vmatpush1.bf16.msra.mxu0 %v6961_v37  ;;  %v7047_v6 = vld [vmem:[%s10025_s5 + $0x40c] ss:$16 sps:$4 sm:$0xff]   ;;  %v2470_v37 = vld [vmem:[#allocation8 + $0x11] sm:$0xff] }
 0x282   : > { %4323 = vmatprep.subr.bf16.mxu1 %v6966_v8  ;;  %4538 = vmatprep.subr.bf16.mxu0 %v6969_v20  ;;  %v2441_v8 = vld [vmem:[#allocation8 + $0x5] sm:$0xff]  ;;  %v7042_v20 = vld [vmem:[%s10025_s5 + $0x400] ss:$16 sps:$4 sm:$0xff]  }
 0x283   : > { %v2503_v22 = vld [vmem:[#allocation8 + $0xd] sm:$0xff] }
 0x285   : > { %4324 = vmatpush1.bf16.msra.mxu1 %v6964_v7  ;;  %4539 = vmatpush1.bf16.msra.mxu0 %v6967_v3  ;;  %v6364_v7 = vpack.c.bf16 %v2442_v11, %v2441_v8  ;;  %v7045_v3 = vld [vmem:[%s10025_s5 + $0x408] ss:$16 sps:$4 sm:$0xff]   ;;  %v7120_v11 = vld [vmem:[%s10025_s5 + $0x5a0] ss:$16 sps:$4 sm:$0xff]   ;;  %v7128_v8 = vld [vmem:[%s10025_s5 + $0x5c4] ss:$16 sps:$4 sm:$0xff]  }
 0x286   : > { %4325 = vmatprep.subr.bf16.mxu1 %v6972_v48  ;;  %4540 = vmatprep.subr.bf16.mxu0 %v6975_v27  ;;  %v2469_v48 = vld [vmem:[#allocation8 + $0x9] sm:$0xff] }
 0x287   : > { %v6367_v27 = vpack.c.bf16 %v2470_v37, %v2469_v48  ;;  %v7123_v37 = vld [vmem:[%s10025_s5 + $0x5a8] ss:$16 sps:$4 sm:$0xff]   ;;  %v7134_v48 = vld [vmem:[%s10025_s5 + $0x5e4] ss:$16 sps:$4 sm:$0xff]  }
 0x289   : > { %4326 = vmatpush1.bf16.msra.mxu1 %v6970_v35  ;;  %4541 = vmatpush1.bf16.msra.mxu0 %v6973_v57  ;;  %v7050_v35 = vld [vmem:[%s10025_s5 + $0x424] ss:$16 sps:$4 sm:$0xff]   ;;  %v7053_v57 = vld [vmem:[%s10025_s5 + $0x42c] ss:$16 sps:$4 sm:$0xff]  }
 0x28a   : > { %4327 = vmatprep.subr.bf16.mxu1 %v6978_v58  ;;  %4542 = vmatprep.subr.bf16.mxu0 %v6981_v9  ;;  %v7048_v58 = vld [vmem:[%s10025_s5 + $0x420] ss:$16 sps:$4 sm:$0xff]   ;;  %v7051_v9 = vld [vmem:[%s10025_s5 + $0x428] ss:$16 sps:$4 sm:$0xff]  }
 0x28d   : > { %4328 = vmatpush1.bf16.msra.mxu1 %v6976_v45  ;;  %4543 = vmatpush1.bf16.msra.mxu0 %v6979_v50  ;;  %v7054_v45 = vld [vmem:[%s10025_s5 + $0x440] ss:$16 sps:$4 sm:$0xff]   ;;  %v7057_v50 = vld [vmem:[%s10025_s5 + $0x448] ss:$16 sps:$4 sm:$0xff]  }
 0x28e   : > { %4329 = vmatprep.subr.bf16.mxu1 %v6984_v13  ;;  %4544 = vmatprep.subr.bf16.mxu0 %v6987_v44  ;;  %v7062_v13 = vld [vmem:[%s10025_s5 + $0x464] ss:$16 sps:$4 sm:$0xff]   ;;  %v7065_v44 = vld [vmem:[%s10025_s5 + $0x46c] ss:$16 sps:$4 sm:$0xff]  }
 0x291   : > { %4330 = vmatpush1.bf16.msra.mxu1 %v6982_v60  ;;  %4545 = vmatpush1.bf16.msra.mxu0 %v6985_v29  ;;  %v7060_v60 = vld [vmem:[%s10025_s5 + $0x460] ss:$16 sps:$4 sm:$0xff]   ;;  %v7063_v29 = vld [vmem:[%s10025_s5 + $0x468] ss:$16 sps:$4 sm:$0xff]  }
 0x292   : > { %4331 = vmatprep.subr.bf16.mxu1 %v6990_v1  ;;  %4546 = vmatprep.subr.bf16.mxu0 %v6993_v43  ;;  %v7068_v1 = vld [vmem:[%s10025_s5 + $0x484] ss:$16 sps:$4 sm:$0xff]   ;;  %v7071_v43 = vld [vmem:[%s10025_s5 + $0x48c] ss:$16 sps:$4 sm:$0xff]  }
 0x295   : > { %4332 = vmatpush1.bf16.msra.mxu1 %v6988_v62  ;;  %4547 = vmatpush1.bf16.msra.mxu0 %v6991_v38  ;;  %v7066_v62 = vld [vmem:[%s10025_s5 + $0x480] ss:$16 sps:$4 sm:$0xff]   ;;  %v7069_v38 = vld [vmem:[%s10025_s5 + $0x488] ss:$16 sps:$4 sm:$0xff]  }
 0x296   : > { %4333 = vmatprep.subr.bf16.mxu1 %v6996_v16  ;;  %4548 = vmatprep.subr.bf16.mxu0 %v6999_v49  ;;  %v7074_v16 = vld [vmem:[%s10025_s5 + $0x4a4] ss:$16 sps:$4 sm:$0xff]   ;;  %v7077_v49 = vld [vmem:[%s10025_s5 + $0x4ac] ss:$16 sps:$4 sm:$0xff]  }
 0x299   : > { %4334 = vmatpush1.bf16.msra.mxu1 %v6994_v21  ;;  %4549 = vmatpush1.bf16.msra.mxu0 %v6997_v5  ;;  %v7072_v21 = vld [vmem:[%s10025_s5 + $0x4a0] ss:$16 sps:$4 sm:$0xff]   ;;  %v7075_v5 = vld [vmem:[%s10025_s5 + $0x4a8] ss:$16 sps:$4 sm:$0xff]  }
 0x29a   : > { %4335 = vmatprep.subr.bf16.mxu1 %v7002_v32  ;;  %4550 = vmatprep.subr.bf16.mxu0 %v7005_v52  ;;  %v7080_v32 = vld [vmem:[%s10025_s5 + $0x4c4] ss:$16 sps:$4 sm:$0xff]   ;;  %v7083_v52 = vld [vmem:[%s10025_s5 + $0x4cc] ss:$16 sps:$4 sm:$0xff]  }
 0x29d   : > { %4336 = vmatpush1.bf16.msra.mxu1 %v7000_v15  ;;  %4551 = vmatpush1.bf16.msra.mxu0 %v7003_v63  ;;  %v7078_v15 = vld [vmem:[%s10025_s5 + $0x4c0] ss:$16 sps:$4 sm:$0xff]   ;;  %v7081_v63 = vld [vmem:[%s10025_s5 + $0x4c8] ss:$16 sps:$4 sm:$0xff]  }
 0x29e   : > { %4337 = vmatprep.subr.bf16.mxu1 %v7008_v59  ;;  %4552 = vmatprep.subr.bf16.mxu0 %v7011_v36  ;;  %v7086_v59 = vld [vmem:[%s10025_s5 + $0x4e4] ss:$16 sps:$4 sm:$0xff]   ;;  %v7089_v36 = vld [vmem:[%s10025_s5 + $0x4ec] ss:$16 sps:$4 sm:$0xff]  }
 0x2a1   : > { %4338 = vmatpush1.bf16.msra.mxu1 %v7006_v61  ;;  %4553 = vmatpush1.bf16.msra.mxu0 %v7009_v23  ;;  %v7084_v61 = vld [vmem:[%s10025_s5 + $0x4e0] ss:$16 sps:$4 sm:$0xff]   ;;  %v7087_v23 = vld [vmem:[%s10025_s5 + $0x4e8] ss:$16 sps:$4 sm:$0xff]  }
 0x2a2   : > { %4339 = vmatprep.subr.bf16.mxu1 %v7014_v30  ;;  %4554 = vmatprep.subr.bf16.mxu0 %v7017_v31  ;;  %v7092_v30 = vld [vmem:[%s10025_s5 + $0x504] ss:$16 sps:$4 sm:$0xff]   ;;  %v7095_v31 = vld [vmem:[%s10025_s5 + $0x50c] ss:$16 sps:$4 sm:$0xff]  }
 0x2a5   : > { %4340 = vmatpush1.bf16.msra.mxu1 %v7012_v41  ;;  %4555 = vmatpush1.bf16.msra.mxu0 %v7015_v34  ;;  %v7090_v41 = vld [vmem:[%s10025_s5 + $0x500] ss:$16 sps:$4 sm:$0xff]   ;;  %v7093_v34 = vld [vmem:[%s10025_s5 + $0x508] ss:$16 sps:$4 sm:$0xff]  }
 0x2a6   : > { %4341 = vmatprep.subr.bf16.mxu1 %v7020_v10  ;;  %4556 = vmatprep.subr.bf16.mxu0 %v7023_v47  ;;  %v7098_v10 = vld [vmem:[%s10025_s5 + $0x524] ss:$16 sps:$4 sm:$0xff]   ;;  %v7101_v47 = vld [vmem:[%s10025_s5 + $0x52c] ss:$16 sps:$4 sm:$0xff]  }
 0x2a9   : > { %4342 = vmatpush1.bf16.msra.mxu1 %v7018_v19  ;;  %4557 = vmatpush1.bf16.msra.mxu0 %v7021_v28  ;;  %v7096_v19 = vld [vmem:[%s10025_s5 + $0x520] ss:$16 sps:$4 sm:$0xff]   ;;  %v7099_v28 = vld [vmem:[%s10025_s5 + $0x528] ss:$16 sps:$4 sm:$0xff]  }
 0x2aa   : > { %4343 = vmatprep.subr.bf16.mxu1 %v7026_v24  ;;  %4558 = vmatprep.subr.bf16.mxu0 %v7029_v2  ;;  %v7104_v24 = vld [vmem:[%s10025_s5 + $0x544] ss:$16 sps:$4 sm:$0xff]   ;;  %v7107_v2 = vld [vmem:[%s10025_s5 + $0x54c] ss:$16 sps:$4 sm:$0xff]  }
 0x2ad   : > { %4344 = vmatpush1.bf16.msra.mxu1 %v7024_v25  ;;  %4559 = vmatpush1.bf16.msra.mxu0 %v7027_v0  ;;  %v7102_v25 = vld [vmem:[%s10025_s5 + $0x540] ss:$16 sps:$4 sm:$0xff]   ;;  %v7105_v0 = vld [vmem:[%s10025_s5 + $0x548] ss:$16 sps:$4 sm:$0xff]  }
 0x2ae   : > { %4345 = vmatprep.subr.bf16.mxu1 %v7032_v39  ;;  %4560 = vmatprep.subr.bf16.mxu0 %v7035_v26  ;;  %v7110_v39 = vld [vmem:[%s10025_s5 + $0x564] ss:$16 sps:$4 sm:$0xff]   ;;  %v7113_v26 = vld [vmem:[%s10025_s5 + $0x56c] ss:$16 sps:$4 sm:$0xff]  }
 0x2b1   : > { %4346 = vmatpush1.bf16.msra.mxu1 %v7030_v4  ;;  %4561 = vmatpush1.bf16.msra.mxu0 %v7033_v17  ;;  %v7108_v4 = vld [vmem:[%s10025_s5 + $0x560] ss:$16 sps:$4 sm:$0xff]   ;;  %v7111_v17 = vld [vmem:[%s10025_s5 + $0x568] ss:$16 sps:$4 sm:$0xff]  }
 0x2b2   : > { %4347 = vmatprep.subr.bf16.mxu1 %v7038_v14  ;;  %4562 = vmatprep.subr.bf16.mxu0 %v7041_v12  ;;  %v7116_v14 = vld [vmem:[%s10025_s5 + $0x584] ss:$16 sps:$4 sm:$0xff]   ;;  %v7119_v12 = vld [vmem:[%s10025_s5 + $0x58c] ss:$16 sps:$4 sm:$0xff]  }
 0x2b5   : > { %4348 = vmatpush1.bf16.msra.mxu1 %v7036_v42  ;;  %4563 = vmatpush1.bf16.msra.mxu0 %v7039_v40  ;;  %v7114_v42 = vld [vmem:[%s10025_s5 + $0x580] ss:$16 sps:$4 sm:$0xff]   ;;  %v7117_v40 = vld [vmem:[%s10025_s5 + $0x588] ss:$16 sps:$4 sm:$0xff]  }
 0x2b6   : > { %4360 = vmatprep.subr.bf16.mxu1 %v7044_v33  ;;  %4575 = vmatprep.subr.bf16.mxu0 %v7047_v6  ;;  %v7122_v33 = vld [vmem:[%s10025_s5 + $0x5a4] ss:$16 sps:$4 sm:$0xff]   ;;  %v7125_v6 = vld [vmem:[%s10025_s5 + $0x5ac] ss:$16 sps:$4 sm:$0xff]  }
 0x2b8   : > { %6365 = vmatmul.mubr.msk.bf16.vlgmr.msra.gmra.mrb[48].mxu1 %vm6363_vm6, %v6364_v7  ;;  %6389 = vmatmul.mubr.msk.bf16.vlgmr.msra.gmra.mrb[56].mxu0 %vm6363_vm6, %v6364_v7  ;;  %v7126_v7 = vld [vmem:[%s10025_s5 + $0x5c0] ss:$16 sps:$4 sm:$0xff]   ;;  %vm6372_vm6 = vmpackc.low %vm9477_vm5, %vm9466_vm9 }
 0x2b9   : > { %4361 = vmatpush1.bf16.msra.mxu1 %v7042_v20  ;;  %6368 = vmatprep.mubr.msk.bf16.mxu1 %vm6366_vm0, %v6367_v27  ;;  %v7131_v20 = vld [vmem:[%s10025_s5 + $0x5cc] ss:$16 sps:$4 sm:$0xff]  }
 0x2ba   : > { %4576 = vmatpush1.bf16.msra.mxu0 %v7045_v3  ;;  %6392 = vmatprep.mubr.msk.bf16.mxu0 %vm6366_vm0, %v6367_v27  ;;  %v7129_v3 = vld [vmem:[%s10025_s5 + $0x5c8] ss:$16 sps:$4 sm:$0xff]   ;;  %v7137_v27 = vld [vmem:[%s10025_s5 + $0x5ec] ss:$16 sps:$4 sm:$0xff]  }
 0x2bb   : > { %4362 = vmatprep.subr.bf16.mxu1 %v7050_v35  ;;  %4577 = vmatprep.subr.bf16.mxu0 %v7053_v57  ;;  %v7132_v35 = vld [vmem:[%s10025_s5 + $0x5e0] ss:$16 sps:$4 sm:$0xff]   ;;  %v7135_v57 = vld [vmem:[%s10025_s5 + $0x5e8] ss:$16 sps:$4 sm:$0xff]  }
 0x2bd   : > { %4363 = vmatpush1.bf16.msra.mxu1 %v7048_v58  ;;  %v7140_v58 = vld [vmem:[%s10025_s5 + $0x604] ss:$16 sps:$4 sm:$0xff]  }
 0x2be   : > { %4578 = vmatpush1.bf16.msra.mxu0 %v7051_v9  ;;  %4364 = vmatprep.subr.bf16.mxu1 %v7056_v46  ;;  %v2466_v9 = vld [vmem:[#allocation8 + $0x10] sm:$0xff]  ;;  %v7143_v46 = vld [vmem:[%s10025_s5 + $0x60c] ss:$16 sps:$4 sm:$0xff]  }
 0x2bf   : > { %4579 = vmatprep.subr.bf16.mxu0 %v7059_v55  ;;  %v2465_v55 = vld [vmem:[#allocation8 + $0x8] sm:$0xff] }
 0x2c1   : > { %4365 = vmatpush1.bf16.msra.mxu1 %v7054_v45  ;;  %v7138_v45 = vld [vmem:[%s10025_s5 + $0x600] ss:$16 sps:$4 sm:$0xff]  }
 0x2c2   : > { %4580 = vmatpush1.bf16.msra.mxu0 %v7057_v50  ;;  %4366 = vmatprep.subr.bf16.mxu1 %v7062_v13  ;;  %v2494_v50 = vld [vmem:[#allocation8 + $0x14] sm:$0xff]  ;;  %v2467_v13 = vpack.c.bf16 %v2466_v9, %v2465_v55  ;;  %v7227_v55 = vld [vmem:[%s10025_s5 + $0x7cc] ss:$16 sps:$4 sm:$0xff]  }
 0x2c3   : > { %4581 = vmatprep.subr.bf16.mxu0 %v7065_v44  ;;  %v7141_v44 = vld [vmem:[%s10025_s5 + $0x608] ss:$16 sps:$4 sm:$0xff]  }
 0x2c4   : > { %v7219_v9 = vld [vmem:[%s10025_s5 + $0x7a8] ss:$16 sps:$4 sm:$0xff]  }
 0x2c5   : > { %4367 = vmatpush1.bf16.msra.mxu1 %v7060_v60  ;;  %v7146_v60 = vld [vmem:[%s10025_s5 + $0x624] ss:$16 sps:$4 sm:$0xff]  }
 0x2c6   : > { %4582 = vmatpush1.bf16.msra.mxu0 %v7063_v29  ;;  %4368 = vmatprep.subr.bf16.mxu1 %v7068_v1  ;;  %v6370_v29 = vpack.c.bf16 %v2494_v50, %v8863_v18  ;;  %v7149_v1 = vld [vmem:[%s10025_s5 + $0x62c] ss:$16 sps:$4 sm:$0xff]   ;;  %v7152_v18 = vld [vmem:[%s10025_s5 + $0x644] ss:$16 sps:$4 sm:$0xff]   ;;  %v7225_v50 = vld [vmem:[%s10025_s5 + $0x7c8] ss:$16 sps:$4 sm:$0xff]  }
 0x2c7   : > { %4583 = vmatprep.subr.bf16.mxu0 %v7071_v43  ;;  %v7144_v43 = vld [vmem:[%s10025_s5 + $0x620] ss:$16 sps:$4 sm:$0xff]  }
 0x2c9   : > { %4369 = vmatpush1.bf16.msra.mxu1 %v7066_v62  ;;  %v7147_v62 = vld [vmem:[%s10025_s5 + $0x628] ss:$16 sps:$4 sm:$0xff]  }
 0x2ca   : > { %4584 = vmatpush1.bf16.msra.mxu0 %v7069_v38  ;;  %4370 = vmatprep.subr.bf16.mxu1 %v7074_v16  ;;  %v7155_v38 = vld [vmem:[%s10025_s5 + $0x64c] ss:$16 sps:$4 sm:$0xff]   ;;  %v7150_v16 = vld [vmem:[%s10025_s5 + $0x640] ss:$16 sps:$4 sm:$0xff]  }
 0x2cb   : > { %4585 = vmatprep.subr.bf16.mxu0 %v7077_v49  ;;  %v7153_v49 = vld [vmem:[%s10025_s5 + $0x648] ss:$16 sps:$4 sm:$0xff]  }
 0x2cd   : > { %4371 = vmatpush1.bf16.msra.mxu1 %v7072_v21  ;;  %v7158_v21 = vld [vmem:[%s10025_s5 + $0x664] ss:$16 sps:$4 sm:$0xff]  }
 0x2ce   : > { %4586 = vmatpush1.bf16.msra.mxu0 %v7075_v5  ;;  %4372 = vmatprep.subr.bf16.mxu1 %v7080_v32  ;;  %v7161_v5 = vld [vmem:[%s10025_s5 + $0x66c] ss:$16 sps:$4 sm:$0xff]   ;;  %v7156_v32 = vld [vmem:[%s10025_s5 + $0x660] ss:$16 sps:$4 sm:$0xff]  }
 0x2cf   : > { %4587 = vmatprep.subr.bf16.mxu0 %v7083_v52  ;;  %v7159_v52 = vld [vmem:[%s10025_s5 + $0x668] ss:$16 sps:$4 sm:$0xff]  }
 0x2d1   : > { %4373 = vmatpush1.bf16.msra.mxu1 %v7078_v15  ;;  %v7164_v15 = vld [vmem:[%s10025_s5 + $0x684] ss:$16 sps:$4 sm:$0xff]  }
 0x2d2   : > { %4588 = vmatpush1.bf16.msra.mxu0 %v7081_v63  ;;  %4374 = vmatprep.subr.bf16.mxu1 %v7086_v59  ;;  %v7167_v63 = vld [vmem:[%s10025_s5 + $0x68c] ss:$16 sps:$4 sm:$0xff]   ;;  %v7162_v59 = vld [vmem:[%s10025_s5 + $0x680] ss:$16 sps:$4 sm:$0xff]  }
 0x2d3   : > { %4589 = vmatprep.subr.bf16.mxu0 %v7089_v36  ;;  %v7165_v36 = vld [vmem:[%s10025_s5 + $0x688] ss:$16 sps:$4 sm:$0xff]  }
 0x2d5   : > { %4375 = vmatpush1.bf16.msra.mxu1 %v7084_v61  ;;  %v7170_v61 = vld [vmem:[%s10025_s5 + $0x6a4] ss:$16 sps:$4 sm:$0xff]  }
 0x2d6   : > { %4590 = vmatpush1.bf16.msra.mxu0 %v7087_v23  ;;  %4376 = vmatprep.subr.bf16.mxu1 %v7092_v30  ;;  %v7173_v23 = vld [vmem:[%s10025_s5 + $0x6ac] ss:$16 sps:$4 sm:$0xff]   ;;  %v7168_v30 = vld [vmem:[%s10025_s5 + $0x6a0] ss:$16 sps:$4 sm:$0xff]  }
 0x2d7   : > { %4591 = vmatprep.subr.bf16.mxu0 %v7095_v31  ;;  %v7171_v31 = vld [vmem:[%s10025_s5 + $0x6a8] ss:$16 sps:$4 sm:$0xff]  }
 0x2d9   : > { %4377 = vmatpush1.bf16.msra.mxu1 %v7090_v41  ;;  %v7176_v41 = vld [vmem:[%s10025_s5 + $0x6c4] ss:$16 sps:$4 sm:$0xff]  }
 0x2da   : > { %4592 = vmatpush1.bf16.msra.mxu0 %v7093_v34  ;;  %4378 = vmatprep.subr.bf16.mxu1 %v7098_v10  ;;  %v7179_v34 = vld [vmem:[%s10025_s5 + $0x6cc] ss:$16 sps:$4 sm:$0xff]   ;;  %v7174_v10 = vld [vmem:[%s10025_s5 + $0x6c0] ss:$16 sps:$4 sm:$0xff]  }
 0x2db   : > { %4593 = vmatprep.subr.bf16.mxu0 %v7101_v47  ;;  %v7177_v47 = vld [vmem:[%s10025_s5 + $0x6c8] ss:$16 sps:$4 sm:$0xff]  }
 0x2dd   : > { %4379 = vmatpush1.bf16.msra.mxu1 %v7096_v19  ;;  %v7182_v19 = vld [vmem:[%s10025_s5 + $0x6e4] ss:$16 sps:$4 sm:$0xff]  }
 0x2de   : > { %4594 = vmatpush1.bf16.msra.mxu0 %v7099_v28  ;;  %4380 = vmatprep.subr.bf16.mxu1 %v7104_v24  ;;  %v7185_v28 = vld [vmem:[%s10025_s5 + $0x6ec] ss:$16 sps:$4 sm:$0xff]   ;;  %v7180_v24 = vld [vmem:[%s10025_s5 + $0x6e0] ss:$16 sps:$4 sm:$0xff]  }
 0x2df   : > { %4595 = vmatprep.subr.bf16.mxu0 %v7107_v2  ;;  %v7183_v2 = vld [vmem:[%s10025_s5 + $0x6e8] ss:$16 sps:$4 sm:$0xff]  }
 0x2e1   : > { %4381 = vmatpush1.bf16.msra.mxu1 %v7102_v25  ;;  %v7188_v25 = vld [vmem:[%s10025_s5 + $0x704] ss:$16 sps:$4 sm:$0xff]  }
 0x2e2   : > { %4596 = vmatpush1.bf16.msra.mxu0 %v7105_v0  ;;  %4382 = vmatprep.subr.bf16.mxu1 %v7110_v39  ;;  %v7191_v0 = vld [vmem:[%s10025_s5 + $0x70c] ss:$16 sps:$4 sm:$0xff]   ;;  %v7186_v39 = vld [vmem:[%s10025_s5 + $0x700] ss:$16 sps:$4 sm:$0xff]  }
 0x2e3   : > { %4597 = vmatprep.subr.bf16.mxu0 %v7113_v26  ;;  %v7189_v26 = vld [vmem:[%s10025_s5 + $0x708] ss:$16 sps:$4 sm:$0xff]  }
 0x2e5   : > { %4383 = vmatpush1.bf16.msra.mxu1 %v7108_v4  ;;  %v7194_v4 = vld [vmem:[%s10025_s5 + $0x724] ss:$16 sps:$4 sm:$0xff]  }
 0x2e6   : > { %4598 = vmatpush1.bf16.msra.mxu0 %v7111_v17  ;;  %4384 = vmatprep.subr.bf16.mxu1 %v7116_v14  ;;  %v7197_v17 = vld [vmem:[%s10025_s5 + $0x72c] ss:$16 sps:$4 sm:$0xff]   ;;  %v7192_v14 = vld [vmem:[%s10025_s5 + $0x720] ss:$16 sps:$4 sm:$0xff]  }
 0x2e7   : > { %4599 = vmatprep.subr.bf16.mxu0 %v7119_v12  ;;  %v7195_v12 = vld [vmem:[%s10025_s5 + $0x728] ss:$16 sps:$4 sm:$0xff]  }
 0x2e9   : > { %4385 = vmatpush1.bf16.msra.mxu1 %v7114_v42  ;;  %v7200_v42 = vld [vmem:[%s10025_s5 + $0x744] ss:$16 sps:$4 sm:$0xff]  }
 0x2ea   : > { %4600 = vmatpush1.bf16.msra.mxu0 %v7117_v40  ;;  %4386 = vmatprep.subr.bf16.mxu1 %v7122_v33  ;;  %v7203_v40 = vld [vmem:[%s10025_s5 + $0x74c] ss:$16 sps:$4 sm:$0xff]   ;;  %v7198_v33 = vld [vmem:[%s10025_s5 + $0x740] ss:$16 sps:$4 sm:$0xff]  }
 0x2eb   : > { %4601 = vmatprep.subr.bf16.mxu0 %v7125_v6  ;;  %v7201_v6 = vld [vmem:[%s10025_s5 + $0x748] ss:$16 sps:$4 sm:$0xff]  }
 0x2ed   : > { %4387 = vmatpush1.bf16.msra.mxu1 %v7120_v11  ;;  %v7206_v11 = vld [vmem:[%s10025_s5 + $0x764] ss:$16 sps:$4 sm:$0xff]  }
 0x2ee   : > { %4602 = vmatpush1.bf16.msra.mxu0 %v7123_v37  ;;  %4388 = vmatprep.subr.bf16.mxu1 %v7128_v8  ;;  %v7209_v37 = vld [vmem:[%s10025_s5 + $0x76c] ss:$16 sps:$4 sm:$0xff]   ;;  %v7204_v8 = vld [vmem:[%s10025_s5 + $0x760] ss:$16 sps:$4 sm:$0xff]  }
 0x2ef   : > { %4603 = vmatprep.subr.bf16.mxu0 %v7131_v20  ;;  %v7207_v20 = vld [vmem:[%s10025_s5 + $0x768] ss:$16 sps:$4 sm:$0xff]  }
 0x2f1   : > { %4389 = vmatpush1.bf16.msra.mxu1 %v7126_v7  ;;  %v7212_v7 = vld [vmem:[%s10025_s5 + $0x784] ss:$16 sps:$4 sm:$0xff]  }
 0x2f2   : > { %4604 = vmatpush1.bf16.msra.mxu0 %v7129_v3  ;;  %4390 = vmatprep.subr.bf16.mxu1 %v7134_v48  ;;  %v7215_v3 = vld [vmem:[%s10025_s5 + $0x78c] ss:$16 sps:$4 sm:$0xff]   ;;  %v7210_v48 = vld [vmem:[%s10025_s5 + $0x780] ss:$16 sps:$4 sm:$0xff]  }
 0x2f3   : > { %4605 = vmatprep.subr.bf16.mxu0 %v7137_v27  ;;  %v7213_v27 = vld [vmem:[%s10025_s5 + $0x788] ss:$16 sps:$4 sm:$0xff]  }
 0x2f5   : > { %4391 = vmatpush1.bf16.msra.mxu1 %v7132_v35  ;;  %v7218_v35 = vld [vmem:[%s10025_s5 + $0x7a4] ss:$16 sps:$4 sm:$0xff]  }
 0x2f6   : > { %4606 = vmatpush1.bf16.msra.mxu0 %v7135_v57  ;;  %4403 = vmatprep.subr.bf16.mxu1 %v7140_v58  ;;  %v7221_v57 = vld [vmem:[%s10025_s5 + $0x7ac] ss:$16 sps:$4 sm:$0xff]   ;;  %v7216_v58 = vld [vmem:[%s10025_s5 + $0x7a0] ss:$16 sps:$4 sm:$0xff]  }
 0x2f7   : > { %4618 = vmatprep.subr.bf16.mxu0 %v7143_v46  ;;  %v7224_v46 = vld [vmem:[%s10025_s5 + $0x7c4] ss:$16 sps:$4 sm:$0xff]  }
 0x2f8   : > { %4393 = vmatmul.mubr.bf16.vlgmr.msra.gmra.mrb[48].mxu1 %v2467_v13 }
 0x2f9   : > { %4608 = vmatmul.mubr.bf16.vlgmr.msra.gmra.mrb[56].mxu0 %v2467_v13  ;;  %4404 = vmatpush1.bf16.msra.mxu1 %v7138_v45  ;;  %v7222_v45 = vld [vmem:[%s10025_s5 + $0x7c0] ss:$16 sps:$4 sm:$0xff]   ;;  %v7230_v13 = vld [vmem:[%s10025_s5 + $0x7e4] ss:$16 sps:$4 sm:$0xff]  }
 0x2fa   : > { %6371 = vmatprep.mubr.msk.bf16.mxu1 %vm6369_vm8, %v6370_v29  ;;  %4619 = vmatpush1.bf16.msra.mxu0 %v7141_v44  ;;  %v7233_v44 = vld [vmem:[%s10025_s5 + $0x7ec] ss:$16 sps:$4 sm:$0xff]  }
 0x2fb   : > { %6395 = vmatprep.mubr.msk.bf16.mxu0 %vm6369_vm8, %v6370_v29  ;;  %4405 = vmatprep.subr.bf16.mxu1 %v7146_v60  ;;  %v7228_v60 = vld [vmem:[%s10025_s5 + $0x7e0] ss:$16 sps:$4 sm:$0xff]   ;;  %v7314_v29 = vld [vmem:[%s10027_s7 + $0xa4] ss:$8 sps:$4 sm:$0xff]  }
 0x2fc   : > { %4620 = vmatprep.subr.bf16.mxu0 %v7149_v1  ;;  %v7231_v1 = vld [vmem:[%s10025_s5 + $0x7e8] ss:$16 sps:$4 sm:$0xff]  }
 0x2fd   : > { %4406 = vmatpush1.bf16.msra.mxu1 %v7144_v43  ;;  %v7317_v43 = vld [vmem:[%s10027_s7 + $0xb4] ss:$8 sps:$4 sm:$0xff]  }
 0x2fe   : > { %4621 = vmatpush1.bf16.msra.mxu0 %v7147_v62  ;;  %4407 = vmatprep.subr.bf16.mxu1 %v7152_v18  ;;  %v7236_v62 = vld [vmem:[%s10025_s5 + $0x804] ss:$16 sps:$4 sm:$0xff]  }
 0x2ff   : > { %4622 = vmatprep.subr.bf16.mxu0 %v7155_v38  ;;  %v2480_v18 = vld [vmem:[#allocation8 + $0x13] sm:$0xff]  ;;  %v7239_v38 = vld [vmem:[%s10025_s5 + $0x80c] ss:$16 sps:$4 sm:$0xff]  }
 0x301   : > { %4408 = vmatpush1.bf16.msra.mxu1 %v7150_v16  ;;  %v2479_v16 = vld [vmem:[#allocation8 + $0xb] sm:$0xff] }
 0x302   : > { %4623 = vmatpush1.bf16.msra.mxu0 %v7153_v49  ;;  %4409 = vmatprep.subr.bf16.mxu1 %v7158_v21  ;;  %v7234_v49 = vld [vmem:[%s10025_s5 + $0x800] ss:$16 sps:$4 sm:$0xff]   ;;  %v6373_v21 = vpack.c.bf16 %v2480_v18, %v2479_v16  ;;  %v7320_v18 = vld [vmem:[%s10027_s7 + $0xc4] ss:$8 sps:$4 sm:$0xff]   ;;  %v7323_v16 = vld [vmem:[%s10027_s7 + $0xd4] ss:$8 sps:$4 sm:$0xff]  }
 0x303   : > { %4624 = vmatprep.subr.bf16.mxu0 %v7161_v5  ;;  %v7237_v5 = vld [vmem:[%s10025_s5 + $0x808] ss:$16 sps:$4 sm:$0xff]  }
 0x305   : > { %4410 = vmatpush1.bf16.msra.mxu1 %v7156_v32  ;;  %v7242_v32 = vld [vmem:[%s10025_s5 + $0x824] ss:$16 sps:$4 sm:$0xff]  }
 0x306   : > { %4625 = vmatpush1.bf16.msra.mxu0 %v7159_v52  ;;  %4411 = vmatprep.subr.bf16.mxu1 %v7164_v15  ;;  %v7245_v52 = vld [vmem:[%s10025_s5 + $0x82c] ss:$16 sps:$4 sm:$0xff]   ;;  %v7240_v15 = vld [vmem:[%s10025_s5 + $0x820] ss:$16 sps:$4 sm:$0xff]  }
 0x307   : > { %4626 = vmatprep.subr.bf16.mxu0 %v7167_v63  ;;  %v7243_v63 = vld [vmem:[%s10025_s5 + $0x828] ss:$16 sps:$4 sm:$0xff]  }
 0x309   : > { %4412 = vmatpush1.bf16.msra.mxu1 %v7162_v59  ;;  %v7248_v59 = vld [vmem:[%s10025_s5 + $0x844] ss:$16 sps:$4 sm:$0xff]  }
 0x30a   : > { %4627 = vmatpush1.bf16.msra.mxu0 %v7165_v36  ;;  %4413 = vmatprep.subr.bf16.mxu1 %v7170_v61  ;;  %v7251_v36 = vld [vmem:[%s10025_s5 + $0x84c] ss:$16 sps:$4 sm:$0xff]   ;;  %v7506_v61 = vmov 0  }
 0x30b   : > { %4628 = vmatprep.subr.bf16.mxu0 %v7173_v23  ;;  %v7246_v23 = vld [vmem:[%s10025_s5 + $0x840] ss:$16 sps:$4 sm:$0xff]  }
 0x30d   : > { %4414 = vmatpush1.bf16.msra.mxu1 %v7168_v30  ;;  %v7249_v30 = vld [vmem:[%s10025_s5 + $0x848] ss:$16 sps:$4 sm:$0xff]  }
 0x30e   : > { %4629 = vmatpush1.bf16.msra.mxu0 %v7171_v31  ;;  %4415 = vmatprep.subr.bf16.mxu1 %v7176_v41  ;;  %v7254_v31 = vld [vmem:[%s10025_s5 + $0x864] ss:$16 sps:$4 sm:$0xff]   ;;  %v7257_v41 = vld [vmem:[%s10025_s5 + $0x86c] ss:$16 sps:$4 sm:$0xff]  }
 0x30f   : > { %4630 = vmatprep.subr.bf16.mxu0 %v7179_v34  ;;  %v7252_v34 = vld [vmem:[%s10025_s5 + $0x860] ss:$16 sps:$4 sm:$0xff]  }
 0x311   : > { %4416 = vmatpush1.bf16.msra.mxu1 %v7174_v10  ;;  %v7255_v10 = vld [vmem:[%s10025_s5 + $0x868] ss:$16 sps:$4 sm:$0xff]  }
 0x312   : > { %4631 = vmatpush1.bf16.msra.mxu0 %v7177_v47  ;;  %4417 = vmatprep.subr.bf16.mxu1 %v7182_v19  ;;  %v7260_v47 = vld [vmem:[%s10025_s5 + $0x884] ss:$16 sps:$4 sm:$0xff]   ;;  %v7263_v19 = vld [vmem:[%s10025_s5 + $0x88c] ss:$16 sps:$4 sm:$0xff]  }
 0x313   : > { %4632 = vmatprep.subr.bf16.mxu0 %v7185_v28  ;;  %v7258_v28 = vld [vmem:[%s10025_s5 + $0x880] ss:$16 sps:$4 sm:$0xff]  }
 0x315   : > { %4418 = vmatpush1.bf16.msra.mxu1 %v7180_v24  ;;  %v7261_v24 = vld [vmem:[%s10025_s5 + $0x888] ss:$16 sps:$4 sm:$0xff]  }
 0x316   : > { %4633 = vmatpush1.bf16.msra.mxu0 %v7183_v2  ;;  %4419 = vmatprep.subr.bf16.mxu1 %v7188_v25  ;;  %v7266_v2 = vld [vmem:[%s10025_s5 + $0x8a4] ss:$16 sps:$4 sm:$0xff]   ;;  %v7269_v25 = vld [vmem:[%s10025_s5 + $0x8ac] ss:$16 sps:$4 sm:$0xff]  }
 0x317   : > { %4634 = vmatprep.subr.bf16.mxu0 %v7191_v0  ;;  %v7264_v0 = vld [vmem:[%s10025_s5 + $0x8a0] ss:$16 sps:$4 sm:$0xff]  }
 0x319   : > { %4420 = vmatpush1.bf16.msra.mxu1 %v7186_v39  ;;  %v7267_v39 = vld [vmem:[%s10025_s5 + $0x8a8] ss:$16 sps:$4 sm:$0xff]  }
 0x31a   : > { %4635 = vmatpush1.bf16.msra.mxu0 %v7189_v26  ;;  %4421 = vmatprep.subr.bf16.mxu1 %v7194_v4  ;;  %v7272_v26 = vld [vmem:[%s10025_s5 + $0x8c4] ss:$16 sps:$4 sm:$0xff]   ;;  %v7275_v4 = vld [vmem:[%s10025_s5 + $0x8cc] ss:$16 sps:$4 sm:$0xff]  }
 0x31b   : > { %4636 = vmatprep.subr.bf16.mxu0 %v7197_v17  ;;  %v7270_v17 = vld [vmem:[%s10025_s5 + $0x8c0] ss:$16 sps:$4 sm:$0xff]  }
 0x31d   : > { %4422 = vmatpush1.bf16.msra.mxu1 %v7192_v14  ;;  %v7273_v14 = vld [vmem:[%s10025_s5 + $0x8c8] ss:$16 sps:$4 sm:$0xff]  }
 0x31e   : > { %4637 = vmatpush1.bf16.msra.mxu0 %v7195_v12  ;;  %4423 = vmatprep.subr.bf16.mxu1 %v7200_v42  ;;  %v7278_v12 = vld [vmem:[%s10025_s5 + $0x8e4] ss:$16 sps:$4 sm:$0xff]   ;;  %v7281_v42 = vld [vmem:[%s10025_s5 + $0x8ec] ss:$16 sps:$4 sm:$0xff]  }
 0x31f   : > { %4638 = vmatprep.subr.bf16.mxu0 %v7203_v40  ;;  %v7276_v40 = vld [vmem:[%s10025_s5 + $0x8e0] ss:$16 sps:$4 sm:$0xff]  }
 0x321   : > { %4424 = vmatpush1.bf16.msra.mxu1 %v7198_v33 }
 0x322   : > { %4639 = vmatpush1.bf16.msra.mxu0 %v7201_v6  ;;  %4425 = vmatprep.subr.bf16.mxu1 %v7206_v11  ;;  %v7279_v6 = vld [vmem:[%s10025_s5 + $0x8e8] ss:$16 sps:$4 sm:$0xff]  }
 0x323   : > { %4640 = vmatprep.subr.bf16.mxu0 %v7209_v37  ;;  %v2504_v11 = vld [vmem:[#allocation8 + $0x15] sm:$0xff]  ;;  %v7282_v37 = vld [vmem:[%s10027_s7] ss:$8 sps:$4 sm:$0xff]  }
 0x324   : > { %v6376_v56 = vpack.c.bf16 %v2504_v11, %v2503_v22 }
 0x325   : > { %4426 = vmatpush1.bf16.msra.mxu1 %v7204_v8  ;;  %v7285_v8 = vld [vmem:[%s10027_s7 + $0x10] ss:$8 sps:$4 sm:$0xff]  }
 0x326   : > { %4641 = vmatpush1.bf16.msra.mxu0 %v7207_v20  ;;  %4427 = vmatprep.subr.bf16.mxu1 %v7212_v7  ;;  %v7290_v20 = vld [vmem:[%s10027_s7 + $0x24] ss:$8 sps:$4 sm:$0xff]   ;;  %v7288_v7 = vld [vmem:[%s10027_s7 + $0x20] ss:$8 sps:$4 sm:$0xff]  }
 0x327   : > { %4642 = vmatprep.subr.bf16.mxu0 %v7215_v3  ;;  %v7293_v3 = vld [vmem:[%s10027_s7 + $0x34] ss:$8 sps:$4 sm:$0xff]  }
 0x329   : > { %4428 = vmatpush1.bf16.msra.mxu1 %v7210_v48  ;;  %v7291_v48 = vld [vmem:[%s10027_s7 + $0x30] ss:$8 sps:$4 sm:$0xff]  }
 0x32a   : > { %4643 = vmatpush1.bf16.msra.mxu0 %v7213_v27  ;;  %4429 = vmatprep.subr.bf16.mxu1 %v7218_v35  ;;  %v7296_v27 = vld [vmem:[%s10027_s7 + $0x44] ss:$8 sps:$4 sm:$0xff]   ;;  %v7294_v35 = vld [vmem:[%s10027_s7 + $0x40] ss:$8 sps:$4 sm:$0xff]  }
 0x32b   : > { %4644 = vmatprep.subr.bf16.mxu0 %v7221_v57  ;;  %v7299_v57 = vld [vmem:[%s10027_s7 + $0x54] ss:$8 sps:$4 sm:$0xff]  }
 0x32d   : > { %4430 = vmatpush1.bf16.msra.mxu1 %v7216_v58  ;;  %v7297_v58 = vld [vmem:[%s10027_s7 + $0x50] ss:$8 sps:$4 sm:$0xff]  }
 0x32e   : > { %4645 = vmatpush1.bf16.msra.mxu0 %v7219_v9  ;;  %4431 = vmatprep.subr.bf16.mxu1 %v7224_v46  ;;  %v7302_v9 = vld [vmem:[%s10027_s7 + $0x64] ss:$8 sps:$4 sm:$0xff]   ;;  %v7300_v46 = vld [vmem:[%s10027_s7 + $0x60] ss:$8 sps:$4 sm:$0xff]  }
 0x32f   : > { %4646 = vmatprep.subr.bf16.mxu0 %v7227_v55  ;;  %v7305_v55 = vld [vmem:[%s10027_s7 + $0x74] ss:$8 sps:$4 sm:$0xff]  }
 0x331   : > { %4432 = vmatpush1.bf16.msra.mxu1 %v7222_v45  ;;  %v7303_v45 = vld [vmem:[%s10027_s7 + $0x70] ss:$8 sps:$4 sm:$0xff]  }
 0x332   : > { %4647 = vmatpush1.bf16.msra.mxu0 %v7225_v50  ;;  %4433 = vmatprep.subr.bf16.mxu1 %v7230_v13  ;;  %v7308_v50 = vld [vmem:[%s10027_s7 + $0x84] ss:$8 sps:$4 sm:$0xff]   ;;  %v7306_v13 = vld [vmem:[%s10027_s7 + $0x80] ss:$8 sps:$4 sm:$0xff]  }
 0x333   : > { %4648 = vmatprep.subr.bf16.mxu0 %v7233_v44  ;;  %v7311_v44 = vld [vmem:[%s10027_s7 + $0x94] ss:$8 sps:$4 sm:$0xff]  }
 0x335   : > { %4434 = vmatpush1.bf16.msra.mxu1 %v7228_v60  ;;  %v7309_v60 = vld [vmem:[%s10027_s7 + $0x90] ss:$8 sps:$4 sm:$0xff]  }
 0x336   : > { %4649 = vmatpush1.bf16.msra.mxu0 %v7231_v1  ;;  %4446 = vmatprep.subr.bf16.mxu1 %v7236_v62  ;;  %v7312_v1 = vld [vmem:[%s10027_s7 + $0xa0] ss:$8 sps:$4 sm:$0xff]   ;;  %v7315_v62 = vld [vmem:[%s10027_s7 + $0xb0] ss:$8 sps:$4 sm:$0xff]  }
 0x337   : > { %4661 = vmatprep.subr.bf16.mxu0 %v7239_v38  ;;  %v7318_v38 = vld [vmem:[%s10027_s7 + $0xc0] ss:$8 sps:$4 sm:$0xff]  }
 0x338   : > { %6374 = vmatmul.mubr.msk.bf16.vlgmr.msra.gmra.mrb[48].mxu1 %vm6372_vm6, %v6373_v21 }
 0x339   : > { %6398 = vmatmul.mubr.msk.bf16.vlgmr.msra.gmra.mrb[56].mxu0 %vm6372_vm6, %v6373_v21  ;;  %4447 = vmatpush1.bf16.msra.mxu1 %v7234_v49  ;;  %v7321_v49 = vld [vmem:[%s10027_s7 + $0xd0] ss:$8 sps:$4 sm:$0xff]   ;;  %v7326_v21 = vld [vmem:[%s10027_s7 + $0xe4] ss:$8 sps:$4 sm:$0xff]  }
 0x33a   : > { %4662 = vmatpush1.bf16.msra.mxu0 %v7237_v5  ;;  %4448 = vmatprep.subr.bf16.mxu1 %v7242_v32  ;;  %v7324_v5 = vld [vmem:[%s10027_s7 + $0xe0] ss:$8 sps:$4 sm:$0xff]   ;;  %v7329_v32 = vld [vmem:[%s10027_s7 + $0xf4] ss:$8 sps:$4 sm:$0xff]  }
 0x33b   : > { %4663 = vmatprep.subr.bf16.mxu0 %v7245_v52  ;;  %4478 = vmatprep.mubr.bf16.mxu1 %v7506_v61  ;;  %v7327_v52 = vld [vmem:[%s10027_s7 + $0xf0] ss:$8 sps:$4 sm:$0xff]  }
 0x33c   : > { %4693 = vmatprep.mubr.bf16.mxu0 %v7506_v61  ;;  %v7381_v61 = vld [vmem:[%s10029_s9 + $0x10] ss:$8 sps:$4 sm:$0xff]  }
 0x33d   : > { %4449 = vmatpush1.bf16.msra.mxu1 %v7240_v15  ;;  %v7332_v15 = vld [vmem:[%s10027_s7 + $0x104] ss:$8 sps:$4 sm:$0xff]  }
 0x33e   : > { %4664 = vmatpush1.bf16.msra.mxu0 %v7243_v63  ;;  %4450 = vmatprep.subr.bf16.mxu1 %v7248_v59  ;;  %v7378_v63 = vld [vmem:[%s10029_s9] ss:$8 sps:$4 sm:$0xff]   ;;  %v7380_v59 = vld [vmem:[%s10029_s9 + $0x4] ss:$8 sps:$4 sm:$0xff]  }
 0x33f   : > { %4665 = vmatprep.subr.bf16.mxu0 %v7251_v36  ;;  %v7383_v36 = vld [vmem:[%s10029_s9 + $0x14] ss:$8 sps:$4 sm:$0xff]  }
 0x341   : > { %4451 = vmatpush1.bf16.msra.mxu1 %v7246_v23  ;;  %v7386_v23 = vld [vmem:[%s10029_s9 + $0x24] ss:$8 sps:$4 sm:$0xff]  }
 0x342   : > { %4666 = vmatpush1.bf16.msra.mxu0 %v7249_v30  ;;  %4452 = vmatprep.subr.bf16.mxu1 %v7254_v31  ;;  %v7384_v30 = vld [vmem:[%s10029_s9 + $0x20] ss:$8 sps:$4 sm:$0xff]   ;;  %v7389_v31 = vld [vmem:[%s10029_s9 + $0x34] ss:$8 sps:$4 sm:$0xff]  }
 0x343   : > { %4667 = vmatprep.subr.bf16.mxu0 %v7257_v41  ;;  %v7387_v41 = vld [vmem:[%s10029_s9 + $0x30] ss:$8 sps:$4 sm:$0xff]  }
 0x345   : > { %4453 = vmatpush1.bf16.msra.mxu1 %v7252_v34  ;;  %v7392_v34 = vld [vmem:[%s10029_s9 + $0x44] ss:$8 sps:$4 sm:$0xff]  }
 0x346   : > { %4668 = vmatpush1.bf16.msra.mxu0 %v7255_v10  ;;  %4454 = vmatprep.subr.bf16.mxu1 %v7260_v47  ;;  %v7390_v10 = vld [vmem:[%s10029_s9 + $0x40] ss:$8 sps:$4 sm:$0xff]   ;;  %v7395_v47 = vld [vmem:[%s10029_s9 + $0x54] ss:$8 sps:$4 sm:$0xff]  }
 0x347   : > { %4669 = vmatprep.subr.bf16.mxu0 %v7263_v19  ;;  %v7393_v19 = vld [vmem:[%s10029_s9 + $0x50] ss:$8 sps:$4 sm:$0xff]  }
 0x349   : > { %4455 = vmatpush1.bf16.msra.mxu1 %v7258_v28  ;;  %v7398_v28 = vld [vmem:[%s10029_s9 + $0x64] ss:$8 sps:$4 sm:$0xff]  }
 0x34a   : > { %4670 = vmatpush1.bf16.msra.mxu0 %v7261_v24  ;;  %4456 = vmatprep.subr.bf16.mxu1 %v7266_v2  ;;  %v7396_v24 = vld [vmem:[%s10029_s9 + $0x60] ss:$8 sps:$4 sm:$0xff]   ;;  %v7401_v2 = vld [vmem:[%s10029_s9 + $0x74] ss:$8 sps:$4 sm:$0xff]  }
 0x34b   : > { %4671 = vmatprep.subr.bf16.mxu0 %v7269_v25  ;;  %v7399_v25 = vld [vmem:[%s10029_s9 + $0x70] ss:$8 sps:$4 sm:$0xff]  }
 0x34d   : > { %4457 = vmatpush1.bf16.msra.mxu1 %v7264_v0  ;;  %v7404_v0 = vld [vmem:[%s10029_s9 + $0x84] ss:$8 sps:$4 sm:$0xff]  }
 0x34e   : > { %4672 = vmatpush1.bf16.msra.mxu0 %v7267_v39  ;;  %4458 = vmatprep.subr.bf16.mxu1 %v7272_v26  ;;  %v9746_v39 = vsub.s32 0, %v7775_v53  ;;  %v2812_v26 = vld [vmem:[%s10026_s6] sm:$0xf] }
 0x34f   : > { %4673 = vmatprep.subr.bf16.mxu0 %v7275_v4  ;;  %v2824_v4 = vsub.s32 2, %v7775_v53 }
 0x351   : > { %4459 = vmatpush1.bf16.msra.mxu1 %v7270_v17  ;;  %v9753_v17 = vsub.s32 1, %v7775_v53  ;;  %v2825_v33 = vrot.slane %v2812_v26, %v2824_v4 }
 0x352   : > { %4674 = vmatpush1.bf16.msra.mxu0 %v7273_v14  ;;  %4460 = vmatprep.subr.bf16.mxu1 %v7278_v12  ;;  %v7402_v14 = vld [vmem:[%s10029_s9 + $0x80] ss:$8 sps:$4 sm:$0xff]   ;;  %v2828_v12 = vsub.s32 3, %v7775_v53  ;;  %v7410_v53 = vld [vmem:[%s10029_s9 + $0xa4] ss:$8 sps:$4 sm:$0xff]  }
 0x353   : > { %4675 = vmatprep.subr.bf16.mxu0 %v7281_v42  ;;  %v7407_v42 = vld [vmem:[%s10029_s9 + $0x94] ss:$8 sps:$4 sm:$0xff]  }
 0x354   : > { %v2829_v22 = vrot.slane %v2812_v26, %v2828_v12 }
 0x355   : > { %4461 = vmatpush1.bf16.msra.mxu1 %v7276_v40  ;;  %v2817_v40 = vrot.slane %v2812_v26, %v9746_v39 }
 0x356   : > { %4676 = vmatpush1.bf16.msra.mxu0 %v7279_v6  ;;  %5149 = vmatprep.subr.bf16.mxu1 %v7284_v51  ;;  %v2821_v6 = vrot.slane %v2812_v26, %v9753_v17  ;;  %v7405_v51 = vld [vmem:[%s10029_s9 + $0x90] ss:$8 sps:$4 sm:$0xff]  }
 0x357   : > { %5439 = vmatprep.subr.bf16.mxu0 %v7380_v59 }
 0x358   : > { %6377 = vmatmul.mubr.msk.bf16.vlgmr.msra.gmra.mrb[48].mxu1 %vm6375_vm7, %v6376_v56 }
 0x359   : > { %6401 = vmatmul.mubr.msk.bf16.vlgmr.msra.gmra.mrb[56].mxu0 %vm6375_vm7, %v6376_v56  ;;  %5150 = vmatpush1.bf16.msra.mxu1 %v7282_v37 }
 0x35a   : > { %5151 = vmatprep.subr.bf16.mxu1 %v7287_v54  ;;  %5440 = vmatpush1.bf16.msra.mxu0 %v7378_v63  ;;  %v7414_v63 = vld [vmem:[%s10029_s9 + $0xc0] ss:$8 sps:$4 sm:$0xff]  }
 0x35b   : > { %5441 = vmatprep.subr.bf16.mxu0 %v7383_v36 }
 0x35d   : > { %5152 = vmatpush1.bf16.msra.mxu1 %v7285_v8 }
 0x35e   : > { %5153 = vmatprep.subr.bf16.mxu1 %v7290_v20  ;;  %5442 = vmatpush1.bf16.msra.mxu0 %v7381_v61  ;;  %v7419_v61 = vld [vmem:[%s10029_s9 + $0xd4] ss:$8 sps:$4 sm:$0xff]  }
 0x35f   : > { %5443 = vmatprep.subr.bf16.mxu0 %v7386_v23 }
 0x361   : > { %5154 = vmatpush1.bf16.msra.mxu1 %v7288_v7 }
 0x362   : > { %5155 = vmatprep.subr.bf16.mxu1 %v7293_v3  ;;  %5444 = vmatpush1.bf16.msra.mxu0 %v7384_v30 }
 0x363   : > { %5445 = vmatprep.subr.bf16.mxu0 %v7389_v31 }
 0x365   : > { %5156 = vmatpush1.bf16.msra.mxu1 %v7291_v48  ;;  %v7408_v48 = vld [vmem:[%s10029_s9 + $0xa0] ss:$8 sps:$4 sm:$0xff]  }
 0x366   : > { %5157 = vmatprep.subr.bf16.mxu1 %v7296_v27  ;;  %5446 = vmatpush1.bf16.msra.mxu0 %v7387_v41 }
 0x367   : > { %5447 = vmatprep.subr.bf16.mxu0 %v7392_v34  ;;  %v7417_v34 = vld [vmem:[%s10029_s9 + $0xd0] ss:$8 sps:$4 sm:$0xff]  }
 0x369   : > { %5158 = vmatpush1.bf16.msra.mxu1 %v7294_v35 }
 0x36a   : > { %5159 = vmatprep.subr.bf16.mxu1 %v7299_v57  ;;  %5448 = vmatpush1.bf16.msra.mxu0 %v7390_v10 }
 0x36b   : > { %5449 = vmatprep.subr.bf16.mxu0 %v7395_v47 }
 0x36d   : > { %5160 = vmatpush1.bf16.msra.mxu1 %v7297_v58 }
 0x36e   : > { %5161 = vmatprep.subr.bf16.mxu1 %v7302_v9  ;;  %5450 = vmatpush1.bf16.msra.mxu0 %v7393_v19  ;;  %v7413_v9 = vld [vmem:[%s10029_s9 + $0xb4] ss:$8 sps:$4 sm:$0xff]  }
 0x36f   : > { %5451 = vmatprep.subr.bf16.mxu0 %v7398_v28 }
 0x371   : > { %5162 = vmatpush1.bf16.msra.mxu1 %v7300_v46 }
 0x372   : > { %5163 = vmatprep.subr.bf16.mxu1 %v7305_v55  ;;  %5452 = vmatpush1.bf16.msra.mxu0 %v7396_v24 }
 0x373   : > { %5453 = vmatprep.subr.bf16.mxu0 %v7401_v2 }
 0x375   : > { %5164 = vmatpush1.bf16.msra.mxu1 %v7303_v45 }
 0x376   : > { %5165 = vmatprep.subr.bf16.mxu1 %v7308_v50  ;;  %5454 = vmatpush1.bf16.msra.mxu0 %v7399_v25 }
 0x377   : > { %5455 = vmatprep.subr.bf16.mxu0 %v7404_v0 }
 0x379   : > { %5166 = vmatpush1.bf16.msra.mxu1 %v7306_v13 }
 0x37a   : > { %5167 = vmatprep.subr.bf16.mxu1 %v7311_v44  ;;  %5456 = vmatpush1.bf16.msra.mxu0 %v7402_v14 }
 0x37b   : > { %5457 = vmatprep.subr.bf16.mxu0 %v7407_v42 }
 0x37d   : > { %5168 = vmatpush1.bf16.msra.mxu1 %v7309_v60 }
 0x37e   : > { %5169 = vmatprep.subr.bf16.mxu1 %v7314_v29  ;;  %5458 = vmatpush1.bf16.msra.mxu0 %v7405_v51 }
 0x37f   : > { %5459 = vmatprep.subr.bf16.mxu0 %v7410_v53 }
 0x381   : > { %5170 = vmatpush1.bf16.msra.mxu1 %v7312_v1 }
 0x382   : > { %5171 = vmatprep.subr.bf16.mxu1 %v7317_v43  ;;  %5460 = vmatpush1.bf16.msra.mxu0 %v7408_v48  ;;  %v7345_v48 = vld [vmem:[%s10027_s7 + $0x150] ss:$8 sps:$4 sm:$0xff]  }
 0x383   : > { %5461 = vmatprep.subr.bf16.mxu0 %v7413_v9  ;;  %v7356_v9 = vld [vmem:[%s10027_s7 + $0x184] ss:$8 sps:$4 sm:$0xff]  }
 0x385   : > { %5172 = vmatpush1.bf16.msra.mxu1 %v7315_v62  ;;  %v7411_v62 = vld [vmem:[%s10029_s9 + $0xb0] ss:$8 sps:$4 sm:$0xff]  }
 0x386   : > { %5173 = vmatprep.subr.bf16.mxu1 %v7320_v18  ;;  %5462 = vmatpush1.bf16.msra.mxu0 %v7411_v62  ;;  %v7368_v62 = vld [vmem:[%s10027_s7 + $0x1c4] ss:$8 sps:$4 sm:$0xff]  }
 0x389   : > { %5174 = vmatpush1.bf16.msra.mxu1 %v7318_v38 }
 0x38a   : > { %5175 = vmatprep.subr.bf16.mxu1 %v7323_v16 }
 0x38d   : > { %5176 = vmatpush1.bf16.msra.mxu1 %v7321_v49  ;;  %v7416_v49 = vld [vmem:[%s10029_s9 + $0xc4] ss:$8 sps:$4 sm:$0xff]  }
 0x38e   : > { %5177 = vmatprep.subr.bf16.mxu1 %v7326_v21  ;;  %5463 = vmatprep.subr.bf16.mxu0 %v7416_v49  ;;  %v7369_v49 = vld [vmem:[%s10027_s7 + $0x1d0] ss:$8 sps:$4 sm:$0xff]  }
 0x38f   : > { %5464 = vmatpush1.bf16.msra.mxu0 %v7414_v63  ;;  %v7375_v63 = vld [vmem:[%s10027_s7 + $0x1f0] ss:$8 sps:$4 sm:$0xff]  }
 0x390   : > { %5465 = vmatprep.subr.bf16.mxu0 %v7419_v61  ;;  %v7422_v61 = vld [vmem:[%s10029_s9 + $0xe4] ss:$8 sps:$4 sm:$0xff]  }
 0x391   : > { %5178 = vmatpush1.bf16.msra.mxu1 %v7324_v5 }
 0x392   : > { %5179 = vmatprep.subr.bf16.mxu1 %v7329_v32 }
 0x393   : > { %5466 = vmatpush1.bf16.msra.mxu0 %v7417_v34  ;;  %v4817_v34 = vld [vmem:[%s10028_s8] sm:$0x3] }
 0x394   : > { %5467 = vmatprep.subr.bf16.mxu0 %v7422_v61 }
 0x395   : > { %5180 = vmatpush1.bf16.msra.mxu1 %v7327_v52 }
 0x396   : > { %5190 = vmatprep.subr.bf16.mxu1 %v7332_v15 }
 0x42b   : > { %v4480_v11 = vpop.f32.mrb[48].mxu1 }
 0x42c   : > { %v6674_v37 = vadd.f32 %v4480_v11, %v2817_v40  ;;  %v4695_v56 = vpop.f32.mrb[56].mxu0  ;;  %v4482_v54 = vpop.f32.mrb[49].mxu1  ;;  %v7333_v11 = vld [vmem:[%s10027_s7 + $0x110] ss:$8 sps:$4 sm:$0xff]  }
 0x42d   : > { %v6678_v8 = vadd.f32 %v4695_v56, %v2825_v33  ;;  %v6675_v20 = vadd.f32 %v4482_v54, %v2821_v6  ;;  %v4697_v7 = vpop.f32.mrb[57].mxu0  ;;  %v4484_v3 = vpop.f32.mrb[50].mxu1  ;;  %v7336_v56 = vld [vmem:[%s10027_s7 + $0x120] ss:$8 sps:$4 sm:$0xff]   ;;  %v7341_v54 = vld [vmem:[%s10027_s7 + $0x134] ss:$8 sps:$4 sm:$0xff]  }
 0x42e   : > { %v6679_v27 = vadd.f32 %v4697_v7, %v2829_v22  ;;  %v6676_v35 = vadd.f32 %v4484_v3, %v2817_v40  ;;  %v4699_v57 = vpop.f32.mrb[58].mxu0  ;;  %v4486_v58 = vpop.f32.mrb[51].mxu1  ;;  %v4704_v50 = vmax.f32 %v6674_v37, 0.0  ;;  %v7338_v37 = vld [vmem:[%s10027_s7 + $0x124] ss:$8 sps:$4 sm:$0xff]  }
 0x42f   : > { %v6680_v46 = vadd.f32 %v4699_v57, %v2825_v33  ;;  %v6677_v55 = vadd.f32 %v4486_v58, %v2821_v6  ;;  %v4701_v45 = vpop.f32.mrb[59].mxu0  ;;  %v4706_v60 = vmax.f32 %v6678_v8, 0.0  ;;  %v4705_v29 = vmax.f32 %v6675_v20, 0.0  ;;  %v7330_v6 = vld [vmem:[%s10027_s7 + $0x100] ss:$8 sps:$4 sm:$0xff]  }
 0x430   : > { %v4708_v13 = vmax.f32 %v6676_v35, 0.0  ;;  %v6681_v44 = vadd.f32 %v4701_v45, %v2829_v22  ;;  %v4707_v18 = vmax.f32 %v6679_v27, 0.0  ;;  %v7335_v22 = vld [vmem:[%s10027_s7 + $0x114] ss:$8 sps:$4 sm:$0xff]   ;;  %v7339_v8 = vld [vmem:[%s10027_s7 + $0x130] ss:$8 sps:$4 sm:$0xff]  }
 0x431   : > { %v4710_v1 = vmax.f32 %v6680_v46, 0.0  ;;  %v4709_v43 = vmax.f32 %v6677_v55, 0.0  ;;  %v7344_v20 = vld [vmem:[%s10027_s7 + $0x144] ss:$8 sps:$4 sm:$0xff]   ;;  %v7342_v7 = vld [vmem:[%s10027_s7 + $0x140] ss:$8 sps:$4 sm:$0xff]  }
 0x432   : > { %v4712_v38 = vadd.f32 %v4708_v13, %v4704_v50  ;;  %v4711_v16 = vmax.f32 %v6681_v44, 0.0  ;;  %v7347_v3 = vld [vmem:[%s10027_s7 + $0x154] ss:$8 sps:$4 sm:$0xff]   ;;  %v7350_v27 = vld [vmem:[%s10027_s7 + $0x164] ss:$8 sps:$4 sm:$0xff]  }
 0x433   : > { %v9782_v21 = vadd.f32 %v4710_v1, %v4706_v60  ;;  %v4719_v5 = vadd.f32 %v4709_v43, %v4705_v29  ;;  %v7348_v35 = vld [vmem:[%s10027_s7 + $0x160] ss:$8 sps:$4 sm:$0xff]   ;;  %v7353_v57 = vld [vmem:[%s10027_s7 + $0x174] ss:$8 sps:$4 sm:$0xff]   ;;  %v7351_v58 = vld [vmem:[%s10027_s7 + $0x170] ss:$8 sps:$4 sm:$0xff]  }
 0x434   : > { %v4713_v32 = vrot.slane %v4712_v38, 4  ;;  %v4733_v52 = vadd.f32 %v4711_v16, %v4707_v18  ;;  %v7354_v46 = vld [vmem:[%s10027_s7 + $0x180] ss:$8 sps:$4 sm:$0xff]   ;;  %v7359_v55 = vld [vmem:[%s10027_s7 + $0x194] ss:$8 sps:$4 sm:$0xff]  }
 0x435   : > { %v4720_v15 = vrot.slane %v4719_v5, 4  ;;  %v7357_v45 = vld [vmem:[%s10027_s7 + $0x190] ss:$8 sps:$4 sm:$0xff]   ;;  %v4727_v50 = vrot.slane %v9782_v21, 4  ;;  %v7362_v13 = vld [vmem:[%s10027_s7 + $0x1a4] ss:$8 sps:$4 sm:$0xff]  }
 0x436   : > { %v4714_v59 = vadd.f32 %v4713_v32, %v4712_v38  ;;  %v4734_v36 = vrot.slane %v4733_v52, 4  ;;  %v7360_v44 = vld [vmem:[%s10027_s7 + $0x1a0] ss:$8 sps:$4 sm:$0xff]   ;;  %v7365_v29 = vld [vmem:[%s10027_s7 + $0x1b4] ss:$8 sps:$4 sm:$0xff]  }
 0x437   : > { %v4721_v23 = vadd.f32 %v4720_v15, %v4719_v5  ;;  %v4728_v60 = vadd.f32 %v4727_v50, %v9782_v21  ;;  %v7363_v1 = vld [vmem:[%s10027_s7 + $0x1b0] ss:$8 sps:$4 sm:$0xff]   ;;  %v7366_v18 = vld [vmem:[%s10027_s7 + $0x1c0] ss:$8 sps:$4 sm:$0xff]   ;;  %v7371_v16 = vld [vmem:[%s10027_s7 + $0x1d4] ss:$8 sps:$4 sm:$0xff]  }
 0x438   : > { %v4715_v30 = vrot.slane %v4714_v59, 2  ;;  %v4735_v31 = vadd.f32 %v4734_v36, %v4733_v52  ;;  %v7374_v5 = vld [vmem:[%s10027_s7 + $0x1e4] ss:$8 sps:$4 sm:$0xff]   ;;  %v7372_v32 = vld [vmem:[%s10027_s7 + $0x1e0] ss:$8 sps:$4 sm:$0xff]  }
 0x439   : > { %v4722_v41 = vrot.slane %v4721_v23, 2  ;;  %v4729_v43 = vrot.slane %v4728_v60, 2  ;;  %v7377_v15 = vld [vmem:[%s10027_s7 + $0x1f4] ss:$8 sps:$4 sm:$0xff]  }
 0x43a   : > { %v4716_v10 = vadd.f32 %v4715_v30, %v4714_v59  ;;  %v4736_v47 = vrot.slane %v4735_v31, 2  ;;  %v7425_v30 = vld [vmem:[%s10029_s9 + $0xf4] ss:$8 sps:$4 sm:$0xff]  }
 0x43b   : > { %v4723_v19 = vadd.f32 %v4722_v41, %v4721_v23  ;;  %v4730_v38 = vadd.f32 %v4729_v43, %v4728_v60  ;;  %v7420_v23 = vld [vmem:[%s10029_s9 + $0xe0] ss:$8 sps:$4 sm:$0xff]  }
 0x43c   : > { %v4717_v28 = vrot.slane %v4716_v10, 1  ;;  %v4737_v24 = vadd.f32 %v4736_v47, %v4735_v31  ;;  %5468 = vmatpush1.bf16.msra.mxu0 %v7420_v23  ;;  %v7423_v31 = vld [vmem:[%s10029_s9 + $0xf0] ss:$8 sps:$4 sm:$0xff]   ;;  %v7426_v41 = vld [vmem:[%s10031_s11 + $0x40] sm:$0xff]   ;;  %v4826_v47 = vrot.slane %v4817_v34, %v9753_v17 }
 0x43d   : > { %v4724_v2 = vrot.slane %v4723_v19, 1  ;;  %v4731_v21 = vrot.slane %v4730_v38, 1  ;;  %5469 = vmatprep.subr.bf16.mxu0 %v7425_v30 }
 0x43e   : > { %v4718_v25 = vadd.f32 %v4717_v28, %v4716_v10  ;;  %v4738_v0 = vrot.slane %v4737_v24, 1  ;;  %v4822_v10 = vrot.slane %v4817_v34, %v9746_v39 }
 0x43f   : > { %v4725_v26 = vadd.f32 %v4724_v2, %v4723_v19  ;;  %v4732_v52 = vadd.f32 %v4731_v21, %v4730_v38 }
 0x440   : > { %v4740_v4 = vmul.f32 0.0625, %v4718_v25  ;;  %v4739_v14 = vadd.f32 %v4738_v0, %v4737_v24  ;;  %5470 = vmatpush1.bf16.msra.mxu0 %v7423_v31 }
 0x441   : > { %v4741_v12 = vmul.f32 0.0625, %v4725_v26  ;;  %v4742_v59 = vmul.f32 0.0625, %v4732_v52  ;;  %6592 = vmatprep.subr.bf16.mxu0 %v7426_v41 }
 0x442   : > { %v4743_v40 = vmul.f32 0.0625, %v4739_v14  ;;  %v6198_v51 = vpack.c.bf16 %v4740_v4, %v4740_v4 }
 0x443   : > { %v6195_v33 = vpack.c.bf16 %v4741_v12, %v4741_v12  ;;  %v6204_v36 = vpack.c.bf16 %v4742_v59, %v4742_v59  ;;  %v7427_v12 = vld [vmem:[%s10031_s11] sm:$0xff]  }
 0x444   : > { %v6201_v53 = vpack.c.bf16 %v4743_v40, %v4743_v40  ;;  %v7428_v40 = vld [vmem:[%s10031_s11 + $0x48] sm:$0xff]  }
 0x445   : > { %6196 = vmatprep.mubr.msk.bf16.mxu1 %vm9793_vm10, %v6195_v33  ;;  %v7429_v33 = vld [vmem:[%s10031_s11 + $0x8] sm:$0xff]  }
 0x446   : > { %6199 = vmatmul.mubr.msk.bf16.vlgmr.msra.gmra.mrb[52].mxu1 %vm9793_vm10, %v6198_v51  ;;  %v7431_v51 = vld [vmem:[%s10031_s11 + $0x10] sm:$0xff]  }
 0x447   : > { %5191 = vmatpush1.bf16.msra.mxu1 %v7330_v6  ;;  %6202 = vmatprep.mubr.msk.bf16.mxu1 %vm9793_vm10, %v6201_v53  ;;  %v7430_v6 = vld [vmem:[%s10031_s11 + $0x50] sm:$0xff]   ;;  %v7433_v53 = vld [vmem:[%s10031_s11 + $0x18] sm:$0xff]  }
 0x448   : > { %5192 = vmatprep.subr.bf16.mxu1 %v7335_v22  ;;  %v7432_v22 = vld [vmem:[%s10031_s11 + $0x58] sm:$0xff]  }
 0x44b   : > { %5193 = vmatpush1.bf16.msra.mxu1 %v7333_v11  ;;  %v7434_v11 = vld [vmem:[%s10031_s11 + $0x60] sm:$0xff]  }
 0x44c   : > { %5194 = vmatprep.subr.bf16.mxu1 %v7338_v37  ;;  %v7435_v37 = vld [vmem:[%s10031_s11 + $0x20] sm:$0xff]  }
 0x44f   : > { %5195 = vmatpush1.bf16.msra.mxu1 %v7336_v56  ;;  %v7436_v56 = vld [vmem:[%s10031_s11 + $0x68] sm:$0xff]  }
 0x450   : > { %5196 = vmatprep.subr.bf16.mxu1 %v7341_v54  ;;  %v7437_v54 = vld [vmem:[%s10031_s11 + $0x28] sm:$0xff]  }
 0x453   : > { %5197 = vmatpush1.bf16.msra.mxu1 %v7339_v8  ;;  %v7438_v8 = vld [vmem:[%s10031_s11 + $0x70] sm:$0xff]  }
 0x454   : > { %5198 = vmatprep.subr.bf16.mxu1 %v7344_v20  ;;  %v7439_v20 = vld [vmem:[%s10031_s11 + $0x30] sm:$0xff]  }
 0x457   : > { %5199 = vmatpush1.bf16.msra.mxu1 %v7342_v7  ;;  %v7440_v7 = vld [vmem:[%s10031_s11 + $0x78] sm:$0xff]  }
 0x458   : > { %5200 = vmatprep.subr.bf16.mxu1 %v7347_v3  ;;  %v7441_v3 = vld [vmem:[%s10031_s11 + $0x38] sm:$0xff]  }
 0x45b   : > { %5201 = vmatpush1.bf16.msra.mxu1 %v7345_v48  ;;  %v5267_v48 = vld [vmem:[%s10030_s10] sm:$0x3] }
 0x45c   : > { %5202 = vmatprep.subr.bf16.mxu1 %v7350_v27  ;;  %v5272_v27 = vrot.slane %v5267_v48, %v9746_v39  ;;  %v6238_v39 = vld [vmem:[%s10032_s12] ss:$0 sm:$0xff] }
 0x45f   : > { %5203 = vmatpush1.bf16.msra.mxu1 %v7348_v35  ;;  %v5276_v35 = vrot.slane %v5267_v48, %v9753_v17 }
 0x460   : > { %5204 = vmatprep.subr.bf16.mxu1 %v7353_v57 }
 0x463   : > { %5205 = vmatpush1.bf16.msra.mxu1 %v7351_v58 }
 0x464   : > { %5206 = vmatprep.subr.bf16.mxu1 %v7356_v9 }
 0x467   : > { %5207 = vmatpush1.bf16.msra.mxu1 %v7354_v46 }
 0x468   : > { %5208 = vmatprep.subr.bf16.mxu1 %v7359_v55 }
 0x46b   : > { %5209 = vmatpush1.bf16.msra.mxu1 %v7357_v45 }
 0x46c   : > { %5210 = vmatprep.subr.bf16.mxu1 %v7362_v13 }
 0x46f   : > { %5211 = vmatpush1.bf16.msra.mxu1 %v7360_v44 }
 0x470   : > { %5212 = vmatprep.subr.bf16.mxu1 %v7365_v29 }
 0x473   : > { %5213 = vmatpush1.bf16.msra.mxu1 %v7363_v1 }
 0x474   : > { %5214 = vmatprep.subr.bf16.mxu1 %v7368_v62 }
 0x477   : > { %5215 = vmatpush1.bf16.msra.mxu1 %v7366_v18 }
 0x478   : > { %5216 = vmatprep.subr.bf16.mxu1 %v7371_v16 }
 0x47b   : > { %5217 = vmatpush1.bf16.msra.mxu1 %v7369_v49 }
 0x47c   : > { %5218 = vmatprep.subr.bf16.mxu1 %v7374_v5 }
 0x47f   : > { %5219 = vmatpush1.bf16.msra.mxu1 %v7372_v32 }
 0x480   : > { %5220 = vmatprep.subr.bf16.mxu1 %v7377_v15 }
 0x483   : > { %5221 = vmatpush1.bf16.msra.mxu1 %v7375_v63 }
 0x486   : > { %6205 = vmatmul.mubr.msk.bf16.vlgmr.msra.gmra.mrb[52].mxu1 %vm9793_vm10, %v6204_v36 }
 0x559   : > { %v5224_v19 = vpop.f32.mrb[52].mxu1 }
 0x55a   : > { %v6682_v28 = vadd.f32 %v5224_v19, %v4822_v10  ;;  %v5226_v24 = vpop.f32.mrb[53].mxu1 }
 0x55b   : > { %v6683_v2 = vadd.f32 %v5226_v24, %v4826_v47  ;;  %v5228_v25 = vpop.f32.mrb[54].mxu1 }
 0x55c   : > { %v5231_v0 = vmax.f32 %v6682_v28, 0.0  ;;  %v5229_v26 = vpop.f32.mrb[55].mxu1 }
 0x55d   : > { %v5232_v4 = vmax.f32 %v6683_v2, 0.0 }
 0x55e   : > { %v5233_v42 = vpack.c.bf16 %v5231_v0, %v5231_v0 }
 0x55f   : > { %v5234_v14 = vpack.c.bf16 %v5232_v4, %v5232_v4 }
 0x561   : > { %5471 = vmatprep.mubr.bf16.mxu0 %v5234_v14 }
 0x562   : > { %5472 = vmatmul.mubr.bf16.vlgmr.msra.gmra.mrb[60].mxu0 %v5233_v42 }
 0x563   : > { %6593 = vmatpush3.bf16.msra.mxu0 %v7427_v12 }
 0x564   : > { %6594 = vmatprep.subr.bf16.mxu0 %v7428_v40 }
 0x567   : > { %6595 = vmatpush3.bf16.msra.mxu0 %v7429_v33 }
 0x568   : > { %6596 = vmatprep.subr.bf16.mxu0 %v7430_v6 }
 0x56b   : > { %6597 = vmatpush3.bf16.msra.mxu0 %v7431_v51 }
 0x56c   : > { %6598 = vmatprep.subr.bf16.mxu0 %v7432_v22 }
 0x56f   : > { %6599 = vmatpush3.bf16.msra.mxu0 %v7433_v53 }
 0x570   : > { %6600 = vmatprep.subr.bf16.mxu0 %v7434_v11 }
 0x573   : > { %6601 = vmatpush3.bf16.msra.mxu0 %v7435_v37 }
 0x574   : > { %6602 = vmatprep.subr.bf16.mxu0 %v7436_v56 }
 0x577   : > { %6603 = vmatpush3.bf16.msra.mxu0 %v7437_v54 }
 0x578   : > { %6604 = vmatprep.subr.bf16.mxu0 %v7438_v8 }
 0x57b   : > { %6605 = vmatpush3.bf16.msra.mxu0 %v7439_v20 }
 0x57c   : > { %6606 = vmatprep.subr.bf16.mxu0 %v7440_v7 }
 0x57f   : > { %6607 = vmatpush3.bf16.msra.mxu0 %v7441_v3 }
 0x635   : > { %v5473_v57 = vpop.f32.mrb[60].mxu0 }
 0x636   : > { %v5474_v58 = vadd.f32 %v5473_v57, %v5272_v27  ;;  %v5475_v9 = vpop.f32.mrb[61].mxu0 }
 0x637   : > { %v5476_v46 = vadd.f32 %v5475_v9, %v5276_v35  ;;  %v5477_v55 = vpop.f32.mrb[62].mxu0 }
 0x638   : > { %v5480_v45 = vmax.f32 %v5474_v58, 0.0  ;;  %v5478_v50 = vpop.f32.mrb[63].mxu0 }
 0x639   : > { %v5481_v13 = vmax.f32 %v5476_v46, 0.0 }
 0x63a   : > { %v5482_v60 = vpack.c.bf16 %v5480_v45, %v5480_v45 }
 0x63b   : > { %v5483_v44 = vpack.c.bf16 %v5481_v13, %v5481_v13 }
 0x63d   : > { %5651 = vmatprep.mubr.bf16.mxu0 %v5483_v44 }
 0x63e   : > { %5652 = vmatmul.mubr.bf16.vlgmr.msra.gmra.mrb[64].mxu0 %v5482_v60 }
 0x711   : > { %v6608_v29 = vpop.f32.mrb[64].mxu0 }
 0x712   : > { %v6609_v17 = vpop.f32.mrb[65].mxu0 }
 0x713   : > { %v6610_v1 = vadd.f32 %v6609_v17, %v6608_v29  ;;  %v6611_v43 = vpop.f32.mrb[66].mxu0 }
 0x714   : > { %v6612_v62 = vpop.f32.mrb[67].mxu0 }
 0x715   : > { %v5654_v18 = vadd.f32 %v6610_v1, %v6238_v39 }
 0x717   : > { %5659 = vst [vmem:[%s433_s20] sm:$0x1] %v5654_v18 }
 0x718   : > { %7455 = shalt.err (!%p7452_p3)
}
 0x719   : > { %s7456_s24 = scalar_lea.hbm %s9978_s22, 16  ;;  %s7460_s0 = scalar_lea.hbm %s10033_s13, 32 }
 0x71a   : > { %p7457_p4 = scmp.ne.s32.totalorder %s9978_s22, %s7456_s24  ;;  %p7461_p9 = scmp.lt.u32.totalorder %s9978_s22, %s10033_s13 }
 0x71b   : > { %p7462_p10 = scmp.lt.u32.totalorder %s7460_s0, %s7456_s24  ;;  %p7464_p12 = scmp.lt.u32.totalorder %s7456_s24, %s9978_s22 }
 0x71c   : > { %p7458_p7 = pnand %p7457_p4, %p7616_p5 }
 0x71d   : > { %p7463_p11 = por %p7462_p10, %p7461_p9 }
 0x71e   : > { %p7459_p8 = pneg %p7458_p7 }
 0x71f   : > { %p7465_p13 = por %p7464_p12, %p7463_p11 }
 0x721   : > { %p7466_p0 = pnand %p7465_p13, %p7459_p8 }
 0x723   : > { %7469 = shalt.err (!%p7466_p0)
}
 0x724   : > { %6720 = dma.vmem_to_hbm [thread:$0]  (%p7616_p5), %s9980_s21, 16, %s9978_s22, %s5661_s23  }
 0x725 PF: > { %p6726_p1 = scmp.ge.s32.totalorder %s7504_s28, 2  ;;  %s5685_s1 = sand.u32 1, %s7492_s25  }
 0x726   : > { %s5686_s30 = scalar_lea.sflag [#allocation11], %s5685_s1 }
 0x727   : > { %p6723_p2 = pnand %p6726_p1, %p7620_p6 }
 0x729   : > { %7487 = dma.done.wait (!%p6723_p2), %s5686_s30, 16  }
 0x72a   : > { %7489 = vsyncadd (!%p6723_p2), %s5686_s30, 4294967280  ;;  %s10205_s15 = sld [smem:[#allocation13_spill]]  ;;  %p23_p3 = scmp.ge.s32.totalorder %s7603_s14, 4  }
 0x72b   : > { %s10206_s25 = smov %s7496_s26  ;;  %s10207_s26 = smov %s7500_s27 }
 0x72c   : > { %s10209_s28 = smov %s7603_s14  ;;  %25 = sbr.rel (!%p23_p3) target bundleno = 6 (0x6), region = 145 }
 0x730   : > { %s10208_s27 = smov %s10205_s15 }
 0x733   :  { %5690 = vsyncpa [#allocation11], 1 }
 0x734   :  { %5692 = vsyncpa [#allocation11 + $0x1], 1 }

</bundles_post_ra>
